<compile_context>
chip_gen: v5e
topology: v5e:2x2
jax: 0.10.0
libtpu: 0.0.40
codegen_flags: <defaults>
</compile_context>

<pallas_src>
import functools

import jax
import jax.numpy as jnp
from jax.experimental import pallas as pl
from jax.experimental.pallas import tpu as pltpu


def _round_up(v, m):
    return (v + m - 1) // m * m


# ---------------------------------------------------------------------------
# Graph preprocessing (run ONCE per graph; hoisted out of the forward pass).
# ---------------------------------------------------------------------------
def prepare_graph(edge_index, num_nodes):
    """Dense symmetric adjacency (bf16) + D^{-1/2} (f32), zero padded to a
    multiple of 128 nodes only (the row tile is chosen independently)."""
    n_pad = _round_up(num_nodes, 128)

    src, dst = edge_index[0], edge_index[1]
    a = jnp.zeros((num_nodes, num_nodes), jnp.float32).at[dst, src].add(1.0)
    a = jnp.maximum(a, a.T)                                   # symmetrize
    a = a * (1.0 - jnp.eye(num_nodes, dtype=jnp.float32))     # drop self loops
    # TODO(synk): torch_geometric's ChebConv uses the raw (possibly directed /
    # multi-edge / self-loop) edge list for the Laplacian; this densified
    # symmetric simple-graph variant can differ for such graphs.
    deg = a.sum(axis=1)
    dinv = jnp.where(deg > 0.0, 1.0 / jnp.sqrt(jnp.maximum(deg, 1e-12)), 0.0)

    # bf16 adjacency: exact for 0/1 entries.  Padded nodes get dinv == 0,
    # which masks them out of every propagation step.
    a_pad = jnp.zeros((n_pad, n_pad), jnp.bfloat16)
    a_pad = a_pad.at[:num_nodes, :num_nodes].set(a.astype(jnp.bfloat16))
    dinv_pad = jnp.zeros((n_pad, 1), jnp.float32).at[:num_nodes, 0].set(dinv)
    return a_pad, dinv_pad


# ---------------------------------------------------------------------------
# Wrapper-side layout plumbing (zero-padding + weight stacking).
# ---------------------------------------------------------------------------
def _pad2(a, rows, cols):
    out = jnp.zeros((rows, cols), jnp.float32)
    return out.at[: a.shape[0], : a.shape[1]].set(a.astype(jnp.float32))


def _stack_blocks(w, in_pad, out_pad):
    """(Kb, F, H) -> (Kb * in_pad, out_pad) block-row stack, zero padded, so a
    layer's per-order feature matmuls collapse into one lane-dense MXU dot."""
    kb, f, h = w.shape
    out = jnp.zeros((kb * in_pad, out_pad), jnp.float32)
    for j in range(kb):
        out = out.at[j * in_pad: j * in_pad + f, :h].set(w[j].astype(jnp.float32))
    return out


def _build_schedule(k, k_mix):
    """Flatten the network's Chebyshev recursions into a list of
    'one Laplacian matmul' steps (the outer grid axis)."""
    if k < 2 or k_mix < 1 or k_mix > k:
        # TODO(synk): K == 1 (no propagation) and K_mix > K need a different
        # schedule; module defaults K=2, K_mix=1 are covered.
        raise NotImplementedError("schedule requires K >= 2 and 1 <= K_mix <= K")

    sched = []
    # Layer 1: reduced basis (T_0 = x is never stored); block j-1 holds T_j x.
    for j in range(1, k):
        sched.append(dict(
            layer="l1", dst_blk=j - 1,
            coef=-1.0 if j == 1 else -2.0,
            sub=None if j == 1 else (("x", 0) if j == 2 else ("l1", j - 3)),
            u_from_tnew=(j < k - 1), finals=[]))
    sched[-1]["finals"].append("l1")
    # Layer 2: block j holds T_j h1 (block 0 = h1 is written by the l1 epilogue).
    for j in range(1, k):
        sched.append(dict(
            layer="l2", dst_blk=j,
            coef=-1.0 if j == 1 else -2.0,
            sub=None if j == 1 else ("l2", j - 2),
            u_from_tnew=(j < k - 1), finals=[]))
    sched[-1]["finals"].append("l2")
    # Mix layer (only has Laplacian steps when K_mix >= 2).
    for j in range(1, k_mix):
        sched.append(dict(
            layer="mix", dst_blk=j,
            coef=-1.0 if j == 1 else -2.0,
            sub=None if j == 1 else ("mix", j - 2),
            u_from_tnew=(j < k_mix - 1), finals=[]))
    sched[-1]["finals"].append("out")
    return sched


# ---------------------------------------------------------------------------
# The fused kernel.
# ---------------------------------------------------------------------------
def _kipfnet_kernel(a_ref, x_ref, dinv_ref,
                    w1_0_ref, w1_r_ref, b1_ref,
                    w2_ref, b2_ref,
                    wmh_ref, wmx0_ref, wmxr_ref, bm_ref,
                    o_ref,
                    b1s_ref, b2s_ref, bms_ref, u0_ref, u1_ref,
                    *, schedule, tm, f0p, h1p, h2p, k_mix,
                    a_resident, basis_dtype):
    """Grid point = (schedule step, row slab).  All feature-side tensors live
    in resident VMEM scratch; A is either VMEM-resident or streamed in slabs."""
    s = pl.program_id(0)          # which L_hat @ (.) matmul of the network
    i = pl.program_id(1)          # which row slab

    row0 = pl.multiple_of(i * tm, tm)
    rows = pl.ds(row0, tm)
    d_rows = dinv_ref[rows, :]                               # (tm, 1) f32

    bufs = {"l1": b1s_ref, "l2": b2s_ref, "mix": bms_ref}
    widths = {"l1": f0p, "l2": h1p, "mix": h2p}
    u_bufs = (u0_ref, u1_ref)

    # One-time prologue (first step only): u_0 = D^{-1/2} x (bf16 MXU operand).
    @pl.when(jnp.logical_and(s == 0, i == 0))
    def _init_u():
        u0_ref[:, pl.ds(0, f0p)] = (dinv_ref[...] * x_ref[...]).astype(jnp.bfloat16)

    for sv, st in enumerate(schedule):
        @pl.when(s == sv)
        def _step(sv=sv, st=st):
            w = widths[st["layer"]]
            dst = bufs[st["layer"]]
            u_read = u_bufs[sv % 2]           # D^{-1/2} T_{k-1}, all rows
            u_write = u_bufs[(sv + 1) % 2]    # operand of the NEXT step

            # (tm, N_pad) @ (N_pad, w) bf16 MXU dot, f32 accumulation.
            a_slab = a_ref[rows, :] if a_resident else a_ref[...]
            y = jnp.dot(a_slab, u_read[:, pl.ds(0, w)],
                        preferred_element_type=jnp.float32)

            # T_k = coef * D^{-1/2} (A u) - T_{k-2}: the Laplacian sign and the
            # Chebyshev 2x fold into one (tm, 1) row scale.
            t_new = (st["coef"] * d_rows) * y
            if st["sub"] is not None:
                sb, sblk = st["sub"]
                if sb == "x":
                    t_new = t_new - x_ref[rows, :]
                else:
                    t_new = t_new - bufs[sb][rows, pl.ds(sblk * w, w)].astype(
                        jnp.float32)
            dst[rows, pl.ds(st["dst_blk"] * w, w)] = t_new.astype(basis_dtype)

            # Fused per-slab refresh of the next step's MXU operand (replaces
            # the old serialized per-step "@pl.when(i == 0)" prologue).
            if st["u_from_tnew"]:
                u_write[rows, pl.ds(0, w)] = (d_rows * t_new).astype(jnp.bfloat16)

            finals = st["finals"]
            h2 = None
            if "l1" in finals:   # Kipfblock1: bias + ReLU (eval dropout = id)
                h1 = jnp.dot(x_ref[rows, :], w1_0_ref[...],
                             preferred_element_type=jnp.float32)
                h1 = h1 + jnp.dot(b1s_ref[rows, :], w1_r_ref[...],
                                  preferred_element_type=jnp.float32)
                h1 = jnp.maximum(h1 + b1_ref[...], 0.0)
                b2s_ref[rows, pl.ds(0, h1p)] = h1.astype(basis_dtype)
                u_write[rows, pl.ds(0, h1p)] = (d_rows * h1).astype(jnp.bfloat16)
            if "l2" in finals:   # Kipfblock2
                h2 = jnp.dot(b2s_ref[rows, :], w2_ref[...],
                             preferred_element_type=jnp.float32)
                h2 = jnp.maximum(h2 + b2_ref[...], 0.0)
                bms_ref[rows, pl.ds(0, h2p)] = h2.astype(basis_dtype)
                if k_mix >= 2:
                    u_write[rows, pl.ds(0, h2p)] = (d_rows * h2).astype(jnp.bfloat16)
            if "out" in finals:  # conv_mix on [h2 | x]; concat decomposed.
                if k_mix == 1:
                    hp = jnp.dot(h2, wmh_ref[...],
                                 preferred_element_type=jnp.float32)
                else:
                    hp = jnp.dot(bms_ref[rows, :], wmh_ref[...],
                                 preferred_element_type=jnp.float32)
                om = hp + jnp.dot(x_ref[rows, :], wmx0_ref[...],
                                  preferred_element_type=jnp.float32)
                nxr = max(k_mix - 1, 1)   # zero block when K_mix == 1 (exact no-op)
                om = om + jnp.dot(b1s_ref[rows, pl.ds(0, nxr * f0p)], wmxr_ref[...],
                                  preferred_element_type=jnp.float32)
                o_ref[...] = om + bm_ref[...]


# ---------------------------------------------------------------------------
# VMEM planning helpers.
# ---------------------------------------------------------------------------
def _vmem_budget_bytes():
    try:
        return int(pltpu.get_tpu_info().vmem_capacity_bytes)
    except Exception:
        return 64 * 1024 * 1024          # v7x per-TensorCore VMEM (conservative)


def _vmem_bytes(n_pad, tm, f0p, h1p, h2p, cp, k, k_mix, basis_bytes, a_resident):
    """Conservative accounting of every VMEM consumer, INCLUDING the pipeline's
    double-buffering of each BlockSpec'd operand."""
    uw = max(f0p, h1p, h2p)
    a_bytes = 2 * (n_pad * n_pad if a_resident else tm * n_pad) * 2
    const_bytes = 2 * 4 * (
        n_pad * f0p + n_pad * 128 +                              # x, dinv (lane pad)
        f0p * h1p + (k - 1) * f0p * h1p +                        # W1 split
        k * h1p * h2p +                                          # W2 stack
        k_mix * h2p * cp + f0p * cp + max(k_mix - 1, 1) * f0p * cp +  # W_mix
        8 * (h1p + h2p + cp))                                    # biases (sublane pad)
    out_bytes = 2 * tm * cp * 4
    scratch_bytes = (n_pad * ((k - 1) * f0p + k * h1p + k_mix * h2p) * basis_bytes
                     + 2 * n_pad * uw * 2)                       # double-buffered u
    return a_bytes + const_bytes + out_bytes + scratch_bytes


# ---------------------------------------------------------------------------
# Forward wrapper.
# ---------------------------------------------------------------------------
def kipfnetd2_forward(x, a_pad, dinv_pad, params, row_tile=None):
    """KipfNetd2 forward (eval mode, inout_skipconn=True) as one pallas_call."""
    w1, b1 = params["W1"], params["b1"]
    w2, b2 = params["W2"], params["b2"]
    wm, bm = params["Wmix"], params["bmix"]

    n, f0 = x.shape
    k = w1.shape[0]
    k_mix = wm.shape[0]
    nh1, nh2 = w1.shape[2], w2.shape[2]
    n_cls = wm.shape[2]
    assert wm.shape[1] == nh2 + f0, "conv_mix expects the [h2 | x] skip concat"

    n_pad = a_pad.shape[0]
    assert a_pad.shape == (n_pad, n_pad) and n_pad >= n and n_pad % 128 == 0

    # Lane-dense 128 padding of every feature dim.
    f0p = _round_up(f0, 128)
    h1p = _round_up(nh1, 128)
    h2p = _round_up(nh2, 128)
    cp = _round_up(n_cls, 128)
    uw = max(f0p, h1p, h2p)

    # Row tile: decoupled from the (128-granular) node padding.
    if row_tile is None:
        tm = next(t for t in (512, 256, 128) if n_pad % t == 0)
    else:
        tm = row_tile
        assert n_pad % tm == 0 and tm % 128 == 0

    # VMEM plan: prefer (f32 bases, resident A); degrade to bf16 bases and/or
    # streamed A row slabs, then a smaller row tile, as the budget tightens.
    budget = _vmem_budget_bytes()
    usable = int(0.85 * budget)
    plan = None
    for bd, bb, ares in ((jnp.float32, 4, True), (jnp.bfloat16, 2, True),
                         (jnp.float32, 4, False), (jnp.bfloat16, 2, False)):
        if _vmem_bytes(n_pad, tm, f0p, h1p, h2p, cp, k, k_mix, bb, ares) <= usable:
            plan = (bd, bb, ares)
            break
    if plan is None:
        plan = (jnp.bfloat16, 2, False)
        if row_tile is None:
            while tm > 128 and _vmem_bytes(n_pad, tm, f0p, h1p, h2p, cp, k,
                                           k_mix, 2, False) > usable:
                tm //= 2
    basis_dtype, basis_bytes, a_resident = plan
    n_tiles = n_pad // tm

    # Layout plumbing: zero padding + block-row stacked weights.  T_0 = x is
    # never materialized, so W1 / the x rows of W_mix are split by order 0.
    x_p = _pad2(x, n_pad, f0p)
    w1_0 = _pad2(w1[0], f0p, h1p)
    w1_r = _stack_blocks(w1[1:], f0p, h1p)
    w2s = _stack_blocks(w2, h1p, h2p)
    wmh = _stack_blocks(wm[:, :nh2, :], h2p, cp)
    wmx0 = _pad2(wm[0, nh2:, :], f0p, cp)
    if k_mix >= 2:
        wmxr = _stack_blocks(wm[1:, nh2:, :], f0p, cp)
    else:
        wmxr = jnp.zeros((f0p, cp), jnp.float32)     # zero block: exact no-op
    b1p = _pad2(b1.reshape(1, -1), 1, h1p)
    b2p = _pad2(b2.reshape(1, -1), 1, h2p)
    bmp = _pad2(bm.reshape(1, -1), 1, cp)

    schedule = _build_schedule(k, k_mix)
    n_steps = len(schedule)
    last = n_steps - 1
    grid = (n_steps, n_tiles)

    kernel = functools.partial(
        _kipfnet_kernel, schedule=schedule, tm=tm,
        f0p=f0p, h1p=h1p, h2p=h2p, k_mix=k_mix,
        a_resident=a_resident, basis_dtype=basis_dtype)

    # Advisory cost model for XLA's scheduler around the custom call.
    widths = {"l1": f0p, "l2": h1p, "mix": h2p}
    l_flops = sum(2 * n_pad * n_pad * widths[st["layer"]] for st in schedule)
    f_flops = 2 * n_pad * (k * f0p * h1p + k * h1p * h2p
                           + k_mix * (h2p + f0p) * cp)
    a_reads = 1 if a_resident else n_steps
    bytes_accessed = (a_reads * n_pad * n_pad * 2
                      + n_pad * (f0p + cp + 1) * 4
                      + 4 * (k * f0p * h1p + k * h1p * h2p
                             + k_mix * (h2p + f0p) * cp))
    cost = pl.CostEstimate(flops=int(l_flops + f_flops), transcendentals=0,
                           bytes_accessed=int(bytes_accessed))

    est = _vmem_bytes(n_pad, tm, f0p, h1p, h2p, cp, k, k_mix,
                      basis_bytes, a_resident)
    vmem_limit = int(min(0.95 * budget, max(32 * 1024 * 1024, 1.25 * est)))

    if a_resident:
        # One HBM read of A for the whole network (constant block index).
        # TODO(synk): an unblocked memory_space=VMEM spec / pl.Buffered(1)
        # would drop the second pipeline buffer of A and of the constant
        # operands; kept as constant-index BlockSpecs for Mosaic portability.
        a_spec = pl.BlockSpec((n_pad, n_pad), lambda s, i: (0, 0))
    else:
        a_spec = pl.BlockSpec((tm, n_pad), lambda s, i: (i, 0))

    out_pad = pl.pallas_call(
        kernel,
        out_shape=jax.ShapeDtypeStruct((n_pad, cp), jnp.float32),
        grid_spec=pltpu.PrefetchScalarGridSpec(
            num_scalar_prefetch=0,
            grid=grid,
            in_specs=[
                a_spec,                                                  # A
                pl.BlockSpec((n_pad, f0p), lambda s, i: (0, 0)),         # x
                pl.BlockSpec((n_pad, 1), lambda s, i: (0, 0)),           # D^{-1/2}
                pl.BlockSpec((f0p, h1p), lambda s, i: (0, 0)),           # W1[0]
                pl.BlockSpec(((k - 1) * f0p, h1p), lambda s, i: (0, 0)), # W1[1:]
                pl.BlockSpec((1, h1p), lambda s, i: (0, 0)),             # b1
                pl.BlockSpec((k * h1p, h2p), lambda s, i: (0, 0)),       # W2 stack
                pl.BlockSpec((1, h2p), lambda s, i: (0, 0)),             # b2
                pl.BlockSpec((k_mix * h2p, cp), lambda s, i: (0, 0)),    # W_mix (h2)
                pl.BlockSpec((f0p, cp), lambda s, i: (0, 0)),            # W_mix (x, k=0)
                pl.BlockSpec((max(k_mix - 1, 1) * f0p, cp),
                             lambda s, i: (0, 0)),                       # W_mix (x, k>=1)
                pl.BlockSpec((1, cp), lambda s, i: (0, 0)),              # b_mix
            ],
            # Output blocks are only "visited" on the last schedule step, so
            # intermediate steps never flush uninitialized VMEM to HBM and the
            # result is written to HBM exactly once per row slab.
            out_specs=pl.BlockSpec(
                (tm, cp), lambda s, i: (jnp.where(s == last, i, 0), 0)),
            scratch_shapes=[
                pltpu.VMEM((n_pad, (k - 1) * f0p), basis_dtype),  # [T_1..T_{K-1}] x
                pltpu.VMEM((n_pad, k * h1p), basis_dtype),        # [h1, T_1 h1, ...]
                pltpu.VMEM((n_pad, k_mix * h2p), basis_dtype),    # [h2, T_1 h2, ...]
                pltpu.VMEM((n_pad, uw), jnp.bfloat16),            # u (even steps)
                pltpu.VMEM((n_pad, uw), jnp.bfloat16),            # u (odd steps)
            ]),
        compiler_params=pltpu.CompilerParams(
            # Both axes are sequential: the Chebyshev recursion and the layer
            # handoffs flow through resident VMEM scratch.
            # TODO(synk): a v7x 2-core split needs per-core row ownership plus
            # a cross-core exchange of `u` between steps.
            dimension_semantics=("arbitrary", "arbitrary"),
            vmem_limit_bytes=vmem_limit),
        cost_estimate=cost,
    )(a_pad, x_p, dinv_pad, w1_0, w1_r, b1p, w2s, b2p, wmh, wmx0, wmxr, bmp)

    return out_pad[:n, :n_cls]


# ---------------------------------------------------------------------------
# Pure-JAX f32 reference (mirrors the PyTorch module in eval mode).
# ---------------------------------------------------------------------------
def kipfnetd2_reference(x, edge_index, params):
    w1, b1 = params["W1"], params["b1"]
    w2, b2 = params["W2"], params["b2"]
    wm, bm = params["Wmix"], params["bmix"]
    n = x.shape[0]
    src, dst = edge_index[0], edge_index[1]
    a = jnp.zeros((n, n), jnp.float32).at[dst, src].add(1.0)
    a = jnp.maximum(a, a.T)
    a = a * (1.0 - jnp.eye(n, dtype=jnp.float32))
    deg = a.sum(axis=1)
    dinv = jnp.where(deg > 0.0, 1.0 / jnp.sqrt(jnp.maximum(deg, 1e-12)), 0.0)
    lap = -(dinv[:, None] * a * dinv[None, :])   # 2/lambda_max * L_sym - I

    def cheb(h, w, b):
        kk = w.shape[0]
        t0 = h
        out = t0 @ w[0]
        if kk > 1:
            t1 = lap @ h
            out = out + t1 @ w[1]
            for j in range(2, kk):
                t2 = 2.0 * (lap @ t1) - t0
                out = out + t2 @ w[j]
                t0, t1 = t1, t2
        return out + b

    h1 = jax.nn.relu(cheb(x, w1, b1))
    h2 = jax.nn.relu(cheb(h1, w2, b2))
    xc = jnp.concatenate([h2, x], axis=1)        # inout_skipconn
    return cheb(xc, wm, bm)


if __name__ == "__main__":
    # Small deterministic problem consistent with KipfNetd2 defaults:
    # nh1=nh2=2, K=2, K_mix=1, inout_skipconn=True.
    NUM_FEATURES = 8
    NUM_CLASSES = 4
    NH1, NH2 = 2, 2
    K, K_MIX = 2, 1
    N_NODES, N_EDGES = 200, 800

    key = jax.random.PRNGKey(0)
    kx, ke, kw1, kb1, kw2, kb2, kwm, kbm = jax.random.split(key, 8)

    x = jax.random.normal(kx, (N_NODES, NUM_FEATURES), jnp.float32)
    src = jax.random.randint(ke, (N_EDGES,), 0, N_NODES)
    dst = jax.random.randint(jax.random.fold_in(ke, 1), (N_EDGES,), 0, N_NODES)
    edge_index = jnp.stack([src, dst]).astype(jnp.int32)

    def glorot(kk, shape):
        scale = jnp.sqrt(2.0 / (shape[-2] + shape[-1])).astype(jnp.float32)
        return scale * jax.random.normal(kk, shape, jnp.float32)

    params = dict(
        W1=glorot(kw1, (K, NUM_FEATURES, NH1)),
        b1=0.01 * jax.random.normal(kb1, (NH1,), jnp.float32),
        W2=glorot(kw2, (K, NH1, NH2)),
        b2=0.01 * jax.random.normal(kb2, (NH2,), jnp.float32),
        Wmix=glorot(kwm, (K_MIX, NH2 + NUM_FEATURES, NUM_CLASSES)),
        bmix=0.01 * jax.random.normal(kbm, (NUM_CLASSES,), jnp.float32),
    )

    # Graph operators built ONCE per graph (hoisted out of the forward path).
    a_pad, dinv_pad = prepare_graph(edge_index, N_NODES)

    ref = jax.block_until_ready(kipfnetd2_reference(x, edge_index, params))
    scale = float(jnp.max(jnp.abs(ref)))

    # Run with the default row tile (one slab at n_pad=256) and with an
    # explicit 128 tile (two slabs: exercises the cross-slab fused-u path).
    for rt in (None, 128):
        fwd = jax.jit(functools.partial(kipfnetd2_forward, row_tile=rt))
        out = jax.block_until_ready(fwd(x, a_pad, dinv_pad, params))
        assert out.shape == (N_NODES, NUM_CLASSES)
        assert bool(jnp.all(jnp.isfinite(out)))
        err = float(jnp.max(jnp.abs(out - ref)))
        # Loose tolerance: the adjacency matmuls run with bf16 MXU operands.
        assert err <= 5e-2 * scale + 5e-2, (
            f"mismatch (row_tile={rt}): max|diff|={err}, max|ref|={scale}")

    print("KERNEL_OK")
</pallas_src>

<mosaic_0001>
module attributes {stable_mosaic.version = 11 : i64} {
  func.func @_kipfnet_kernel(%arg0: i32, %arg1: i32, %arg2: memref<256x256xbf16, #tpu.memory_space<vmem>>, %arg3: memref<256x128xf32, #tpu.memory_space<vmem>>, %arg4: memref<256x1xf32, #tpu.memory_space<vmem>>, %arg5: memref<128x128xf32, #tpu.memory_space<vmem>>, %arg6: memref<128x128xf32, #tpu.memory_space<vmem>>, %arg7: memref<1x128xf32, #tpu.memory_space<vmem>>, %arg8: memref<256x128xf32, #tpu.memory_space<vmem>>, %arg9: memref<1x128xf32, #tpu.memory_space<vmem>>, %arg10: memref<128x128xf32, #tpu.memory_space<vmem>>, %arg11: memref<128x128xf32, #tpu.memory_space<vmem>>, %arg12: memref<128x128xf32, #tpu.memory_space<vmem>>, %arg13: memref<1x128xf32, #tpu.memory_space<vmem>>, %arg14: memref<256x128xf32, #tpu.memory_space<vmem>>, %arg15: memref<256x128xf32, #tpu.memory_space<vmem>>, %arg16: memref<256x256xf32, #tpu.memory_space<vmem>>, %arg17: memref<256x128xf32, #tpu.memory_space<vmem>>, %arg18: memref<256x128xbf16, #tpu.memory_space<vmem>>, %arg19: memref<256x128xbf16, #tpu.memory_space<vmem>>) attributes {dimension_semantics = [#tpu.dimension_semantics<arbitrary>, #tpu.dimension_semantics<arbitrary>], iteration_bounds = array<i64: 2, 1>, scalar_prefetch = 0 : i64, scratch_operands = 5 : i64, tpu.core_type = #tpu.core_type<tc>, window_params = [{pipeline_mode = #tpu.pipeline_mode<synchronous>, transform_indices = @transform_0, window_bounds = array<i64: 256, 256>}, {pipeline_mode = #tpu.pipeline_mode<synchronous>, transform_indices = @transform_1, window_bounds = array<i64: 256, 128>}, {pipeline_mode = #tpu.pipeline_mode<synchronous>, transform_indices = @transform_2, window_bounds = array<i64: 256, 1>}, {pipeline_mode = #tpu.pipeline_mode<synchronous>, transform_indices = @transform_3, window_bounds = array<i64: 128, 128>}, {pipeline_mode = #tpu.pipeline_mode<synchronous>, transform_indices = @transform_4, window_bounds = array<i64: 128, 128>}, {pipeline_mode = #tpu.pipeline_mode<synchronous>, transform_indices = @transform_5, window_bounds = array<i64: 1, 128>}, {pipeline_mode = #tpu.pipeline_mode<synchronous>, transform_indices = @transform_6, window_bounds = array<i64: 256, 128>}, {pipeline_mode = #tpu.pipeline_mode<synchronous>, transform_indices = @transform_7, window_bounds = array<i64: 1, 128>}, {pipeline_mode = #tpu.pipeline_mode<synchronous>, transform_indices = @transform_8, window_bounds = array<i64: 128, 128>}, {pipeline_mode = #tpu.pipeline_mode<synchronous>, transform_indices = @transform_9, window_bounds = array<i64: 128, 128>}, {pipeline_mode = #tpu.pipeline_mode<synchronous>, transform_indices = @transform_10, window_bounds = array<i64: 128, 128>}, {pipeline_mode = #tpu.pipeline_mode<synchronous>, transform_indices = @transform_11, window_bounds = array<i64: 1, 128>}, {transform_indices = @transform_12, window_bounds = array<i64: 256, 128>}]} {
    %c256_i32 = arith.constant 256 : i32
    %0 = arith.muli %arg1, %c256_i32 : i32
    %1 = tpu.assume_multiple %0, 256 : i32
    %2 = arith.index_cast %1 : i32 to index
    %c0 = arith.constant 0 : index
    %3 = vector.load %arg4[%2, %c0] : memref<256x1xf32, #tpu.memory_space<vmem>>, vector<256x1xf32>
    %c0_i32 = arith.constant 0 : i32
    %4 = arith.cmpi eq, %arg0, %c0_i32 : i32
    %c0_i32_0 = arith.constant 0 : i32
    %5 = arith.cmpi eq, %arg1, %c0_i32_0 : i32
    %6 = arith.andi %4, %5 : i1
    %7 = arith.extui %6 : i1 to i32
    %c0_i32_1 = arith.constant 0 : i32
    %8 = arith.cmpi ne, %7, %c0_i32_1 : i32
    scf.if %8 {
      %c0_5 = arith.constant 0 : index
      %c0_6 = arith.constant 0 : index
      %15 = vector.load %arg4[%c0_5, %c0_6] : memref<256x1xf32, #tpu.memory_space<vmem>>, vector<256x1xf32>
      %c0_7 = arith.constant 0 : index
      %c0_8 = arith.constant 0 : index
      %16 = vector.load %arg3[%c0_7, %c0_8] : memref<256x128xf32, #tpu.memory_space<vmem>>, vector<256x128xf32>
      %17 = vector.broadcast %15 : vector<256x1xf32> to vector<256x128xf32>
      %18 = arith.mulf %17, %16 : vector<256x128xf32>
      %19 = arith.truncf %18 : vector<256x128xf32> to vector<256x128xbf16>
      %c0_9 = arith.constant 0 : index
      %c0_10 = arith.constant 0 : index
      %20 = vector.load %arg18[%c0_9, %c0_10] : memref<256x128xbf16, #tpu.memory_space<vmem>>, vector<256x128xbf16>
      tpu.vector_store %arg18[%c0_9, %c0_10], %19 {strides = array<i32>} : memref<256x128xbf16, #tpu.memory_space<vmem>>, vector<256x128xbf16>,
    } else {
    }
    %c0_i32_2 = arith.constant 0 : i32
    %9 = arith.cmpi eq, %arg0, %c0_i32_2 : i32
    %10 = arith.extui %9 : i1 to i32
    %c0_i32_3 = arith.constant 0 : i32
    %11 = arith.cmpi ne, %10, %c0_i32_3 : i32
    scf.if %11 {
      %15 = arith.index_cast %1 : i32 to index
      %c0_5 = arith.constant 0 : index
      %16 = vector.load %arg2[%15, %c0_5] : memref<256x256xbf16, #tpu.memory_space<vmem>>, vector<256x256xbf16>
      %c0_6 = arith.constant 0 : index
      %c0_7 = arith.constant 0 : index
      %17 = vector.load %arg18[%c0_6, %c0_7] : memref<256x128xbf16, #tpu.memory_space<vmem>>, vector<256x128xbf16>
      %cst = arith.constant dense<0.000000e+00> : vector<256x128xf32>
      %18 = tpu.matmul %16, %17, %cst {dimension_numbers = #tpu.dot_dimension_numbers<[1], [0], [0], [1], [0, 0, 1, 1], [], []>} : vector<256x256xbf16>, vector<256x128xbf16>, vector<256x128xf32> -> vector<256x128xf32>
      %cst_8 = arith.constant -1.000000e+00 : f32
      %19 = vector.broadcast %cst_8 : f32 to vector<256x1xf32>
      %20 = arith.mulf %19, %3 : vector<256x1xf32>
      %21 = vector.broadcast %20 : vector<256x1xf32> to vector<256x128xf32>
      %22 = arith.mulf %21, %18 : vector<256x128xf32>
      %23 = arith.index_cast %1 : i32 to index
      %c0_9 = arith.constant 0 : index
      %24 = vector.load %arg15[%23, %c0_9] : memref<256x128xf32, #tpu.memory_space<vmem>>, vector<256x128xf32>
      tpu.vector_store %arg15[%23, %c0_9], %22 {strides = array<i32>} : memref<256x128xf32, #tpu.memory_space<vmem>>, vector<256x128xf32>,
      %25 = arith.index_cast %1 : i32 to index
      %c0_10 = arith.constant 0 : index
      %26 = vector.load %arg3[%25, %c0_10] : memref<256x128xf32, #tpu.memory_space<vmem>>, vector<256x128xf32>
      %c0_11 = arith.constant 0 : index
      %c0_12 = arith.constant 0 : index
      %27 = vector.load %arg5[%c0_11, %c0_12] : memref<128x128xf32, #tpu.memory_space<vmem>>, vector<128x128xf32>
      %cst_13 = arith.constant dense<0.000000e+00> : vector<256x128xf32>
      %28 = tpu.matmul %26, %27, %cst_13 {dimension_numbers = #tpu.dot_dimension_numbers<[1], [0], [0], [1], [0, 0, 1, 1], [], []>} : vector<256x128xf32>, vector<128x128xf32>, vector<256x128xf32> -> vector<256x128xf32>
      %29 = arith.index_cast %1 : i32 to index
      %c0_14 = arith.constant 0 : index
      %30 = vector.load %arg15[%29, %c0_14] : memref<256x128xf32, #tpu.memory_space<vmem>>, vector<256x128xf32>
      %c0_15 = arith.constant 0 : index
      %c0_16 = arith.constant 0 : index
      %31 = vector.load %arg6[%c0_15, %c0_16] : memref<128x128xf32, #tpu.memory_space<vmem>>, vector<128x128xf32>
      %cst_17 = arith.constant dense<0.000000e+00> : vector<256x128xf32>
      %32 = tpu.matmul %30, %31, %cst_17 {dimension_numbers = #tpu.dot_dimension_numbers<[1], [0], [0], [1], [0, 0, 1, 1], [], []>} : vector<256x128xf32>, vector<128x128xf32>, vector<256x128xf32> -> vector<256x128xf32>
      %33 = arith.addf %28, %32 : vector<256x128xf32>
      %c0_18 = arith.constant 0 : index
      %c0_19 = arith.constant 0 : index
      %34 = vector.load %arg7[%c0_18, %c0_19] : memref<1x128xf32, #tpu.memory_space<vmem>>, vector<1x128xf32>
      %35 = vector.broadcast %34 : vector<1x128xf32> to vector<256x128xf32>
      %36 = arith.addf %33, %35 : vector<256x128xf32>
      %cst_20 = arith.constant 0.000000e+00 : f32
      %37 = vector.broadcast %cst_20 : f32 to vector<256x128xf32>
      %38 = arith.maximumf %36, %37 : vector<256x128xf32>
      %39 = arith.index_cast %1 : i32 to index
      %c0_21 = arith.constant 0 : index
      %40 = vector.load %arg16[%39, %c0_21] : memref<256x256xf32, #tpu.memory_space<vmem>>, vector<256x128xf32>
      tpu.vector_store %arg16[%39, %c0_21], %38 {strides = array<i32>} : memref<256x256xf32, #tpu.memory_space<vmem>>, vector<256x128xf32>,
      %41 = vector.broadcast %3 : vector<256x1xf32> to vector<256x128xf32>
      %42 = arith.mulf %41, %38 : vector<256x128xf32>
      %43 = arith.truncf %42 : vector<256x128xf32> to vector<256x128xbf16>
      %44 = arith.index_cast %1 : i32 to index
      %c0_22 = arith.constant 0 : index
      %45 = vector.load %arg19[%44, %c0_22] : memref<256x128xbf16, #tpu.memory_space<vmem>>, vector<256x128xbf16>
      tpu.vector_store %arg19[%44, %c0_22], %43 {strides = array<i32>} : memref<256x128xbf16, #tpu.memory_space<vmem>>, vector<256x128xbf16>,
    } else {
    }
    %c1_i32 = arith.constant 1 : i32
    %12 = arith.cmpi eq, %arg0, %c1_i32 : i32
    %13 = arith.extui %12 : i1 to i32
    %c0_i32_4 = arith.constant 0 : i32
    %14 = arith.cmpi ne, %13, %c0_i32_4 : i32
    scf.if %14 {
      %15 = arith.index_cast %1 : i32 to index
      %c0_5 = arith.constant 0 : index
      %16 = vector.load %arg2[%15, %c0_5] : memref<256x256xbf16, #tpu.memory_space<vmem>>, vector<256x256xbf16>
      %c0_6 = arith.constant 0 : index
      %c0_7 = arith.constant 0 : index
      %17 = vector.load %arg19[%c0_6, %c0_7] : memref<256x128xbf16, #tpu.memory_space<vmem>>, vector<256x128xbf16>
      %cst = arith.constant dense<0.000000e+00> : vector<256x128xf32>
      %18 = tpu.matmul %16, %17, %cst {dimension_numbers = #tpu.dot_dimension_numbers<[1], [0], [0], [1], [0, 0, 1, 1], [], []>} : vector<256x256xbf16>, vector<256x128xbf16>, vector<256x128xf32> -> vector<256x128xf32>
      %cst_8 = arith.constant -1.000000e+00 : f32
      %19 = vector.broadcast %cst_8 : f32 to vector<256x1xf32>
      %20 = arith.mulf %19, %3 : vector<256x1xf32>
      %21 = vector.broadcast %20 : vector<256x1xf32> to vector<256x128xf32>
      %22 = arith.mulf %21, %18 : vector<256x128xf32>
      %23 = arith.index_cast %1 : i32 to index
      %c128 = arith.constant 128 : index
      %24 = vector.load %arg16[%23, %c128] : memref<256x256xf32, #tpu.memory_space<vmem>>, vector<256x128xf32>
      tpu.vector_store %arg16[%23, %c128], %22 {strides = array<i32>} : memref<256x256xf32, #tpu.memory_space<vmem>>, vector<256x128xf32>,
      %25 = arith.index_cast %1 : i32 to index
      %c0_9 = arith.constant 0 : index
      %26 = vector.load %arg16[%25, %c0_9] : memref<256x256xf32, #tpu.memory_space<vmem>>, vector<256x256xf32>
      %c0_10 = arith.constant 0 : index
      %c0_11 = arith.constant 0 : index
      %27 = vector.load %arg8[%c0_10, %c0_11] : memref<256x128xf32, #tpu.memory_space<vmem>>, vector<256x128xf32>
      %cst_12 = arith.constant dense<0.000000e+00> : vector<256x128xf32>
      %28 = tpu.matmul %26, %27, %cst_12 {dimension_numbers = #tpu.dot_dimension_numbers<[1], [0], [0], [1], [0, 0, 1, 1], [], []>} : vector<256x256xf32>, vector<256x128xf32>, vector<256x128xf32> -> vector<256x128xf32>
      %c0_13 = arith.constant 0 : index
      %c0_14 = arith.constant 0 : index
      %29 = vector.load %arg9[%c0_13, %c0_14] : memref<1x128xf32, #tpu.memory_space<vmem>>, vector<1x128xf32>
      %30 = vector.broadcast %29 : vector<1x128xf32> to vector<256x128xf32>
      %31 = arith.addf %28, %30 : vector<256x128xf32>
      %cst_15 = arith.constant 0.000000e+00 : f32
      %32 = vector.broadcast %cst_15 : f32 to vector<256x128xf32>
      %33 = arith.maximumf %31, %32 : vector<256x128xf32>
      %34 = arith.index_cast %1 : i32 to index
      %c0_16 = arith.constant 0 : index
      %35 = vector.load %arg17[%34, %c0_16] : memref<256x128xf32, #tpu.memory_space<vmem>>, vector<256x128xf32>
      tpu.vector_store %arg17[%34, %c0_16], %33 {strides = array<i32>} : memref<256x128xf32, #tpu.memory_space<vmem>>, vector<256x128xf32>,
      %c0_17 = arith.constant 0 : index
      %c0_18 = arith.constant 0 : index
      %36 = vector.load %arg10[%c0_17, %c0_18] : memref<128x128xf32, #tpu.memory_space<vmem>>, vector<128x128xf32>
      %cst_19 = arith.constant dense<0.000000e+00> : vector<256x128xf32>
      %37 = tpu.matmul %33, %36, %cst_19 {dimension_numbers = #tpu.dot_dimension_numbers<[1], [0], [0], [1], [0, 0, 1, 1], [], []>} : vector<256x128xf32>, vector<128x128xf32>, vector<256x128xf32> -> vector<256x128xf32>
      %38 = arith.index_cast %1 : i32 to index
      %c0_20 = arith.constant 0 : index
      %39 = vector.load %arg3[%38, %c0_20] : memref<256x128xf32, #tpu.memory_space<vmem>>, vector<256x128xf32>
      %c0_21 = arith.constant 0 : index
      %c0_22 = arith.constant 0 : index
      %40 = vector.load %arg11[%c0_21, %c0_22] : memref<128x128xf32, #tpu.memory_space<vmem>>, vector<128x128xf32>
      %cst_23 = arith.constant dense<0.000000e+00> : vector<256x128xf32>
      %41 = tpu.matmul %39, %40, %cst_23 {dimension_numbers = #tpu.dot_dimension_numbers<[1], [0], [0], [1], [0, 0, 1, 1], [], []>} : vector<256x128xf32>, vector<128x128xf32>, vector<256x128xf32> -> vector<256x128xf32>
      %42 = arith.addf %37, %41 : vector<256x128xf32>
      %43 = arith.index_cast %1 : i32 to index
      %c0_24 = arith.constant 0 : index
      %44 = vector.load %arg15[%43, %c0_24] : memref<256x128xf32, #tpu.memory_space<vmem>>, vector<256x128xf32>
      %c0_25 = arith.constant 0 : index
      %c0_26 = arith.constant 0 : index
      %45 = vector.load %arg12[%c0_25, %c0_26] : memref<128x128xf32, #tpu.memory_space<vmem>>, vector<128x128xf32>
      %cst_27 = arith.constant dense<0.000000e+00> : vector<256x128xf32>
      %46 = tpu.matmul %44, %45, %cst_27 {dimension_numbers = #tpu.dot_dimension_numbers<[1], [0], [0], [1], [0, 0, 1, 1], [], []>} : vector<256x128xf32>, vector<128x128xf32>, vector<256x128xf32> -> vector<256x128xf32>
      %47 = arith.addf %42, %46 : vector<256x128xf32>
      %c0_28 = arith.constant 0 : index
      %c0_29 = arith.constant 0 : index
      %48 = vector.load %arg13[%c0_28, %c0_29] : memref<1x128xf32, #tpu.memory_space<vmem>>, vector<1x128xf32>
      %49 = vector.broadcast %48 : vector<1x128xf32> to vector<256x128xf32>
      %50 = arith.addf %47, %49 : vector<256x128xf32>
      %c0_30 = arith.constant 0 : index
      %c0_31 = arith.constant 0 : index
      %51 = vector.load %arg14[%c0_30, %c0_31] : memref<256x128xf32, #tpu.memory_space<vmem>>, vector<256x128xf32>
      tpu.vector_store %arg14[%c0_30, %c0_31], %50 {strides = array<i32>} : memref<256x128xf32, #tpu.memory_space<vmem>>, vector<256x128xf32>,
    } else {
    }
    return
  }
  func.func @transform_0(%arg0: i32, %arg1: i32) -> (i32, i32) {
    %c0_i32 = arith.constant 0 : i32
    %c0_i32_0 = arith.constant 0 : i32
    %c0_i32_1 = arith.constant 0 : i32
    return %c0_i32, %c0_i32_0 : i32, i32
  }
  func.func @transform_1(%arg0: i32, %arg1: i32) -> (i32, i32) {
    %c0_i32 = arith.constant 0 : i32
    %c0_i32_0 = arith.constant 0 : i32
    %c0_i32_1 = arith.constant 0 : i32
    return %c0_i32, %c0_i32_0 : i32, i32
  }
  func.func @transform_2(%arg0: i32, %arg1: i32) -> (i32, i32) {
    %c0_i32 = arith.constant 0 : i32
    %c0_i32_0 = arith.constant 0 : i32
    %c0_i32_1 = arith.constant 0 : i32
    return %c0_i32, %c0_i32_0 : i32, i32
  }
  func.func @transform_3(%arg0: i32, %arg1: i32) -> (i32, i32) {
    %c0_i32 = arith.constant 0 : i32
    %c0_i32_0 = arith.constant 0 : i32
    %c0_i32_1 = arith.constant 0 : i32
    return %c0_i32, %c0_i32_0 : i32, i32
  }
  func.func @transform_4(%arg0: i32, %arg1: i32) -> (i32, i32) {
    %c0_i32 = arith.constant 0 : i32
    %c0_i32_0 = arith.constant 0 : i32
    %c0_i32_1 = arith.constant 0 : i32
    return %c0_i32, %c0_i32_0 : i32, i32
  }
  func.func @transform_5(%arg0: i32, %arg1: i32) -> (i32, i32) {
    %c0_i32 = arith.constant 0 : i32
    %c0_i32_0 = arith.constant 0 : i32
    %c0_i32_1 = arith.constant 0 : i32
    return %c0_i32, %c0_i32_0 : i32, i32
  }
  func.func @transform_6(%arg0: i32, %arg1: i32) -> (i32, i32) {
    %c0_i32 = arith.constant 0 : i32
    %c0_i32_0 = arith.constant 0 : i32
    %c0_i32_1 = arith.constant 0 : i32
    return %c0_i32, %c0_i32_0 : i32, i32
  }
  func.func @transform_7(%arg0: i32, %arg1: i32) -> (i32, i32) {
    %c0_i32 = arith.constant 0 : i32
    %c0_i32_0 = arith.constant 0 : i32
    %c0_i32_1 = arith.constant 0 : i32
    return %c0_i32, %c0_i32_0 : i32, i32
  }
  func.func @transform_8(%arg0: i32, %arg1: i32) -> (i32, i32) {
    %c0_i32 = arith.constant 0 : i32
    %c0_i32_0 = arith.constant 0 : i32
    %c0_i32_1 = arith.constant 0 : i32
    return %c0_i32, %c0_i32_0 : i32, i32
  }
  func.func @transform_9(%arg0: i32, %arg1: i32) -> (i32, i32) {
    %c0_i32 = arith.constant 0 : i32
    %c0_i32_0 = arith.constant 0 : i32
    %c0_i32_1 = arith.constant 0 : i32
    return %c0_i32, %c0_i32_0 : i32, i32
  }
  func.func @transform_10(%arg0: i32, %arg1: i32) -> (i32, i32) {
    %c0_i32 = arith.constant 0 : i32
    %c0_i32_0 = arith.constant 0 : i32
    %c0_i32_1 = arith.constant 0 : i32
    return %c0_i32, %c0_i32_0 : i32, i32
  }
  func.func @transform_11(%arg0: i32, %arg1: i32) -> (i32, i32) {
    %c0_i32 = arith.constant 0 : i32
    %c0_i32_0 = arith.constant 0 : i32
    %c0_i32_1 = arith.constant 0 : i32
    return %c0_i32, %c0_i32_0 : i32, i32
  }
  func.func @transform_12(%arg0: i32, %arg1: i32) -> (i32, i32) {
    %c1_i32 = arith.constant 1 : i32
    %0 = arith.cmpi eq, %arg0, %c1_i32 : i32
    %c0_i32 = arith.constant 0 : i32
    %1 = arith.select %0, %arg1, %c0_i32 : i32
    %c0_i32_0 = arith.constant 0 : i32
    %c0_i32_1 = arith.constant 0 : i32
    return %1, %c0_i32_0 : i32, i32
  }
}

</mosaic_0001>

<bundles_post_ra>
// kernel: kipfnetd2_forward.1
= control target key start
LH: loop header
LB: loop body
LE: loop exit
PB: predicated region body
PF: predicated region fallthrough
CT: control target
= control target key end

     0   :  { %s4858_s21 = smov 0   ;;  %s4860_s22 = smov 0   ;;  %s6812_s0 = inlined_call_operand.vmem [shape: bf16[256,256], index: 0, kind: input, shape index: {}]   ;;  %s6813_s1 = inlined_call_operand.vmem [shape: f32[256,128], index: 1, kind: input, shape index: {}]   ;;  %s6814_s2 = inlined_call_operand.vmem [shape: f32[256,1], index: 2, kind: input, shape index: {}]   ;;  %s6815_s3 = inlined_call_operand.vmem [shape: f32[128,128], index: 3, kind: input, shape index: {}]   ;;  %s6816_s4 = inlined_call_operand.vmem [shape: f32[128,128], index: 4, kind: input, shape index: {}]   ;;  %s6817_s5 = inlined_call_operand.vmem [shape: f32[1,128], index: 5, kind: input, shape index: {}]   ;;  %s6818_s6 = inlined_call_operand.vmem [shape: f32[256,128], index: 6, kind: input, shape index: {}]   ;;  %s6819_s7 = inlined_call_operand.vmem [shape: f32[1,128], index: 7, kind: input, shape index: {}]   ;;  %s6820_s8 = inlined_call_operand.vmem [shape: f32[128,128], index: 8, kind: input, shape index: {}]   ;;  %s6821_s9 = inlined_call_operand.vmem [shape: f32[128,128], index: 9, kind: input, shape index: {}]   ;;  %s6822_s10 = inlined_call_operand.vmem [shape: f32[128,128], index: 10, kind: input, shape index: {}]   ;;  %s6823_s11 = inlined_call_operand.vmem [shape: f32[1,128], index: 11, kind: input, shape index: {}]   ;;  %s6824_s12 = inlined_call_operand.vmem [shape: f32[256,128], index: 12, kind: output, shape index: {}]  }
   0x1   :  { %s4862_s23 = smov 0  }
   0x2 LB: > { %s34_s24 = sadd.s32 1, %s4784_s22  ;;  %p4016_p0 = scmp.ge.s32.totalorder %s4788_s23, 1  ;;  %s4788_s23 = sphi %s4862_s23, %s22_s23   ;;  %s4784_s22 = sphi %s4860_s22, %s6832_s22   ;;  %s4780_s21 = sphi %s4858_s21, %s6831_s21  }
   0x3   : > { %p36_p1 = scmp.ge.s32.totalorder %s34_s24, 2  ;;  %p368_p2 = scmp.lt.s32.totalorder %s4788_s23, 3 }
   0x5   : > { %s6834_s24 = smov (%p36_p1, %s34_s24), 0  ;;  %p369_p3 = pnand %p4016_p0, %p368_p2 }
   0x7   : > { %372 = sbr.rel (%p369_p3) target bundleno = 1538 (0x602), region = 68 }
   0xc   : > { %v4881_v0 = vld [vmem:[%s6814_s2] sm:$0xff]  ;;  %v4886_v1 = vld [vmem:[%s6814_s2 + $0x8] sm:$0xff]  ;;  %v4891_v2 = vld [vmem:[%s6814_s2 + $0x10] sm:$0xff]  ;;  %p451_p4 = scmp.eq.s32.totalorder %s4780_s21, 0 }
   0xd   : > { %v4897_v3 = vld [vmem:[%s6814_s2 + $0x18] sm:$0xff]  ;;  %v4902_v4 = vld [vmem:[%s6814_s2 + $0x20] sm:$0xff]  ;;  %v4907_v5 = vld [vmem:[%s6814_s2 + $0x28] sm:$0xff]  ;;  %v4790_v35 = vmov (%p451_p4), 0  }
   0xe   : > { %v4912_v6 = vld [vmem:[%s6814_s2 + $0x30] sm:$0xff]  ;;  %v4917_v7 = vld [vmem:[%s6814_s2 + $0x38] sm:$0xff]  ;;  %v4922_v8 = vld [vmem:[%s6814_s2 + $0x40] sm:$0xff]  ;;  %4756 = vset.pattern.permute.xlu2 (%p451_p4), %v4790_v35  ;;  %4755 = vset.pattern.permute.xlu1 (%p451_p4), %v4790_v35 }
   0xf   : > { %v4927_v9 = vld [vmem:[%s6814_s2 + $0x48] sm:$0xff]  ;;  %v4932_v10 = vld [vmem:[%s6814_s2 + $0x50] sm:$0xff]  ;;  %v4937_v11 = vld [vmem:[%s6814_s2 + $0x58] sm:$0xff]  ;;  %4754 = vset.pattern.permute.xlu0 (%p451_p4), %v4790_v35 }
  0x10   : > { %v4942_v12 = vld [vmem:[%s6814_s2 + $0x60] sm:$0xff]  ;;  %v4947_v13 = vld [vmem:[%s6814_s2 + $0x68] sm:$0xff]  ;;  %v4952_v14 = vld [vmem:[%s6814_s2 + $0x70] sm:$0xff] }
  0x11   : > { %v4957_v15 = vld [vmem:[%s6814_s2 + $0x78] sm:$0xff]  ;;  %v4962_v16 = vld [vmem:[%s6814_s2 + $0x80] sm:$0xff]  ;;  %v4967_v17 = vld [vmem:[%s6814_s2 + $0x88] sm:$0xff] }
  0x12   : > { %v4972_v18 = vld [vmem:[%s6814_s2 + $0x90] sm:$0xff]  ;;  %v4977_v19 = vld [vmem:[%s6814_s2 + $0x98] sm:$0xff]  ;;  %v4982_v20 = vld [vmem:[%s6814_s2 + $0xa0] sm:$0xff]  ;;  %456 = sbr.rel (!%p451_p4) target bundleno = 224 (0xe0), region = 72 }
  0x13   : > { %v4987_v21 = vld [vmem:[%s6814_s2 + $0xa8] sm:$0xff]  ;;  %v4992_v22 = vld [vmem:[%s6814_s2 + $0xb0] sm:$0xff]  ;;  %v4997_v23 = vld [vmem:[%s6814_s2 + $0xb8] sm:$0xff] }
  0x14   : > { %v5002_v24 = vld [vmem:[%s6814_s2 + $0xc0] sm:$0xff]  ;;  %v5007_v25 = vld [vmem:[%s6814_s2 + $0xc8] sm:$0xff]  ;;  %v5012_v26 = vld [vmem:[%s6814_s2 + $0xd0] sm:$0xff] }
  0x15   : > { %6827 = vst [vmem:[#allocation7_spill] sm:$0xff] %v5012_v26  ;;  %v5017_v27 = vld [vmem:[%s6814_s2 + $0xd8] sm:$0xff]  ;;  %v5022_v28 = vld [vmem:[%s6814_s2 + $0xe0] sm:$0xff]  ;;  %v5027_v29 = vld [vmem:[%s6814_s2 + $0xe8] sm:$0xff] }
  0x16   : > { %6828 = vst [vmem:[#allocation8_spill] sm:$0xff] %v5027_v29  ;;  %v5032_v30 = vld [vmem:[%s6814_s2 + $0xf0] sm:$0xff]  ;;  %v5037_v31 = vld [vmem:[%s6814_s2 + $0xf8] sm:$0xff]  ;;  %v461_v32 = vld [vmem:[%s6814_s2 + $0x20] sm:$0xff] (%p451_p4) }
  0x17   : > { %v459_v33 = vld [vmem:[%s6814_s2 + $0x10] sm:$0xff]  ;;  %v457_v34 = vld [vmem:[%s6814_s2] sm:$0xff]  ;;  %543 = vperm.xlu2 %4756, %v461_v32   ;;  %v462_v36 = vld [vmem:[%s6814_s2 + $0x28] sm:$0xff] }
  0x18   : > { %533 = vperm.xlu1 %4755, %v459_v33   ;;  %523 = vperm.xlu0 %4754, %v457_v34   ;;  %v460_v37 = vld [vmem:[%s6814_s2 + $0x18] sm:$0xff]  ;;  %v458_v38 = vld [vmem:[%s6814_s2 + $0x8] sm:$0xff]  ;;  %v465_v39 = vld [vmem:[%s6814_s2 + $0x40] sm:$0xff] }
  0x19   : > { %v464_v40 = vld [vmem:[%s6814_s2 + $0x38] sm:$0xff]  ;;  %v463_v41 = vld [vmem:[%s6814_s2 + $0x30] sm:$0xff]  ;;  %v466_v44 = vld [vmem:[%s6814_s2 + $0x48] sm:$0xff] }
  0x1a   : > { %v468_v42 = vld [vmem:[%s6814_s2 + $0x58] sm:$0xff]  ;;  %v467_v43 = vld [vmem:[%s6814_s2 + $0x50] sm:$0xff]  ;;  %v470_v46 = vld [vmem:[%s6814_s2 + $0x68] sm:$0xff] }
  0x1b   : > { %v471_v45 = vld [vmem:[%s6814_s2 + $0x70] sm:$0xff]  ;;  %v469_v47 = vld [vmem:[%s6814_s2 + $0x60] sm:$0xff]  ;;  %v474_v48 = vld [vmem:[%s6814_s2 + $0x88] sm:$0xff] }
  0x1c   : > { %v473_v49 = vld [vmem:[%s6814_s2 + $0x80] sm:$0xff]  ;;  %v472_v50 = vld [vmem:[%s6814_s2 + $0x78] sm:$0xff]  ;;  %v475_v53 = vld [vmem:[%s6814_s2 + $0x90] sm:$0xff] }
  0x1d   : > { %v477_v51 = vld [vmem:[%s6814_s2 + $0xa0] sm:$0xff]  ;;  %v476_v52 = vld [vmem:[%s6814_s2 + $0x98] sm:$0xff]  ;;  %v479_v55 = vld [vmem:[%s6814_s2 + $0xb0] sm:$0xff] }
  0x1e   : > { %v480_v54 = vld [vmem:[%s6814_s2 + $0xb8] sm:$0xff]  ;;  %v478_v56 = vld [vmem:[%s6814_s2 + $0xa8] sm:$0xff]  ;;  %v483_v57 = vld [vmem:[%s6814_s2 + $0xd0] sm:$0xff] }
  0x1f   : > { %548 = vperm.xlu2 %4756, %v462_v36   ;;  %v482_v58 = vld [vmem:[%s6814_s2 + $0xc8] sm:$0xff]  ;;  %v481_v59 = vld [vmem:[%s6814_s2 + $0xc0] sm:$0xff]  ;;  %v484_v62 = vld [vmem:[%s6814_s2 + $0xd8] sm:$0xff] }
  0x20   : > { %538 = vperm.xlu1 %4755, %v460_v37   ;;  %528 = vperm.xlu0 %4754, %v458_v38   ;;  %v486_v60 = vld [vmem:[%s6814_s2 + $0xe8] sm:$0xff]  ;;  %v485_v61 = vld [vmem:[%s6814_s2 + $0xe0] sm:$0xff]  ;;  %v488_v63 = vld [vmem:[%s6814_s2 + $0xf8] sm:$0xff] }
  0x21   : > { %v487_v32 = vld [vmem:[%s6814_s2 + $0xf0] sm:$0xff]  ;;  %v493_v34 = vld [vmem:[%s6813_s1 + $0x20] sm:$0xff]  ;;  %v494_v35 = vld [vmem:[%s6813_s1 + $0x28] sm:$0xff] }
  0x27   : > { %563 = vperm.xlu2 %4756, %v465_v39  }
  0x28   : > { %558 = vperm.xlu1 %4755, %v464_v40   ;;  %553 = vperm.xlu0 %4754, %v463_v41  }
  0x2f   : > { %578 = vperm.xlu2 %4756, %v468_v42  }
  0x30   : > { %573 = vperm.xlu1 %4755, %v467_v43   ;;  %568 = vperm.xlu0 %4754, %v466_v44   ;;  %v491_v43 = vld [vmem:[%s6813_s1 + $0x10] sm:$0xff]  ;;  %v489_v44 = vld [vmem:[%s6813_s1] sm:$0xff] }
  0x37   : > { %593 = vperm.xlu2 %4756, %v471_v45   ;;  %v492_v45 = vld [vmem:[%s6813_s1 + $0x18] sm:$0xff] }
  0x38   : > { %588 = vperm.xlu1 %4755, %v470_v46   ;;  %583 = vperm.xlu0 %4754, %v469_v47   ;;  %v490_v46 = vld [vmem:[%s6813_s1 + $0x8] sm:$0xff] }
  0x3f   : > { %608 = vperm.xlu2 %4756, %v474_v48  }
  0x40   : > { %603 = vperm.xlu1 %4755, %v473_v49   ;;  %598 = vperm.xlu0 %4754, %v472_v50  }
  0x47   : > { %623 = vperm.xlu2 %4756, %v477_v51  }
  0x48   : > { %618 = vperm.xlu1 %4755, %v476_v52   ;;  %613 = vperm.xlu0 %4754, %v475_v53  }
  0x4f   : > { %638 = vperm.xlu2 %4756, %v480_v54  }
  0x50   : > { %633 = vperm.xlu1 %4755, %v479_v55   ;;  %628 = vperm.xlu0 %4754, %v478_v56   ;;  %v496_v56 = vld [vmem:[%s6813_s1 + $0x38] sm:$0xff] }
  0x57   : > { %653 = vperm.xlu2 %4756, %v483_v57   ;;  %v495_v57 = vld [vmem:[%s6813_s1 + $0x30] sm:$0xff] }
  0x58   : > { %648 = vperm.xlu1 %4755, %v482_v58   ;;  %643 = vperm.xlu0 %4754, %v481_v59  }
  0x5f   : > { %668 = vperm.xlu2 %4756, %v486_v60  }
  0x60   : > { %663 = vperm.xlu1 %4755, %v485_v61   ;;  %658 = vperm.xlu0 %4754, %v484_v62  }
  0x68   : > { %678 = vperm.xlu1 %4755, %v488_v63   ;;  %673 = vperm.xlu0 %4754, %v487_v32   ;;  %v497_v32 = vld [vmem:[%s6813_s1 + $0x40] sm:$0xff] }
  0x71   : > { %v544_v33 = vpop.permute.xlu2 %543 }
  0x72   : > { %v685_v36 = vmul.f32 %v544_v33, %v493_v34  ;;  %v500_v33 = vld [vmem:[%s6813_s1 + $0x58] sm:$0xff]  ;;  %v499_v34 = vld [vmem:[%s6813_s1 + $0x50] sm:$0xff] }
  0x79   : > { %v549_v37 = vpop.permute.xlu2 %548 }
  0x7a   : > { %v686_v38 = vmul.f32 %v549_v37, %v494_v35  ;;  %v498_v35 = vld [vmem:[%s6813_s1 + $0x48] sm:$0xff] }
  0x7c   : > { %v4518_v39 = vpack.c.bf16 %v686_v38, %v685_v36 }
  0x7e   : > { %4666 = vst [vmem:[#allocation5 + $0x70] sm:$0xff] %v4518_v39  }
  0x81   : > { %v564_v40 = vpop.permute.xlu2 %563 }
  0x82   : > { %v689_v38 = vmul.f32 %v564_v40, %v497_v32 }
  0x89   : > { %v579_v49 = vpop.permute.xlu2 %578 }
  0x8a   : > { %v534_v41 = vpop.permute.xlu1 %533  ;;  %v524_v42 = vpop.permute.xlu0 %523  ;;  %v692_v39 = vmul.f32 %v579_v49, %v500_v33 }
  0x8b   : > { %v683_v50 = vmul.f32 %v534_v41, %v491_v43  ;;  %v681_v51 = vmul.f32 %v524_v42, %v489_v44 }
  0x91   : > { %v594_v62 = vpop.permute.xlu2 %593 }
  0x92   : > { %v539_v47 = vpop.permute.xlu1 %538  ;;  %v529_v48 = vpop.permute.xlu0 %528 }
  0x93   : > { %v684_v52 = vmul.f32 %v539_v47, %v492_v45  ;;  %v682_v53 = vmul.f32 %v529_v48, %v490_v46  ;;  %v502_v46 = vld [vmem:[%s6813_s1 + $0x68] sm:$0xff]  ;;  %v501_v47 = vld [vmem:[%s6813_s1 + $0x60] sm:$0xff] }
  0x95   : > { %v4513_v54 = vpack.c.bf16 %v684_v52, %v683_v50  ;;  %v4508_v55 = vpack.c.bf16 %v682_v53, %v681_v51  ;;  %v503_v52 = vld [vmem:[%s6813_s1 + $0x70] sm:$0xff]  ;;  %v506_v53 = vld [vmem:[%s6813_s1 + $0x88] sm:$0xff] }
  0x97   : > { %4665 = vst [vmem:[#allocation5 + $0x20] sm:$0xff] %v4513_v54   ;;  %v505_v54 = vld [vmem:[%s6813_s1 + $0x80] sm:$0xff] }
  0x98   : > { %4509 = vst [vmem:[#allocation5 + $0x48] sm:$0xff] %v4508_v55   ;;  %v504_v55 = vld [vmem:[%s6813_s1 + $0x78] sm:$0xff] }
  0x99   : > { %v609_v45 = vpop.permute.xlu2 %608 }
  0x9a   : > { %v559_v58 = vpop.permute.xlu1 %558  ;;  %v554_v59 = vpop.permute.xlu0 %553 }
  0x9b   : > { %v688_v60 = vmul.f32 %v559_v58, %v496_v56  ;;  %v687_v61 = vmul.f32 %v554_v59, %v495_v57  ;;  %v695_v59 = vmul.f32 %v594_v62, %v503_v52 }
  0x9d   : > { %v4523_v63 = vpack.c.bf16 %v688_v60, %v687_v61  ;;  %v698_v60 = vmul.f32 %v609_v45, %v506_v53  ;;  %v510_v45 = vld [vmem:[%s6813_s1 + $0xa8] sm:$0xff] }
  0x9f   : > { %4667 = vst [vmem:[#allocation5 + $0x8] sm:$0xff] %v4523_v63  }
  0xa1   : > { %v624_v56 = vpop.permute.xlu2 %623 }
  0xa2   : > { %v574_v36 = vpop.permute.xlu1 %573  ;;  %v569_v37 = vpop.permute.xlu0 %568 }
  0xa3   : > { %v691_v41 = vmul.f32 %v574_v36, %v499_v34  ;;  %v690_v42 = vmul.f32 %v569_v37, %v498_v35  ;;  %v508_v34 = vld [vmem:[%s6813_s1 + $0x98] sm:$0xff]  ;;  %v507_v35 = vld [vmem:[%s6813_s1 + $0x90] sm:$0xff] }
  0xa5   : > { %v4533_v43 = vpack.c.bf16 %v692_v39, %v691_v41  ;;  %v4528_v44 = vpack.c.bf16 %v690_v42, %v689_v38  ;;  %v509_v42 = vld [vmem:[%s6813_s1 + $0xa0] sm:$0xff] }
  0xa7   : > { %4669 = vst [vmem:[#allocation5] sm:$0xff] %v4533_v43   ;;  %v512_v43 = vld [vmem:[%s6813_s1 + $0xb8] sm:$0xff] }
  0xa8   : > { %4668 = vst [vmem:[#allocation5 + $0x30] sm:$0xff] %v4528_v44   ;;  %v511_v44 = vld [vmem:[%s6813_s1 + $0xb0] sm:$0xff] }
  0xa9   : > { %v639_v62 = vpop.permute.xlu2 %638 }
  0xaa   : > { %v589_v48 = vpop.permute.xlu1 %588  ;;  %v584_v50 = vpop.permute.xlu0 %583 }
  0xab   : > { %v694_v51 = vmul.f32 %v589_v48, %v502_v46  ;;  %v693_v40 = vmul.f32 %v584_v50, %v501_v47  ;;  %v701_v48 = vmul.f32 %v624_v56, %v509_v42  ;;  %v704_v50 = vmul.f32 %v639_v62, %v512_v43  ;;  %v520_v43 = vld [vmem:[%s6813_s1 + $0xf8] sm:$0xff] }
  0xad   : > { %v4538_v49 = vpack.c.bf16 %v694_v51, %v693_v40 }
  0xaf   : > { %4670 = vst [vmem:[#allocation5 + $0x18] sm:$0xff] %v4538_v49  }
  0xb1   : > { %v654_v53 = vpop.permute.xlu2 %653 }
  0xb2   : > { %v604_v57 = vpop.permute.xlu1 %603  ;;  %v599_v58 = vpop.permute.xlu0 %598 }
  0xb3   : > { %v697_v61 = vmul.f32 %v604_v57, %v505_v54  ;;  %v696_v63 = vmul.f32 %v599_v58, %v504_v55  ;;  %v514_v54 = vld [vmem:[%s6813_s1 + $0xc8] sm:$0xff]  ;;  %v513_v55 = vld [vmem:[%s6813_s1 + $0xc0] sm:$0xff] }
  0xb5   : > { %v4548_v32 = vpack.c.bf16 %v698_v60, %v697_v61  ;;  %v4543_v33 = vpack.c.bf16 %v696_v63, %v695_v59  ;;  %v515_v61 = vld [vmem:[%s6813_s1 + $0xd0] sm:$0xff]  ;;  %v518_v63 = vld [vmem:[%s6813_s1 + $0xe8] sm:$0xff] }
  0xb7   : > { %4672 = vst [vmem:[#allocation5 + $0x58] sm:$0xff] %v4548_v32  }
  0xb8   : > { %4671 = vst [vmem:[#allocation5 + $0x50] sm:$0xff] %v4543_v33   ;;  %v517_v33 = vld [vmem:[%s6813_s1 + $0xe0] sm:$0xff] }
  0xb9   : > { %v669_v32 = vpop.permute.xlu2 %668 }
  0xba   : > { %v619_v36 = vpop.permute.xlu1 %618  ;;  %v614_v37 = vpop.permute.xlu0 %613 }
  0xbb   : > { %v700_v38 = vmul.f32 %v619_v36, %v508_v34  ;;  %v699_v39 = vmul.f32 %v614_v37, %v507_v35  ;;  %v516_v34 = vld [vmem:[%s6813_s1 + $0xd8] sm:$0xff]  ;;  %v707_v37 = vmul.f32 %v654_v53, %v515_v61 }
  0xbd   : > { %v4553_v41 = vpack.c.bf16 %v700_v38, %v699_v39  ;;  %v710_v38 = vmul.f32 %v669_v32, %v518_v63 }
  0xbf   : > { %4673 = vst [vmem:[#allocation5 + $0x78] sm:$0xff] %v4553_v41  }
  0xc2   : > { %v634_v46 = vpop.permute.xlu1 %633  ;;  %v629_v47 = vpop.permute.xlu0 %628 }
  0xc3   : > { %v703_v51 = vmul.f32 %v634_v46, %v511_v44  ;;  %v702_v40 = vmul.f32 %v629_v47, %v510_v45  ;;  %v519_v44 = vld [vmem:[%s6813_s1 + $0xf0] sm:$0xff] }
  0xc5   : > { %v4563_v49 = vpack.c.bf16 %v704_v50, %v703_v51  ;;  %v4558_v52 = vpack.c.bf16 %v702_v40, %v701_v48 }
  0xc7   : > { %4675 = vst [vmem:[#allocation5 + $0x38] sm:$0xff] %v4563_v49  }
  0xc8   : > { %4674 = vst [vmem:[#allocation5 + $0x68] sm:$0xff] %v4558_v52  }
  0xca   : > { %v649_v57 = vpop.permute.xlu1 %648  ;;  %v644_v58 = vpop.permute.xlu0 %643 }
  0xcb   : > { %v706_v59 = vmul.f32 %v649_v57, %v514_v54  ;;  %v705_v56 = vmul.f32 %v644_v58, %v513_v55 }
  0xcd   : > { %v4568_v60 = vpack.c.bf16 %v706_v59, %v705_v56 }
  0xcf   : > { %4676 = vst [vmem:[#allocation5 + $0x28] sm:$0xff] %v4568_v60  }
  0xd2   : > { %v664_v35 = vpop.permute.xlu1 %663  ;;  %v659_v36 = vpop.permute.xlu0 %658 }
  0xd3   : > { %v709_v39 = vmul.f32 %v664_v35, %v517_v33  ;;  %v708_v62 = vmul.f32 %v659_v36, %v516_v34 }
  0xd5   : > { %v4578_v41 = vpack.c.bf16 %v710_v38, %v709_v39  ;;  %v4573_v42 = vpack.c.bf16 %v708_v62, %v707_v37 }
  0xd7   : > { %4678 = vst [vmem:[#allocation5 + $0x10] sm:$0xff] %v4578_v41  }
  0xd8   : > { %4677 = vst [vmem:[#allocation5 + $0x60] sm:$0xff] %v4573_v42  }
  0xda   : > { %v679_v45 = vpop.permute.xlu1 %678  ;;  %v674_v46 = vpop.permute.xlu0 %673 }
  0xdb   : > { %v712_v47 = vmul.f32 %v679_v45, %v520_v43  ;;  %v711_v48 = vmul.f32 %v674_v46, %v519_v44 }
  0xdd   : > { %v4583_v50 = vpack.c.bf16 %v712_v47, %v711_v48 }
  0xdf   : > { %4679 = vst [vmem:[#allocation5 + $0x40] sm:$0xff] %v4583_v50  }
  0xe0 PF: > { %p4018_p5 = scmp.ne.s32.totalorder %s4780_s21, 0 }
  0xe2   : > { %779 = sbr.rel (%p4018_p5) target bundleno = 789 (0x315), region = 76 }
  0xe7   : > { %v1287_v51 = vmul.f32 -1.0, %v4902_v4  ;;  %v1285_v40 = vmul.f32 -1.0, %v4891_v2  ;;  %v1283_v49 = vmul.f32 -1.0, %v4881_v0  ;;  %v4448_v52 = vld [vmem:[#allocation5 + $0x50] sm:$0xff]  ;;  %v4456_v53 = vld [vmem:[#allocation5 + $0x40] sm:$0xff]  ;;  %v4791_v54 = vmov 0  }
  0xe8   : > { %4759 = vset.pattern.permute.xlu2 %v4791_v54  ;;  %4758 = vset.pattern.permute.xlu1 %v4791_v54  ;;  %v4447_v55 = vld [vmem:[#allocation5 + $0x18] sm:$0xff]  ;;  %v4455_v57 = vld [vmem:[#allocation5 + $0x10] sm:$0xff]  ;;  %v1288_v58 = vmul.f32 -1.0, %v4907_v5  ;;  %v1286_v59 = vmul.f32 -1.0, %v4897_v3  ;;  %v1284_v56 = vmul.f32 -1.0, %v4886_v1  ;;  %v4446_v60 = vld [vmem:[#allocation5] sm:$0xff] }
  0xe9   : > { %4757 = vset.pattern.permute.xlu0 %v4791_v54  ;;  %1337 = vperm.xlu2 %4759, %v1287_v51   ;;  %v4454_v61 = vld [vmem:[#allocation5 + $0x60] sm:$0xff]  ;;  %v4445_v63 = vld [vmem:[#allocation5 + $0x30] sm:$0xff]  ;;  %v4453_v32 = vld [vmem:[#allocation5 + $0x28] sm:$0xff]  ;;  %v1291_v33 = vmul.f32 -1.0, %v4922_v8  ;;  %v1290_v34 = vmul.f32 -1.0, %v4917_v7  ;;  %v1289_v35 = vmul.f32 -1.0, %v4912_v6 }
  0xea   : > { %1327 = vperm.xlu1 %4758, %v1285_v40   ;;  %1317 = vperm.xlu0 %4757, %v1283_v49   ;;  %v4444_v36 = vld [vmem:[#allocation5 + $0x8] sm:$0xff]  ;;  %v4452_v37 = vld [vmem:[#allocation5 + $0x38] sm:$0xff]  ;;  %v4443_v38 = vld [vmem:[#allocation5 + $0x70] sm:$0xff]  ;;  %v1294_v62 = vmul.f32 -1.0, %v4937_v11  ;;  %v1293_v41 = vmul.f32 -1.0, %v4932_v10  ;;  %v1292_v42 = vmul.f32 -1.0, %v4927_v9 }
  0xeb   : > { %1105 = vmatpush.bf16.msra.mxu0 %v4448_v52  ;;  %1194 = vmatpush.bf16.msra.mxu1 %v4456_v53  ;;  %v4451_v39 = vld [vmem:[#allocation5 + $0x68] sm:$0xff]  ;;  %v4442_v43 = vld [vmem:[#allocation5 + $0x20] sm:$0xff]  ;;  %v4450_v44 = vld [vmem:[#allocation5 + $0x78] sm:$0xff]  ;;  %v1297_v40 = vmul.f32 -1.0, %v4952_v14  ;;  %v1296_v49 = vmul.f32 -1.0, %v4947_v13  ;;  %v1295_v52 = vmul.f32 -1.0, %v4942_v12 }
  0xec   : > { %v4441_v45 = vld [vmem:[#allocation5 + $0x48] sm:$0xff]  ;;  %v4449_v46 = vld [vmem:[#allocation5 + $0x58] sm:$0xff]  ;;  %v4021_v47 = vld [vmem:[%s6812_s0] sm:$0xf] }
  0xed   : > { %v4410_v48 = vld [vmem:[%s6812_s0 + $0x4] sm:$0xf0]  ;;  %v4409_v50 = vld [vmem:[%s6812_s0 + $0x4] sm:$0xf]  ;;  %v4023_v51 = vld [vmem:[%s6812_s0 + $0x8] sm:$0xf0] }
  0xee   : > { %v4022_v53 = vor.u32 %v4410_v48, %v4021_v47  ;;  %v4026_v54 = vor.u32 %v4409_v50, %v4023_v51  ;;  %v1312_v48 = vmul.f32 -1.0, %v5027_v29  ;;  %v1311_v50 = vmul.f32 -1.0, %v5022_v28 }
  0xef   : > { %1106 = vmatpush.bf16.msra.mxu0 %v4447_v55  ;;  %1195 = vmatpush.bf16.msra.mxu1 %v4455_v57  ;;  %v1300_v55 = vmul.f32 -1.0, %v4967_v17  ;;  %v1299_v57 = vmul.f32 -1.0, %v4962_v16  ;;  %v1310_v51 = vmul.f32 -1.0, %v5017_v27 }
  0xf1   : > { %1342 = vperm.xlu2 %4759, %v1288_v58   ;;  %v1298_v58 = vmul.f32 -1.0, %v4957_v15 }
  0xf2   : > { %1332 = vperm.xlu1 %4758, %v1286_v59   ;;  %1322 = vperm.xlu0 %4757, %v1284_v56   ;;  %v4029_v59 = vld [vmem:[%s6812_s0 + $0x10] sm:$0xf]  ;;  %v4412_v56 = vld [vmem:[%s6812_s0 + $0x14] sm:$0xf0] }
  0xf3   : > { %1107 = vmatpush.bf16.msra.mxu0 %v4446_v60  ;;  %1196 = vmatpush.bf16.msra.mxu1 %v4454_v61  ;;  %v4411_v60 = vld [vmem:[%s6812_s0 + $0x14] sm:$0xf]  ;;  %v4031_v61 = vld [vmem:[%s6812_s0 + $0x18] sm:$0xf0] }
  0xf7   : > { %1108 = vmatpush.bf16.msra.mxu0 %v4445_v63  ;;  %1197 = vmatpush.bf16.msra.mxu1 %v4453_v32  ;;  %v1303_v63 = vmul.f32 -1.0, %v4982_v20  ;;  %v1302_v32 = vmul.f32 -1.0, %v4977_v19 }
  0xf9   : > { %1357 = vperm.xlu2 %4759, %v1291_v33   ;;  %v1301_v33 = vmul.f32 -1.0, %v4972_v18 }
  0xfa   : > { %1352 = vperm.xlu1 %4758, %v1290_v34   ;;  %1347 = vperm.xlu0 %4757, %v1289_v35   ;;  %v4030_v34 = vor.u32 %v4412_v56, %v4029_v59  ;;  %v4034_v35 = vor.u32 %v4411_v60, %v4031_v61  ;;  %v4053_v59 = vld [vmem:[%s6812_s0 + $0x40] sm:$0xf]  ;;  %v4418_v56 = vld [vmem:[%s6812_s0 + $0x44] sm:$0xf0]  ;;  %v4417_v60 = vld [vmem:[%s6812_s0 + $0x44] sm:$0xf] }
  0xfb   : > { %1109 = vmatpush.bf16.msra.mxu0 %v4444_v36  ;;  %1198 = vmatpush.bf16.msra.mxu1 %v4452_v37  ;;  %v1306_v36 = vmul.f32 -1.0, %v4997_v23  ;;  %v1305_v37 = vmul.f32 -1.0, %v4992_v22  ;;  %v4055_v61 = vld [vmem:[%s6812_s0 + $0x48] sm:$0xf0] }
  0xff   : > { %1110 = vmatpush.bf16.msra.mxu0 %v4443_v38  ;;  %1199 = vmatpush.bf16.msra.mxu1 %v4451_v39  ;;  %v1304_v38 = vmul.f32 -1.0, %v4987_v21  ;;  %v4037_v39 = vld [vmem:[%s6812_s0 + $0x20] sm:$0xf] }
 0x101   : > { %1372 = vperm.xlu2 %4759, %v1294_v62   ;;  %v4414_v62 = vld [vmem:[%s6812_s0 + $0x24] sm:$0xf0] }
 0x102   : > { %1367 = vperm.xlu1 %4758, %v1293_v41   ;;  %1362 = vperm.xlu0 %4757, %v1292_v42   ;;  %v4413_v41 = vld [vmem:[%s6812_s0 + $0x24] sm:$0xf]  ;;  %v4039_v42 = vld [vmem:[%s6812_s0 + $0x28] sm:$0xf0] }
 0x103   : > { %1111 = vmatpush.bf16.msra.mxu0 %v4442_v43  ;;  %1200 = vmatpush.bf16.msra.mxu1 %v4450_v44  ;;  %v1309_v43 = vmul.f32 -1.0, %v5012_v26  ;;  %v1308_v44 = vmul.f32 -1.0, %v5007_v25  ;;  %v4042_v47 = vor.u32 %v4413_v41, %v4039_v42  ;;  %v1585_v41 = vld [vmem:[%s6815_s3 + $0x60] sm:$0xff]  ;;  %v4420_v42 = vld [vmem:[%s6812_s0 + $0x54] sm:$0xf0] }
 0x107   : > { %1112 = vmatpush.bf16.msra.mxu0 %v4441_v45  ;;  %1201 = vmatpush.bf16.msra.mxu1 %v4449_v46  ;;  %v1307_v45 = vmul.f32 -1.0, %v5002_v24  ;;  %v4038_v46 = vor.u32 %v4414_v62, %v4037_v39  ;;  %v4061_v39 = vld [vmem:[%s6812_s0 + $0x50] sm:$0xf]  ;;  %v1633_v62 = vld [vmem:[%s6816_s4 + $0x60] sm:$0xff] }
 0x109   : > { %1387 = vperm.xlu2 %4759, %v1297_v40   ;;  %v4045_v40 = vld [vmem:[%s6812_s0 + $0x30] sm:$0xf] }
 0x10a   : > { %1382 = vperm.xlu1 %4758, %v1296_v49   ;;  %1377 = vperm.xlu0 %4757, %v1295_v52   ;;  %v4416_v49 = vld [vmem:[%s6812_s0 + $0x34] sm:$0xf0]  ;;  %v4415_v52 = vld [vmem:[%s6812_s0 + $0x34] sm:$0xf] }
 0x10b   : > { %1113 = vmatmul.bf16.vlgmr.msra.gmra.mxu0 %v4022_v53  ;;  %1202 = vmatmul.bf16.vlgmr.msra.gmra.mxu1 %v4026_v54  ;;  %v4047_v53 = vld [vmem:[%s6812_s0 + $0x38] sm:$0xf0]  ;;  %v1314_v54 = vmul.f32 -1.0, %v5037_v31 }
 0x111   : > { %1402 = vperm.xlu2 %4759, %v1300_v55   ;;  %v1313_v55 = vmul.f32 -1.0, %v5032_v30 }
 0x112   : > { %1397 = vperm.xlu1 %4758, %v1299_v57   ;;  %1392 = vperm.xlu0 %4757, %v1298_v58   ;;  %v4046_v57 = vor.u32 %v4416_v49, %v4045_v40  ;;  %v4050_v58 = vor.u32 %v4415_v52, %v4047_v53  ;;  %v1630_v40 = vld [vmem:[%s6816_s4 + $0x48] sm:$0xff]  ;;  %v1629_v52 = vld [vmem:[%s6816_s4 + $0x40] sm:$0xff] }
 0x113   : > { %v1582_v49 = vld [vmem:[%s6815_s3 + $0x48] sm:$0xff]  ;;  %v1581_v53 = vld [vmem:[%s6815_s3 + $0x40] sm:$0xff] }
 0x119   : > { %1417 = vperm.xlu2 %4759, %v1303_v63   ;;  %v4054_v63 = vor.u32 %v4418_v56, %v4053_v59  ;;  %v1626_v59 = vld [vmem:[%s6816_s4 + $0x28] sm:$0xff]  ;;  %v4069_v56 = vld [vmem:[%s6812_s0 + $0x60] sm:$0xf] }
 0x11a   : > { %1412 = vperm.xlu1 %4758, %v1302_v32   ;;  %1407 = vperm.xlu0 %4757, %v1301_v33   ;;  %v4058_v32 = vor.u32 %v4417_v60, %v4055_v61  ;;  %v1636_v33 = vld [vmem:[%s6816_s4 + $0x78] sm:$0xff]  ;;  %v4422_v60 = vld [vmem:[%s6812_s0 + $0x64] sm:$0xf0]  ;;  %v4421_v61 = vld [vmem:[%s6812_s0 + $0x64] sm:$0xf] }
 0x11b   : > { %1118 = vmatmul.bf16.gmra.mxu0 %v4030_v34  ;;  %1207 = vmatmul.bf16.gmra.mxu1 %v4034_v35  ;;  %v1588_v34 = vld [vmem:[%s6815_s3 + $0x78] sm:$0xff]  ;;  %v1635_v35 = vld [vmem:[%s6816_s4 + $0x70] sm:$0xff] }
 0x11c   : > { %1637 = vmatpush.msra.mxu2 %v1636_v33  ;;  %1750 = vmatpush.msra.mxu3 %v1588_v34  ;;  %v1625_v33 = vld [vmem:[%s6816_s4 + $0x20] sm:$0xff] }
 0x11d   : > { %v1577_v34 = vld [vmem:[%s6815_s3 + $0x20] sm:$0xff] }
 0x11e   : > { %1638 = vmatpush.msra.mxu2 %v1635_v35  ;;  %v4070_v35 = vor.u32 %v4422_v60, %v4069_v56 }
 0x121   : > { %1432 = vperm.xlu2 %4759, %v1306_v36   ;;  %v1587_v36 = vld [vmem:[%s6815_s3 + $0x70] sm:$0xff] }
 0x122   : > { %1427 = vperm.xlu1 %4758, %v1305_v37   ;;  %1422 = vperm.xlu0 %4757, %v1304_v38   ;;  %v1634_v37 = vld [vmem:[%s6816_s4 + $0x68] sm:$0xff] }
 0x123   : > { %1751 = vmatpush.msra.mxu3 %v1587_v36  ;;  %v1586_v38 = vld [vmem:[%s6815_s3 + $0x68] sm:$0xff]  ;;  %1639 = vmatpush.msra.mxu2 %v1634_v37  ;;  %v1624_v37 = vld [vmem:[%s6816_s4 + $0x18] sm:$0xff] }
 0x125   : > { %1752 = vmatpush.msra.mxu3 %v1586_v38  ;;  %1640 = vmatpush.msra.mxu2 %v1633_v62  ;;  %v1576_v38 = vld [vmem:[%s6815_s3 + $0x18] sm:$0xff]  ;;  %v1575_v62 = vld [vmem:[%s6815_s3 + $0x10] sm:$0xff] }
 0x127   : > { %1753 = vmatpush.msra.mxu3 %v1585_v41  ;;  %v1622_v41 = vld [vmem:[%s6816_s4 + $0x8] sm:$0xff] }
 0x129   : > { %1447 = vperm.xlu2 %4759, %v1309_v43   ;;  %v4419_v43 = vld [vmem:[%s6812_s0 + $0x54] sm:$0xf] }
 0x12a   : > { %1442 = vperm.xlu1 %4758, %v1308_v44   ;;  %1437 = vperm.xlu0 %4757, %v1307_v45   ;;  %v4063_v44 = vld [vmem:[%s6812_s0 + $0x58] sm:$0xf0] }
 0x12b   : > { %1123 = vmatmul.bf16.gmra.mxu0 %v4038_v46  ;;  %1212 = vmatmul.bf16.gmra.mxu1 %v4042_v47  ;;  %v1632_v45 = vld [vmem:[%s6816_s4 + $0x58] sm:$0xff]  ;;  %v4062_v47 = vor.u32 %v4420_v42, %v4061_v39  ;;  %v1623_v39 = vld [vmem:[%s6816_s4 + $0x10] sm:$0xff]  ;;  %v1574_v42 = vld [vmem:[%s6815_s3 + $0x8] sm:$0xff] }
 0x12c   : > { %v1584_v46 = vld [vmem:[%s6815_s3 + $0x58] sm:$0xff]  ;;  %1641 = vmatpush.msra.mxu2 %v1632_v45  ;;  %v1541_v45 = vld [vmem:[%s6813_s1] sm:$0xff] }
 0x12d   : > { %1754 = vmatpush.msra.mxu3 %v1584_v46  ;;  %v4077_v46 = vld [vmem:[%s6812_s0 + $0x70] sm:$0xf] }
 0x131   : > { %1462 = vperm.xlu2 %4759, %v1312_v48   ;;  %v4066_v48 = vor.u32 %v4419_v43, %v4063_v44  ;;  %v1621_v43 = vld [vmem:[%s6816_s4] sm:$0xff] }
 0x132   : > { %1457 = vperm.xlu1 %4758, %v1311_v50   ;;  %1452 = vperm.xlu0 %4757, %v1310_v51   ;;  %v1631_v50 = vld [vmem:[%s6816_s4 + $0x50] sm:$0xff]  ;;  %v1573_v44 = vld [vmem:[%s6815_s3] sm:$0xff] }
 0x133   : > { %1642 = vmatpush.msra.mxu2 %v1631_v50  ;;  %v1583_v51 = vld [vmem:[%s6815_s3 + $0x50] sm:$0xff]  ;;  %v4079_v50 = vld [vmem:[%s6812_s0 + $0x78] sm:$0xf0] }
 0x134   : > { %1755 = vmatpush.msra.mxu3 %v1583_v51 }
 0x135   : > { %1643 = vmatpush.msra.mxu2 %v1630_v40 }
 0x136   : > { %1756 = vmatpush.msra.mxu3 %v1582_v49  ;;  %v1542_v49 = vld [vmem:[%s6813_s1 + $0x8] sm:$0xff] }
 0x137   : > { %1644 = vmatpush.msra.mxu2 %v1629_v52  ;;  %v1543_v52 = vld [vmem:[%s6813_s1 + $0x10] sm:$0xff] }
 0x138   : > { %1757 = vmatpush.msra.mxu3 %v1581_v53  ;;  %v4085_v53 = vld [vmem:[%s6812_s0 + $0x80] sm:$0xf] }
 0x139   : > { %1967 = vperm.xlu2 %4759, %v4881_v0  }
 0x13a   : > { %1472 = vperm.xlu1 %4758, %v1314_v54   ;;  %1467 = vperm.xlu0 %4757, %v1313_v55   ;;  %v1628_v54 = vld [vmem:[%s6816_s4 + $0x38] sm:$0xff] }
 0x13b   : > { %1128 = vmatmul.bf16.gmra.mxu0 %v4046_v57  ;;  %1217 = vmatmul.bf16.gmra.mxu1 %v4050_v58  ;;  %v1580_v55 = vld [vmem:[%s6815_s3 + $0x38] sm:$0xff]  ;;  %v1627_v57 = vld [vmem:[%s6816_s4 + $0x30] sm:$0xff] }
 0x13c   : > { %1645 = vmatpush.msra.mxu2 %v1628_v54  ;;  %v1579_v58 = vld [vmem:[%s6815_s3 + $0x30] sm:$0xff]  ;;  %1758 = vmatpush.msra.mxu3 %v1580_v55  ;;  %v4426_v54 = vld [vmem:[%s6812_s0 + $0x84] sm:$0xf0]  ;;  %v4425_v55 = vld [vmem:[%s6812_s0 + $0x84] sm:$0xf] }
 0x13e   : > { %1646 = vmatpush.msra.mxu2 %v1627_v57  ;;  %1759 = vmatpush.msra.mxu3 %v1579_v58  ;;  %v4087_v57 = vld [vmem:[%s6812_s0 + $0x88] sm:$0xf0] }
 0x13f   : > { %v4090_v56 = vor.u32 %v4425_v55, %v4087_v57 }
 0x140   : > { %1647 = vmatpush.msra.mxu2 %v1626_v59  ;;  %v4086_v59 = vor.u32 %v4426_v54, %v4085_v53  ;;  %v1547_v54 = vld [vmem:[%s6813_s1 + $0x30] sm:$0xff] }
 0x141   : > { %1982 = vperm.xlu2 %4759, %v4897_v3  }
 0x142   : > { %1977 = vperm.xlu1 %4758, %v4891_v2   ;;  %1972 = vperm.xlu0 %4757, %v4886_v1  }
 0x143   : > { %1648 = vmatpush.msra.mxu2 %v1625_v33 }
 0x145   : > { %1649 = vmatpush.msra.mxu2 %v1624_v37  ;;  %v1545_v37 = vld [vmem:[%s6813_s1 + $0x20] sm:$0xff] }
 0x147   : > { %1650 = vmatpush.msra.mxu2 %v1623_v39 }
 0x149   : > { %1997 = vperm.xlu2 %4759, %v4912_v6   ;;  %1651 = vmatpush.msra.mxu2 %v1622_v41  ;;  %v4428_v41 = vld [vmem:[%s6812_s0 + $0x94] sm:$0xf0] }
 0x14a   : > { %1992 = vperm.xlu1 %4758, %v4907_v5   ;;  %1987 = vperm.xlu0 %4757, %v4902_v4  }
 0x14b   : > { %1133 = vmatmul.bf16.gmra.mxu0 %v4054_v63  ;;  %1222 = vmatmul.bf16.gmra.mxu1 %v4058_v32  ;;  %v4071_v63 = vld [vmem:[%s6812_s0 + $0x68] sm:$0xf0] }
 0x14c   : > { %v1578_v32 = vld [vmem:[%s6815_s3 + $0x28] sm:$0xff]  ;;  %v4074_v36 = vor.u32 %v4421_v61, %v4071_v63  ;;  %1652 = vmatpush.msra.mxu2 %v1621_v43  ;;  %v4095_v43 = vld [vmem:[%s6812_s0 + $0x98] sm:$0xf0] }
 0x14d   : > { %1760 = vmatpush.msra.mxu3 %v1578_v32  ;;  %v1544_v32 = vld [vmem:[%s6813_s1 + $0x18] sm:$0xff] }
 0x14f   : > { %1761 = vmatpush.msra.mxu3 %v1577_v34 }
 0x151   : > { %2012 = vperm.xlu2 %4759, %v4927_v9   ;;  %1762 = vmatpush.msra.mxu3 %v1576_v38 }
 0x152   : > { %2007 = vperm.xlu1 %4758, %v4922_v8   ;;  %2002 = vperm.xlu0 %4757, %v4917_v7  }
 0x153   : > { %1763 = vmatpush.msra.mxu3 %v1575_v62  ;;  %v4093_v62 = vld [vmem:[%s6812_s0 + $0x90] sm:$0xf] }
 0x155   : > { %1764 = vmatpush.msra.mxu3 %v1574_v42  ;;  %v4427_v42 = vld [vmem:[%s6812_s0 + $0x94] sm:$0xf] }
 0x157   : > { %1765 = vmatpush.msra.mxu3 %v1573_v44 }
 0x158   : > { %1766 = vmatmul.f32.vlgmr.msra.gmra.mxu3 %v1541_v45  ;;  %v4094_v45 = vor.u32 %v4428_v41, %v4093_v62  ;;  %v1549_v41 = vld [vmem:[%s6813_s1 + $0x40] sm:$0xff] }
 0x159   : > { %2027 = vperm.xlu2 %4759, %v4942_v12  }
 0x15a   : > { %2022 = vperm.xlu1 %4758, %v4937_v11   ;;  %2017 = vperm.xlu0 %4757, %v4932_v10  }
 0x15b   : > { %1138 = vmatmul.bf16.gmra.mxu0 %v4062_v47  ;;  %1227 = vmatmul.bf16.gmra.mxu1 %v4066_v48  ;;  %v4424_v47 = vld [vmem:[%s6812_s0 + $0x74] sm:$0xf0]  ;;  %v4423_v48 = vld [vmem:[%s6812_s0 + $0x74] sm:$0xf] }
 0x15c   : > { %v4078_v51 = vor.u32 %v4424_v47, %v4077_v46  ;;  %v4082_v40 = vor.u32 %v4423_v48, %v4079_v50  ;;  %v1318_v58 = vpop.permute.xlu0 %1317  ;;  %v1328_v44 = vpop.permute.xlu1 %1327  ;;  %v4098_v46 = vor.u32 %v4427_v42, %v4095_v43 }
 0x160   : > { %1769 = vmatmul.f32.gmra.mxu3 %v1542_v49 }
 0x161   : > { %2042 = vperm.xlu2 %4759, %v4957_v15  }
 0x162   : > { %2037 = vperm.xlu1 %4758, %v4952_v14   ;;  %2032 = vperm.xlu0 %4757, %v4947_v13  }
 0x164   : > { %v1323_v38 = vpop.permute.xlu0 %1322  ;;  %v1333_v55 = vpop.permute.xlu1 %1332 }
 0x168   : > { %1772 = vmatmul.f32.gmra.mxu3 %v1543_v52 }
 0x169   : > { %2057 = vperm.xlu2 %4759, %v4972_v18  }
 0x16a   : > { %2052 = vperm.xlu1 %4758, %v4967_v17   ;;  %2047 = vperm.xlu0 %4757, %v4962_v16  }
 0x16b   : > { %1143 = vmatmul.bf16.gmra.mxu0 %v4070_v35  ;;  %1232 = vmatmul.bf16.gmra.mxu1 %v4074_v36 }
 0x170   : > { %1775 = vmatmul.f32.gmra.mxu3 %v1544_v32 }
 0x171   : > { %2072 = vperm.xlu2 %4759, %v4987_v21  }
 0x172   : > { %2067 = vperm.xlu1 %4758, %v4982_v20   ;;  %2062 = vperm.xlu0 %4757, %v4977_v19  }
 0x178   : > { %1778 = vmatmul.f32.gmra.mxu3 %v1545_v37 }
 0x179   : > { %2087 = vperm.xlu2 %4759, %v5002_v24  }
 0x17a   : > { %2082 = vperm.xlu1 %4758, %v4997_v23   ;;  %2077 = vperm.xlu0 %4757, %v4992_v22  }
 0x17b   : > { %1148 = vmatmul.bf16.gmra.mxu0 %v4078_v51  ;;  %1237 = vmatmul.bf16.gmra.mxu1 %v4082_v40  ;;  %v1546_v51 = vld [vmem:[%s6813_s1 + $0x28] sm:$0xff] }
 0x180   : > { %1781 = vmatmul.f32.gmra.mxu3 %v1546_v51 }
 0x181   : > { %2102 = vperm.xlu2 %4759, %v5017_v27  }
 0x182   : > { %2097 = vperm.xlu1 %4758, %v5012_v26   ;;  %2092 = vperm.xlu0 %4757, %v5007_v25  }
 0x188   : > { %v1114_v60 = vpop.f32.mrf.mxu0  ;;  %v1203_v61 = vpop.f32.mrf.mxu1  ;;  %1784 = vmatmul.f32.gmra.mxu3 %v1547_v54 }
 0x189   : > { %v1204_v63 = vadd.f32 %v1203_v61, %v1114_v60  ;;  %2117 = vperm.xlu2 %4759, %v5032_v30   ;;  %v4103_v60 = vld [vmem:[%s6812_s0 + $0xa8] sm:$0xf0]  ;;  %v1338_v61 = vpop.permute.xlu2 %1337 }
 0x18a   : > { %2112 = vperm.xlu1 %4758, %v5027_v29   ;;  %2107 = vperm.xlu0 %4757, %v5022_v28  }
 0x18b   : > { %v1475_v33 = vmul.f32 %v1318_v58, %v1204_v63  ;;  %1153 = vmatmul.bf16.gmra.mxu0 %v4086_v59  ;;  %1242 = vmatmul.bf16.gmra.mxu1 %v4090_v56  ;;  %v4101_v58 = vld [vmem:[%s6812_s0 + $0xa0] sm:$0xf]  ;;  %v4430_v59 = vld [vmem:[%s6812_s0 + $0xa4] sm:$0xf0]  ;;  %v4429_v56 = vld [vmem:[%s6812_s0 + $0xa4] sm:$0xf] }
 0x18c   : > { %v4102_v63 = vor.u32 %v4430_v59, %v4101_v58  ;;  %v4106_v32 = vor.u32 %v4429_v56, %v4103_v60  ;;  %v1551_v59 = vld [vmem:[%s6813_s1 + $0x50] sm:$0xff]  ;;  %v1353_v56 = vpop.permute.xlu1 %1352 }
 0x18d   : > { %1508 = vst [vmem:[#allocation2 + $0xb0] sm:$0xff] %v1475_v33  ;;  %1653 = vmatmul.f32.vlgmr.msra.gmra.mxu2 %v1475_v33 }
 0x190   : > { %v1116_v34 = vpop.f32.mrf.mxu0  ;;  %v1205_v35 = vpop.f32.mrf.mxu1 }
 0x191   : > { %v1206_v36 = vadd.f32 %v1205_v35, %v1116_v34  ;;  %v1343_v42 = vpop.permute.xlu2 %1342 }
 0x192   : > { %2122 = vperm.xlu0 %4757, %v5037_v31  }
 0x193   : > { %v1476_v39 = vmul.f32 %v1323_v38, %v1206_v36  ;;  %v1548_v36 = vld [vmem:[%s6813_s1 + $0x38] sm:$0xff] }
 0x194   : > { %1787 = vmatmul.f32.gmra.mxu3 %v1548_v36 }
 0x195   : > { %1509 = vst [vmem:[#allocation2] sm:$0xff] %v1476_v39  ;;  %1656 = vmatmul.f32.gmra.mxu2 %v1476_v39 }
 0x198   : > { %v1119_v47 = vpop.f32.mrf.mxu0  ;;  %v1208_v48 = vpop.f32.mrf.mxu1 }
 0x199   : > { %v1209_v50 = vadd.f32 %v1208_v48, %v1119_v47  ;;  %v4111_v47 = vld [vmem:[%s6812_s0 + $0xb8] sm:$0xf0] }
 0x19b   : > { %v1477_v40 = vmul.f32 %v1328_v44, %v1209_v50  ;;  %1158 = vmatmul.bf16.gmra.mxu0 %v4094_v45  ;;  %1247 = vmatmul.bf16.gmra.mxu1 %v4098_v46  ;;  %v4109_v44 = vld [vmem:[%s6812_s0 + $0xb0] sm:$0xf]  ;;  %v4432_v45 = vld [vmem:[%s6812_s0 + $0xb4] sm:$0xf0]  ;;  %v4431_v46 = vld [vmem:[%s6812_s0 + $0xb4] sm:$0xf] }
 0x19c   : > { %1790 = vmatmul.f32.gmra.mxu3 %v1549_v41  ;;  %v4110_v48 = vor.u32 %v4432_v45, %v4109_v44  ;;  %v4114_v50 = vor.u32 %v4431_v46, %v4111_v47  ;;  %v1553_v46 = vld [vmem:[%s6813_s1 + $0x60] sm:$0xff] }
 0x19d   : > { %1510 = vst [vmem:[#allocation2 + $0xd8] sm:$0xff] %v1477_v40  ;;  %1659 = vmatmul.f32.gmra.mxu2 %v1477_v40 }
 0x1a0   : > { %v1121_v49 = vpop.f32.mrf.mxu0  ;;  %v1210_v52 = vpop.f32.mrf.mxu1 }
 0x1a1   : > { %v1211_v53 = vadd.f32 %v1210_v52, %v1121_v49  ;;  %v1550_v52 = vld [vmem:[%s6813_s1 + $0x48] sm:$0xff] }
 0x1a3   : > { %v1478_v57 = vmul.f32 %v1333_v55, %v1211_v53  ;;  %v1348_v53 = vpop.permute.xlu0 %1347 }
 0x1a4   : > { %1793 = vmatmul.f32.gmra.mxu3 %v1550_v52 }
 0x1a5   : > { %1511 = vst [vmem:[#allocation2 + $0x18] sm:$0xff] %v1478_v57  ;;  %1662 = vmatmul.f32.gmra.mxu2 %v1478_v57 }
 0x1a8   : > { %v1124_v33 = vpop.f32.mrf.mxu0  ;;  %v1213_v34 = vpop.f32.mrf.mxu1 }
 0x1a9   : > { %v1214_v35 = vadd.f32 %v1213_v34, %v1124_v33  ;;  %v4119_v33 = vld [vmem:[%s6812_s0 + $0xc8] sm:$0xf0] }
 0x1ab   : > { %v1479_v37 = vmul.f32 %v1338_v61, %v1214_v35  ;;  %1163 = vmatmul.bf16.gmra.mxu0 %v4102_v63  ;;  %1252 = vmatmul.bf16.gmra.mxu1 %v4106_v32  ;;  %v4117_v61 = vld [vmem:[%s6812_s0 + $0xc0] sm:$0xf]  ;;  %v4434_v63 = vld [vmem:[%s6812_s0 + $0xc4] sm:$0xf0]  ;;  %v4433_v32 = vld [vmem:[%s6812_s0 + $0xc4] sm:$0xf] }
 0x1ac   : > { %1796 = vmatmul.f32.gmra.mxu3 %v1551_v59  ;;  %v4118_v34 = vor.u32 %v4434_v63, %v4117_v61  ;;  %v4122_v35 = vor.u32 %v4433_v32, %v4119_v33  ;;  %v1554_v59 = vld [vmem:[%s6813_s1 + $0x68] sm:$0xff] }
 0x1ad   : > { %1512 = vst [vmem:[#allocation2 + $0x50] sm:$0xff] %v1479_v37  ;;  %1665 = vmatmul.f32.gmra.mxu2 %v1479_v37 }
 0x1b0   : > { %v1126_v38 = vpop.f32.mrf.mxu0  ;;  %v1215_v39 = vpop.f32.mrf.mxu1 }
 0x1b1   : > { %v1216_v62 = vadd.f32 %v1215_v39, %v1126_v38  ;;  %v1552_v39 = vld [vmem:[%s6813_s1 + $0x58] sm:$0xff] }
 0x1b3   : > { %v1480_v43 = vmul.f32 %v1343_v42, %v1216_v62  ;;  %v1358_v62 = vpop.permute.xlu2 %1357  ;;  %v1363_v42 = vpop.permute.xlu0 %1362 }
 0x1b4   : > { %1799 = vmatmul.f32.gmra.mxu3 %v1552_v39  ;;  %v4437_v39 = vld [vmem:[%s6812_s0 + $0xe4] sm:$0xf] }
 0x1b5   : > { %1513 = vst [vmem:[#allocation2 + $0x68] sm:$0xff] %v1480_v43  ;;  %1668 = vmatmul.f32.gmra.mxu2 %v1480_v43 }
 0x1b8   : > { %v1129_v51 = vpop.f32.mrf.mxu0  ;;  %v1218_v40 = vpop.f32.mrf.mxu1 }
 0x1b9   : > { %v1219_v49 = vadd.f32 %v1218_v40, %v1129_v51  ;;  %v4435_v51 = vld [vmem:[%s6812_s0 + $0xd4] sm:$0xf]  ;;  %v4127_v40 = vld [vmem:[%s6812_s0 + $0xd8] sm:$0xf0] }
 0x1bb   : > { %v1481_v54 = vmul.f32 %v1348_v53, %v1219_v49  ;;  %1168 = vmatmul.bf16.gmra.mxu0 %v4110_v48  ;;  %1257 = vmatmul.bf16.gmra.mxu1 %v4114_v50  ;;  %v4125_v48 = vld [vmem:[%s6812_s0 + $0xd0] sm:$0xf]  ;;  %v4436_v50 = vld [vmem:[%s6812_s0 + $0xd4] sm:$0xf0]  ;;  %v1373_v49 = vpop.permute.xlu2 %1372  ;;  %v4130_v53 = vor.u32 %v4435_v51, %v4127_v40 }
 0x1bc   : > { %1802 = vmatmul.f32.gmra.mxu3 %v1553_v46  ;;  %v4126_v52 = vor.u32 %v4436_v50, %v4125_v48 }
 0x1bd   : > { %1514 = vst [vmem:[#allocation2 + $0x30] sm:$0xff] %v1481_v54  ;;  %1671 = vmatmul.f32.gmra.mxu2 %v1481_v54 }
 0x1c0   : > { %v1131_v55 = vpop.f32.mrf.mxu0  ;;  %v1220_v57 = vpop.f32.mrf.mxu1 }
 0x1c1   : > { %v1221_v58 = vadd.f32 %v1220_v57, %v1131_v55  ;;  %v1378_v57 = vpop.permute.xlu0 %1377 }
 0x1c3   : > { %v1482_v60 = vmul.f32 %v1353_v56, %v1221_v58  ;;  %v1368_v56 = vpop.permute.xlu1 %1367  ;;  %v1388_v32 = vpop.permute.xlu2 %1387 }
 0x1c4   : > { %1805 = vmatmul.f32.gmra.mxu3 %v1554_v59  ;;  %v4439_v59 = vld [vmem:[%s6812_s0 + $0xf4] sm:$0xf] }
 0x1c5   : > { %1515 = vst [vmem:[#allocation2 + $0x48] sm:$0xff] %v1482_v60  ;;  %1674 = vmatmul.f32.gmra.mxu2 %v1482_v60 }
 0x1c8   : > { %v1134_v36 = vpop.f32.mrf.mxu0  ;;  %v1223_v37 = vpop.f32.mrf.mxu1 }
 0x1c9   : > { %v1224_v38 = vadd.f32 %v1223_v37, %v1134_v36  ;;  %v4133_v37 = vld [vmem:[%s6812_s0 + $0xe0] sm:$0xf] }
 0x1cb   : > { %v1483_v41 = vmul.f32 %v1358_v62, %v1224_v38  ;;  %1173 = vmatmul.bf16.gmra.mxu0 %v4118_v34  ;;  %1262 = vmatmul.bf16.gmra.mxu1 %v4122_v35  ;;  %v1555_v34 = vld [vmem:[%s6813_s1 + $0x70] sm:$0xff]  ;;  %v1393_v35 = vpop.permute.xlu0 %1392  ;;  %v4438_v38 = vld [vmem:[%s6812_s0 + $0xe4] sm:$0xf0]  ;;  %v4135_v62 = vld [vmem:[%s6812_s0 + $0xe8] sm:$0xf0]  ;;  %v5622_v48 = vpop.permute.xlu2 %1402 }
 0x1cc   : > { %1808 = vmatmul.f32.gmra.mxu3 %v1555_v34 }
 0x1cd   : > { %1516 = vst [vmem:[#allocation2 + $0x80] sm:$0xff] %v1483_v41  ;;  %1677 = vmatmul.f32.gmra.mxu2 %v1483_v41  ;;  %v4134_v41 = vor.u32 %v4438_v38, %v4133_v37 }
 0x1d0   : > { %v1136_v43 = vpop.f32.mrf.mxu0  ;;  %v1225_v44 = vpop.f32.mrf.mxu1 }
 0x1d1   : > { %v1226_v45 = vadd.f32 %v1225_v44, %v1136_v43 }
 0x1d3   : > { %v1484_v47 = vmul.f32 %v1363_v42, %v1226_v45  ;;  %v4138_v42 = vor.u32 %v4437_v39, %v4135_v62  ;;  %v1383_v45 = vpop.permute.xlu1 %1382  ;;  %v5624_v51 = vpop.permute.xlu0 %1407  ;;  %v1558_v39 = vld [vmem:[%s6813_s1 + $0x88] sm:$0xff] }
 0x1d5   : > { %1517 = vst [vmem:[#allocation2 + $0x88] sm:$0xff] %v1484_v47  ;;  %1680 = vmatmul.f32.gmra.mxu2 %v1484_v47  ;;  %v1556_v47 = vld [vmem:[%s6813_s1 + $0x78] sm:$0xff] }
 0x1d6   : > { %1811 = vmatmul.f32.gmra.mxu3 %v1556_v47 }
 0x1d8   : > { %v1139_v54 = vpop.f32.mrf.mxu0  ;;  %v1228_v55 = vpop.f32.mrf.mxu1 }
 0x1d9   : > { %v1229_v58 = vadd.f32 %v1228_v55, %v1139_v54 }
 0x1db   : > { %v1485_v60 = vmul.f32 %v1368_v56, %v1229_v58  ;;  %1178 = vmatmul.bf16.gmra.mxu0 %v4126_v52  ;;  %1267 = vmatmul.bf16.gmra.mxu1 %v4130_v53  ;;  %v1557_v53 = vld [vmem:[%s6813_s1 + $0x80] sm:$0xff]  ;;  %v1398_v54 = vpop.permute.xlu1 %1397  ;;  %v4440_v58 = vld [vmem:[%s6812_s0 + $0xf4] sm:$0xf0]  ;;  %v4143_v56 = vld [vmem:[%s6812_s0 + $0xf8] sm:$0xf0]  ;;  %v1767_v34 = vpop.f32.mrf.mxu3 }
 0x1dd   : > { %1518 = vst [vmem:[#allocation2 + $0xe8] sm:$0xff] %v1485_v60  ;;  %1683 = vmatmul.f32.gmra.mxu2 %v1485_v60  ;;  %v5641_v60 = vpop.permute.xlu2 %1417 }
 0x1de   : > { %1814 = vmatmul.f32.gmra.mxu3 %v1557_v53 }
 0x1e0   : > { %v1141_v61 = vpop.f32.mrf.mxu0  ;;  %v1230_v63 = vpop.f32.mrf.mxu1 }
 0x1e1   : > { %v1231_v33 = vadd.f32 %v1230_v63, %v1141_v61  ;;  %v5643_v61 = vpop.permute.xlu0 %1422 }
 0x1e3   : > { %v1486_v36 = vmul.f32 %v1373_v49, %v1231_v33  ;;  %v4146_v33 = vor.u32 %v4439_v59, %v4143_v56 }
 0x1e5   : > { %1519 = vst [vmem:[#allocation2 + $0xb8] sm:$0xff] %v1486_v36  ;;  %1686 = vmatmul.f32.gmra.mxu2 %v1486_v36 }
 0x1e6   : > { %1817 = vmatmul.f32.gmra.mxu3 %v1558_v39 }
 0x1e8   : > { %v1144_v43 = vpop.f32.mrf.mxu0  ;;  %v1233_v44 = vpop.f32.mrf.mxu1 }
 0x1e9   : > { %v1234_v46 = vadd.f32 %v1233_v44, %v1144_v43  ;;  %v1770_v43 = vpop.f32.mrf.mxu3 }
 0x1eb   : > { %v1487_v50 = vmul.f32 %v1378_v57, %v1234_v46  ;;  %1183 = vmatmul.bf16.gmra.mxu0 %v4134_v41  ;;  %1272 = vmatmul.bf16.gmra.mxu1 %v4138_v42  ;;  %v4141_v57 = vld [vmem:[%s6812_s0 + $0xf0] sm:$0xf]  ;;  %v5648_v41 = vpop.permute.xlu1 %1412  ;;  %v5650_v42 = vpop.permute.xlu2 %1432 }
 0x1ec   : > { %v4142_v63 = vor.u32 %v4440_v58, %v4141_v57  ;;  %v5652_v46 = vpop.permute.xlu0 %1437  ;;  %v1560_v57 = vld [vmem:[%s6813_s1 + $0x98] sm:$0xff] }
 0x1ed   : > { %1520 = vst [vmem:[#allocation2 + $0x60] sm:$0xff] %v1487_v50  ;;  %1689 = vmatmul.f32.gmra.mxu2 %v1487_v50  ;;  %v1559_v50 = vld [vmem:[%s6813_s1 + $0x90] sm:$0xff] }
 0x1ee   : > { %1820 = vmatmul.f32.gmra.mxu3 %v1559_v50 }
 0x1f0   : > { %v1146_v40 = vpop.f32.mrf.mxu0  ;;  %v1235_v49 = vpop.f32.mrf.mxu1 }
 0x1f1   : > { %v1236_v52 = vadd.f32 %v1235_v49, %v1146_v40  ;;  %v1773_v49 = vpop.f32.mrf.mxu3 }
 0x1f3   : > { %v1488_v55 = vmul.f32 %v1383_v45, %v1236_v52  ;;  %v5657_v40 = vpop.permute.xlu1 %1427  ;;  %v5662_v58 = vpop.permute.xlu2 %1447 }
 0x1f4   : > { %v5664_v59 = vpop.permute.xlu0 %1452 }
 0x1f5   : > { %1521 = vst [vmem:[#allocation2 + $0xf0] sm:$0xff] %v1488_v55  ;;  %1692 = vmatmul.f32.gmra.mxu2 %v1488_v55 }
 0x1f6   : > { %1823 = vmatmul.f32.gmra.mxu3 %v1560_v57 }
 0x1f8   : > { %v1149_v36 = vpop.f32.mrf.mxu0  ;;  %v1238_v37 = vpop.f32.mrf.mxu1 }
 0x1f9   : > { %v1239_v38 = vadd.f32 %v1238_v37, %v1149_v36  ;;  %v5669_v36 = vld [vmem:[%s6817_s5] ss:$0 sm:$0xff] }
 0x1fb   : > { %v1489_v62 = vmul.f32 %v1388_v32, %v1239_v38  ;;  %1188 = vmatmul.bf16.gmra.mxu0 %v4142_v63  ;;  %1277 = vmatmul.bf16.gmra.mxu1 %v4146_v33  ;;  %v5671_v37 = vpop.permute.xlu1 %1442 }
 0x1fc   : > { %v5680_v50 = vpop.permute.xlu0 %1467 }
 0x1fd   : > { %1522 = vst [vmem:[#allocation2 + $0x8] sm:$0xff] %v1489_v62  ;;  %1695 = vmatmul.f32.gmra.mxu2 %v1489_v62  ;;  %v1561_v62 = vld [vmem:[%s6813_s1 + $0xa0] sm:$0xff] }
 0x1fe   : > { %1826 = vmatmul.f32.gmra.mxu3 %v1561_v62 }
 0x200   : > { %v1151_v44 = vpop.f32.mrf.mxu0  ;;  %v1240_v45 = vpop.f32.mrf.mxu1 }
 0x201   : > { %v1241_v47 = vadd.f32 %v1240_v45, %v1151_v44  ;;  %v5677_v45 = vpop.permute.xlu2 %1462 }
 0x203   : > { %v1490_v32 = vmul.f32 %v1393_v35, %v1241_v47  ;;  %v1776_v35 = vpop.f32.mrf.mxu3 }
 0x205   : > { %1523 = vst [vmem:[#allocation2 + $0x78] sm:$0xff] %v1490_v32  ;;  %1698 = vmatmul.f32.gmra.mxu2 %v1490_v32 }
 0x208   : > { %v1154_v52 = vpop.f32.mrf.mxu0  ;;  %v1243_v53 = vpop.f32.mrf.mxu1 }
 0x209   : > { %v1244_v55 = vadd.f32 %v1243_v53, %v1154_v52 }
 0x20b   : > { %v1491_v56 = vmul.f32 %v1398_v54, %v1244_v55  ;;  %v1779_v52 = vpop.f32.mrf.mxu3 }
 0x20d   : > { %1524 = vst [vmem:[#allocation2 + $0x38] sm:$0xff] %v1491_v56  ;;  %1701 = vmatmul.f32.gmra.mxu2 %v1491_v56 }
 0x210   : > { %v1156_v63 = vpop.f32.mrf.mxu0  ;;  %v1245_v33 = vpop.f32.mrf.mxu1 }
 0x211   : > { %v1246_v38 = vadd.f32 %v1245_v33, %v1156_v63  ;;  %v1654_v39 = vpop.f32.mrf.mxu2  ;;  %v5685_v63 = vpop.permute.xlu1 %1457 }
 0x212   : > { %v1768_v54 = vadd.f32 %v1767_v34, %v1654_v39  ;;  %v1968_v39 = vpop.permute.xlu2 %1967 }
 0x213   : > { %v1492_v44 = vmul.f32 %v5622_v48, %v1246_v38  ;;  %v1562_v48 = vld [vmem:[%s6813_s1 + $0xa8] sm:$0xff] }
 0x214   : > { %v1867_v47 = vadd.f32 %v5669_v36, %v1768_v54  ;;  %1829 = vmatmul.f32.gmra.mxu3 %v1562_v48  ;;  %v1973_v54 = vpop.permute.xlu0 %1972 }
 0x215   : > { %1525 = vst [vmem:[#allocation2 + $0x58] sm:$0xff] %v1492_v44  ;;  %1704 = vmatmul.f32.gmra.mxu2 %v1492_v44  ;;  %v1782_v44 = vpop.f32.mrf.mxu3 }
 0x216   : > { %v1899_v32 = vmax.f32 %v1867_v47, 0.0 }
 0x218   : > { %v1159_v53 = vpop.f32.mrf.mxu0  ;;  %v1248_v55 = vpop.f32.mrf.mxu1  ;;  %1933 = vst [vmem:[#allocation3 + $0x100] sm:$0xff] %v1899_v32  ;;  %v2125_v47 = vmul.f32 %v1968_v39, %v1899_v32 }
 0x219   : > { %v1249_v57 = vadd.f32 %v1248_v55, %v1159_v53  ;;  %v1657_v56 = vpop.f32.mrf.mxu2 }
 0x21a   : > { %v1771_v34 = vadd.f32 %v1770_v43, %v1657_v56 }
 0x21b   : > { %v1493_v33 = vmul.f32 %v5624_v51, %v1249_v57  ;;  %v1563_v51 = vld [vmem:[%s6813_s1 + $0xb0] sm:$0xff] }
 0x21c   : > { %v1868_v38 = vadd.f32 %v5669_v36, %v1771_v34  ;;  %1832 = vmatmul.f32.gmra.mxu3 %v1563_v51 }
 0x21d   : > { %1526 = vst [vmem:[#allocation2 + $0x40] sm:$0xff] %v1493_v33  ;;  %1707 = vmatmul.f32.gmra.mxu2 %v1493_v33  ;;  %v5694_v33 = vpop.permute.xlu1 %1472 }
 0x21e   : > { %v1900_v62 = vmax.f32 %v1868_v38, 0.0  ;;  %v1785_v38 = vpop.f32.mrf.mxu3 }
 0x220   : > { %v1161_v53 = vpop.f32.mrf.mxu0  ;;  %v1250_v55 = vpop.f32.mrf.mxu1  ;;  %1934 = vst [vmem:[#allocation3 + $0x190] sm:$0xff] %v1900_v62  ;;  %v2126_v29 = vmul.f32 %v1973_v54, %v1900_v62 }
 0x221   : > { %v1251_v26 = vadd.f32 %v1250_v55, %v1161_v53  ;;  %v1660_v43 = vpop.f32.mrf.mxu2 }
 0x222   : > { %v4588_v57 = vpack.c.bf16 %v2126_v29, %v2125_v47  ;;  %v1774_v56 = vadd.f32 %v1773_v49, %v1660_v43  ;;  %v1564_v29 = vld [vmem:[%s6813_s1 + $0xb8] sm:$0xff]  ;;  %v1983_v47 = vpop.permute.xlu2 %1982 }
 0x223   : > { %v1494_v48 = vmul.f32 %v5648_v41, %v1251_v26 }
 0x224   : > { %4589 = vst [vmem:[#allocation6 + $0x40] sm:$0xff] %v4588_v57   ;;  %v1869_v34 = vadd.f32 %v5669_v36, %v1774_v56  ;;  %1835 = vmatmul.f32.gmra.mxu3 %v1564_v29 }
 0x225   : > { %1527 = vst [vmem:[#allocation2 + $0xc8] sm:$0xff] %v1494_v48  ;;  %1710 = vmatmul.f32.gmra.mxu2 %v1494_v48  ;;  %v1978_v43 = vpop.permute.xlu1 %1977 }
 0x226   : > { %v1901_v32 = vmax.f32 %v1869_v34, 0.0  ;;  %v1788_v51 = vpop.f32.mrf.mxu3 }
 0x228   : > { %v1164_v39 = vpop.f32.mrf.mxu0  ;;  %v1253_v62 = vpop.f32.mrf.mxu1  ;;  %1935 = vst [vmem:[#allocation3 + $0x1d8] sm:$0xff] %v1901_v32  ;;  %v2127_v57 = vmul.f32 %v1978_v43, %v1901_v32  ;;  %v1566_v43 = vld [vmem:[%s6813_s1 + $0xc8] sm:$0xff] }
 0x229   : > { %v1254_v54 = vadd.f32 %v1253_v62, %v1164_v39  ;;  %v1663_v53 = vpop.f32.mrf.mxu2 }
 0x22a   : > { %v1777_v26 = vadd.f32 %v1776_v35, %v1663_v53 }
 0x22b   : > { %v1495_v41 = vmul.f32 %v5641_v60, %v1254_v54  ;;  %v1565_v60 = vld [vmem:[%s6813_s1 + $0xc0] sm:$0xff] }
 0x22c   : > { %v1870_v49 = vadd.f32 %v5669_v36, %v1777_v26  ;;  %1838 = vmatmul.f32.gmra.mxu3 %v1565_v60 }
 0x22d   : > { %1528 = vst [vmem:[#allocation2 + $0xe0] sm:$0xff] %v1495_v41  ;;  %1713 = vmatmul.f32.gmra.mxu2 %v1495_v41 }
 0x22e   : > { %v1902_v55 = vmax.f32 %v1870_v49, 0.0  ;;  %v1791_v26 = vpop.f32.mrf.mxu3 }
 0x230   : > { %v1166_v56 = vpop.f32.mrf.mxu0  ;;  %v1255_v48 = vpop.f32.mrf.mxu1  ;;  %1936 = vst [vmem:[#allocation3 + $0xf8] sm:$0xff] %v1902_v55  ;;  %v2128_v34 = vmul.f32 %v1983_v47, %v1902_v55 }
 0x231   : > { %v1256_v39 = vadd.f32 %v1255_v48, %v1166_v56  ;;  %v1666_v62 = vpop.f32.mrf.mxu2  ;;  %v1993_v56 = vpop.permute.xlu1 %1992 }
 0x232   : > { %v4593_v35 = vpack.c.bf16 %v2128_v34, %v2127_v57  ;;  %v1780_v54 = vadd.f32 %v1779_v52, %v1666_v62  ;;  %v1988_v34 = vpop.permute.xlu0 %1987 }
 0x233   : > { %v1496_v53 = vmul.f32 %v5643_v61, %v1256_v39 }
 0x234   : > { %4680 = vst [vmem:[#allocation6 + $0x48] sm:$0xff] %v4593_v35   ;;  %v1871_v29 = vadd.f32 %v5669_v36, %v1780_v54  ;;  %1841 = vmatmul.f32.gmra.mxu3 %v1566_v43 }
 0x235   : > { %1529 = vst [vmem:[#allocation2 + $0x90] sm:$0xff] %v1496_v53  ;;  %1716 = vmatmul.f32.gmra.mxu2 %v1496_v53 }
 0x236   : > { %v1903_v32 = vmax.f32 %v1871_v29, 0.0  ;;  %v1794_v39 = vpop.f32.mrf.mxu3 }
 0x238   : > { %v1169_v41 = vpop.f32.mrf.mxu0  ;;  %v1258_v49 = vpop.f32.mrf.mxu1  ;;  %1937 = vst [vmem:[#allocation3 + $0x10] sm:$0xff] %v1903_v32  ;;  %v2129_v62 = vmul.f32 %v1988_v34, %v1903_v32 }
 0x239   : > { %v1259_v47 = vadd.f32 %v1258_v49, %v1169_v41  ;;  %v1669_v55 = vpop.f32.mrf.mxu2  ;;  %v1998_v34 = vpop.permute.xlu2 %1997 }
 0x23a   : > { %v1783_v52 = vadd.f32 %v1782_v44, %v1669_v55 }
 0x23b   : > { %v1497_v61 = vmul.f32 %v5657_v40, %v1259_v47  ;;  %v1567_v40 = vld [vmem:[%s6813_s1 + $0xd0] sm:$0xff] }
 0x23c   : > { %v1872_v57 = vadd.f32 %v5669_v36, %v1783_v52  ;;  %1844 = vmatmul.f32.gmra.mxu3 %v1567_v40 }
 0x23d   : > { %1530 = vst [vmem:[#allocation2 + $0x70] sm:$0xff] %v1497_v61  ;;  %1719 = vmatmul.f32.gmra.mxu2 %v1497_v61 }
 0x23e   : > { %v1904_v48 = vmax.f32 %v1872_v57, 0.0  ;;  %v1797_v55 = vpop.f32.mrf.mxu3 }
 0x240   : > { %v1171_v60 = vpop.f32.mrf.mxu0  ;;  %v1260_v35 = vpop.f32.mrf.mxu1  ;;  %1938 = vst [vmem:[#allocation3 + $0x128] sm:$0xff] %v1904_v48  ;;  %v2130_v54 = vmul.f32 %v1993_v56, %v1904_v48  ;;  %v1568_v56 = vld [vmem:[%s6813_s1 + $0xd8] sm:$0xff] }
 0x241   : > { %v1261_v53 = vadd.f32 %v1260_v35, %v1171_v60  ;;  %v1672_v29 = vpop.f32.mrf.mxu2  ;;  %v2003_v60 = vpop.permute.xlu0 %2002 }
 0x242   : > { %v4598_v44 = vpack.c.bf16 %v2130_v54, %v2129_v62  ;;  %v1786_v41 = vadd.f32 %v1785_v38, %v1672_v29 }
 0x243   : > { %v1498_v49 = vmul.f32 %v5650_v42, %v1261_v53 }
 0x244   : > { %4681 = vst [vmem:[#allocation6 + $0x20] sm:$0xff] %v4598_v44   ;;  %v1873_v47 = vadd.f32 %v5669_v36, %v1786_v41  ;;  %1847 = vmatmul.f32.gmra.mxu3 %v1568_v56 }
 0x245   : > { %1531 = vst [vmem:[#allocation2 + $0xc0] sm:$0xff] %v1498_v49  ;;  %1722 = vmatmul.f32.gmra.mxu2 %v1498_v49 }
 0x246   : > { %v1905_v32 = vmax.f32 %v1873_v47, 0.0  ;;  %v1800_v35 = vpop.f32.mrf.mxu3 }
 0x248   : > { %v1174_v43 = vpop.f32.mrf.mxu0  ;;  %v1263_v52 = vpop.f32.mrf.mxu1  ;;  %1939 = vst [vmem:[#allocation3 + $0xb8] sm:$0xff] %v1905_v32  ;;  %v2131_v54 = vmul.f32 %v1998_v34, %v1905_v32 }
 0x249   : > { %v1264_v61 = vadd.f32 %v1263_v52, %v1174_v43  ;;  %v1675_v57 = vpop.f32.mrf.mxu2  ;;  %v2013_v34 = vpop.permute.xlu2 %2012 }
 0x24a   : > { %v1789_v38 = vadd.f32 %v1788_v51, %v1675_v57 }
 0x24b   : > { %v1499_v42 = vmul.f32 %v5652_v46, %v1264_v61  ;;  %v1569_v46 = vld [vmem:[%s6813_s1 + $0xe0] sm:$0xff] }
 0x24c   : > { %v1874_v48 = vadd.f32 %v5669_v36, %v1789_v38  ;;  %1850 = vmatmul.f32.gmra.mxu3 %v1569_v46 }
 0x24d   : > { %1532 = vst [vmem:[#allocation2 + $0xa8] sm:$0xff] %v1499_v42  ;;  %1725 = vmatmul.f32.gmra.mxu2 %v1499_v42  ;;  %v1570_v42 = vld [vmem:[%s6813_s1 + $0xe8] sm:$0xff] }
 0x24e   : > { %v1906_v62 = vmax.f32 %v1874_v48, 0.0  ;;  %v1803_v52 = vpop.f32.mrf.mxu3 }
 0x250   : > { %v1176_v53 = vpop.f32.mrf.mxu0  ;;  %v1265_v29 = vpop.f32.mrf.mxu1  ;;  %1940 = vst [vmem:[#allocation3 + $0x158] sm:$0xff] %v1906_v62  ;;  %v2132_v40 = vmul.f32 %v2003_v60, %v1906_v62 }
 0x251   : > { %v1266_v44 = vadd.f32 %v1265_v29, %v1176_v53  ;;  %v1678_v41 = vpop.f32.mrf.mxu2  ;;  %v2008_v60 = vpop.permute.xlu1 %2007 }
 0x252   : > { %v4603_v51 = vpack.c.bf16 %v2132_v40, %v2131_v54  ;;  %v1792_v49 = vadd.f32 %v1791_v26, %v1678_v41 }
 0x253   : > { %v1500_v47 = vmul.f32 %v5671_v37, %v1266_v44 }
 0x254   : > { %4682 = vst [vmem:[#allocation6 + $0x8] sm:$0xff] %v4603_v51   ;;  %v1875_v43 = vadd.f32 %v5669_v36, %v1792_v49  ;;  %1853 = vmatmul.f32.gmra.mxu3 %v1570_v42  ;;  %v1572_v42 = vld [vmem:[%s6813_s1 + $0xf8] sm:$0xff] }
 0x255   : > { %1533 = vst [vmem:[#allocation2 + $0xd0] sm:$0xff] %v1500_v47  ;;  %1728 = vmatmul.f32.gmra.mxu2 %v1500_v47 }
 0x256   : > { %v1907_v32 = vmax.f32 %v1875_v43, 0.0  ;;  %v1806_v54 = vpop.f32.mrf.mxu3 }
 0x258   : > { %v1179_v61 = vpop.f32.mrf.mxu0  ;;  %v1268_v57 = vpop.f32.mrf.mxu1  ;;  %1941 = vst [vmem:[#allocation3 + $0x1a8] sm:$0xff] %v1907_v32  ;;  %v2133_v53 = vmul.f32 %v2008_v60, %v1907_v32 }
 0x259   : > { %v1269_v56 = vadd.f32 %v1268_v57, %v1179_v61  ;;  %v1681_v38 = vpop.f32.mrf.mxu2 }
 0x25a   : > { %v1795_v26 = vadd.f32 %v1794_v39, %v1681_v38 }
 0x25b   : > { %v1501_v37 = vmul.f32 %v5662_v58, %v1269_v56  ;;  %v1571_v58 = vld [vmem:[%s6813_s1 + $0xf0] sm:$0xff] }
 0x25c   : > { %v1876_v48 = vadd.f32 %v5669_v36, %v1795_v26  ;;  %1856 = vmatmul.f32.gmra.mxu3 %v1571_v58 }
 0x25d   : > { %1534 = vst [vmem:[#allocation2 + $0x10] sm:$0xff] %v1501_v37  ;;  %1731 = vmatmul.f32.gmra.mxu2 %v1501_v37  ;;  %v2023_v37 = vpop.permute.xlu1 %2022 }
 0x25e   : > { %v1908_v62 = vmax.f32 %v1876_v48, 0.0  ;;  %v1809_v32 = vpop.f32.mrf.mxu3 }
 0x260   : > { %v1181_v29 = vpop.f32.mrf.mxu0  ;;  %v1270_v40 = vpop.f32.mrf.mxu1  ;;  %1942 = vst [vmem:[#allocation3 + $0x168] sm:$0xff] %v1908_v62  ;;  %v2134_v44 = vmul.f32 %v2013_v34, %v1908_v62 }
 0x261   : > { %v1271_v41 = vadd.f32 %v1270_v40, %v1181_v29  ;;  %v1684_v46 = vpop.f32.mrf.mxu2  ;;  %v2018_v34 = vpop.permute.xlu0 %2017 }
 0x262   : > { %v4608_v39 = vpack.c.bf16 %v2134_v44, %v2133_v53  ;;  %v1798_v51 = vadd.f32 %v1797_v55, %v1684_v46 }
 0x263   : > { %v1502_v49 = vmul.f32 %v5664_v59, %v1271_v41 }
 0x264   : > { %4683 = vst [vmem:[#allocation6 + $0x10] sm:$0xff] %v4608_v39   ;;  %v1877_v47 = vadd.f32 %v5669_v36, %v1798_v51  ;;  %1859 = vmatmul.f32.gmra.mxu3 %v1572_v42 }
 0x265   : > { %1535 = vst [vmem:[#allocation2 + $0x28] sm:$0xff] %v1502_v49  ;;  %1734 = vmatmul.f32.gmra.mxu2 %v1502_v49 }
 0x266   : > { %v1909_v43 = vmax.f32 %v1877_v47, 0.0  ;;  %v1812_v62 = vpop.f32.mrf.mxu3 }
 0x268   : > { %v1184_v61 = vpop.f32.mrf.mxu0  ;;  %v1273_v57 = vpop.f32.mrf.mxu1  ;;  %1943 = vst [vmem:[#allocation3 + $0x150] sm:$0xff] %v1909_v43  ;;  %v2135_v60 = vmul.f32 %v2018_v34, %v1909_v43 }
 0x269   : > { %v1274_v56 = vadd.f32 %v1273_v57, %v1184_v61  ;;  %v1687_v38 = vpop.f32.mrf.mxu2  ;;  %v2033_v42 = vpop.permute.xlu0 %2032 }
 0x26a   : > { %v1801_v55 = vadd.f32 %v1800_v35, %v1687_v38 }
 0x26b   : > { %v1503_v59 = vmul.f32 %v5685_v63, %v1274_v56 }
 0x26c   : > { %v1878_v26 = vadd.f32 %v5669_v36, %v1801_v55 }
 0x26d   : > { %1536 = vst [vmem:[#allocation2 + $0xa0] sm:$0xff] %v1503_v59  ;;  %1737 = vmatmul.f32.gmra.mxu2 %v1503_v59 }
 0x26e   : > { %v1910_v48 = vmax.f32 %v1878_v26, 0.0  ;;  %v1815_v51 = vpop.f32.mrf.mxu3 }
 0x270   : > { %v1186_v53 = vpop.f32.mrf.mxu0  ;;  %v1275_v29 = vpop.f32.mrf.mxu1  ;;  %1944 = vst [vmem:[#allocation3 + $0x1a0] sm:$0xff] %v1910_v48  ;;  %v2136_v40 = vmul.f32 %v2023_v37, %v1910_v48 }
 0x271   : > { %v1276_v44 = vadd.f32 %v1275_v29, %v1186_v53  ;;  %v1690_v41 = vpop.f32.mrf.mxu2 }
 0x272   : > { %v4613_v46 = vpack.c.bf16 %v2136_v40, %v2135_v60  ;;  %v1804_v35 = vadd.f32 %v1803_v52, %v1690_v41 }
 0x273   : > { %v1504_v63 = vmul.f32 %v5677_v45, %v1276_v44  ;;  %v2028_v45 = vpop.permute.xlu2 %2027 }
 0x274   : > { %4684 = vst [vmem:[#allocation6 + $0x60] sm:$0xff] %v4613_v46   ;;  %v1879_v58 = vadd.f32 %v5669_v36, %v1804_v35 }
 0x275   : > { %1537 = vst [vmem:[#allocation2 + $0xf8] sm:$0xff] %v1504_v63  ;;  %1740 = vmatmul.f32.gmra.mxu2 %v1504_v63 }
 0x276   : > { %v1911_v39 = vmax.f32 %v1879_v58, 0.0  ;;  %v1818_v55 = vpop.f32.mrf.mxu3 }
 0x278   : > { %v1189_v49 = vpop.f32.mrf.mxu0  ;;  %v1278_v47 = vpop.f32.mrf.mxu1  ;;  %1945 = vst [vmem:[#allocation3 + $0x1c0] sm:$0xff] %v1911_v39  ;;  %v2137_v59 = vmul.f32 %v2028_v45, %v1911_v39 }
 0x279   : > { %v1279_v43 = vadd.f32 %v1278_v47, %v1189_v49  ;;  %v1693_v61 = vpop.f32.mrf.mxu2  ;;  %v2038_v39 = vpop.permute.xlu1 %2037 }
 0x27a   : > { %v1807_v57 = vadd.f32 %v1806_v54, %v1693_v61 }
 0x27b   : > { %v1505_v56 = vmul.f32 %v5680_v50, %v1279_v43  ;;  %v2043_v63 = vpop.permute.xlu2 %2042 }
 0x27c   : > { %v1880_v38 = vadd.f32 %v5669_v36, %v1807_v57 }
 0x27d   : > { %1538 = vst [vmem:[#allocation2 + $0x20] sm:$0xff] %v1505_v56  ;;  %1743 = vmatmul.f32.gmra.mxu2 %v1505_v56 }
 0x27e   : > { %v1912_v52 = vmax.f32 %v1880_v38, 0.0  ;;  %v1821_v44 = vpop.f32.mrf.mxu3 }
 0x280   : > { %v1191_v26 = vpop.f32.mrf.mxu0  ;;  %v1280_v37 = vpop.f32.mrf.mxu1  ;;  %1946 = vst [vmem:[#allocation3 + $0x38] sm:$0xff] %v1912_v52  ;;  %v2138_v48 = vmul.f32 %v2033_v42, %v1912_v52 }
 0x281   : > { %v1281_v34 = vadd.f32 %v1280_v37, %v1191_v26  ;;  %v1696_v60 = vpop.f32.mrf.mxu2  ;;  %v2048_v26 = vpop.permute.xlu0 %2047 }
 0x282   : > { %v4618_v53 = vpack.c.bf16 %v2138_v48, %v2137_v59  ;;  %v1810_v29 = vadd.f32 %v1809_v32, %v1696_v60  ;;  %v2053_v59 = vpop.permute.xlu1 %2052 }
 0x283   : > { %v1506_v54 = vmul.f32 %v5694_v33, %v1281_v34 }
 0x284   : > { %4685 = vst [vmem:[#allocation6 + $0x58] sm:$0xff] %v4618_v53   ;;  %v1881_v50 = vadd.f32 %v5669_v36, %v1810_v29 }
 0x285   : > { %1539 = vst [vmem:[#allocation2 + $0x98] sm:$0xff] %v1506_v54  ;;  %1746 = vmatmul.f32.gmra.mxu2 %v1506_v54 }
 0x286   : > { %v1913_v40 = vmax.f32 %v1881_v50, 0.0  ;;  %v1824_v49 = vpop.f32.mrf.mxu3 }
 0x288   : > { %1947 = vst [vmem:[#allocation3 + $0x58] sm:$0xff] %v1913_v40  ;;  %v2139_v47 = vmul.f32 %v2038_v39, %v1913_v40 }
 0x289   : > { %v1699_v41 = vpop.f32.mrf.mxu2 }
 0x28a   : > { %v1813_v46 = vadd.f32 %v1812_v62, %v1699_v41 }
 0x28c   : > { %v1882_v35 = vadd.f32 %v5669_v36, %v1813_v46 }
 0x28e   : > { %v1914_v58 = vmax.f32 %v1882_v35, 0.0  ;;  %v1827_v45 = vpop.f32.mrf.mxu3  ;;  %v2058_v35 = vpop.permute.xlu2 %2057 }
 0x290   : > { %1948 = vst [vmem:[#allocation3 + $0x1e0] sm:$0xff] %v1914_v58  ;;  %v2140_v32 = vmul.f32 %v2043_v63, %v1914_v58  ;;  %v2063_v63 = vpop.permute.xlu0 %2062 }
 0x291   : > { %v1702_v33 = vpop.f32.mrf.mxu2 }
 0x292   : > { %v4623_v43 = vpack.c.bf16 %v2140_v32, %v2139_v47  ;;  %v1816_v61 = vadd.f32 %v1815_v51, %v1702_v33 }
 0x294   : > { %4686 = vst [vmem:[#allocation6 + $0x18] sm:$0xff] %v4623_v43   ;;  %v1883_v57 = vadd.f32 %v5669_v36, %v1816_v61 }
 0x296   : > { %v1915_v56 = vmax.f32 %v1883_v57, 0.0 }
 0x297   : > { %v1830_v51 = vpop.f32.mrf.mxu3 }
 0x298   : > { %1949 = vst [vmem:[#allocation3 + $0xe8] sm:$0xff] %v1915_v56  ;;  %v2141_v37 = vmul.f32 %v2048_v26, %v1915_v56 }
 0x299   : > { %v1705_v38 = vpop.f32.mrf.mxu2 }
 0x29a   : > { %v1819_v62 = vadd.f32 %v1818_v55, %v1705_v38 }
 0x29c   : > { %v1884_v52 = vadd.f32 %v5669_v36, %v1819_v62  ;;  %v2073_v62 = vpop.permute.xlu2 %2072 }
 0x29e   : > { %v1916_v42 = vmax.f32 %v1884_v52, 0.0  ;;  %v2068_v52 = vpop.permute.xlu1 %2067 }
 0x29f   : > { %v1833_v41 = vpop.f32.mrf.mxu3 }
 0x2a0   : > { %1950 = vst [vmem:[#allocation3 + $0x120] sm:$0xff] %v1916_v42  ;;  %v2142_v48 = vmul.f32 %v2053_v59, %v1916_v42 }
 0x2a1   : > { %v1708_v34 = vpop.f32.mrf.mxu2 }
 0x2a2   : > { %v4628_v60 = vpack.c.bf16 %v2142_v48, %v2141_v37  ;;  %v1822_v53 = vadd.f32 %v1821_v44, %v1708_v34 }
 0x2a4   : > { %4687 = vst [vmem:[#allocation6 + $0x78] sm:$0xff] %v4628_v60   ;;  %v1885_v29 = vadd.f32 %v5669_v36, %v1822_v53 }
 0x2a6   : > { %v1917_v54 = vmax.f32 %v1885_v29, 0.0 }
 0x2a7   : > { %v1836_v61 = vpop.f32.mrf.mxu3 }
 0x2a8   : > { %1951 = vst [vmem:[#allocation3 + $0x1f0] sm:$0xff] %v1917_v54  ;;  %v2143_v58 = vmul.f32 %v2058_v35, %v1917_v54 }
 0x2a9   : > { %v1711_v50 = vpop.f32.mrf.mxu2 }
 0x2aa   : > { %v1825_v40 = vadd.f32 %v1824_v49, %v1711_v50 }
 0x2ac   : > { %v1886_v55 = vadd.f32 %v5669_v36, %v1825_v40  ;;  %v2083_v40 = vpop.permute.xlu1 %2082 }
 0x2ae   : > { %v1918_v46 = vmax.f32 %v1886_v55, 0.0  ;;  %v2078_v55 = vpop.permute.xlu0 %2077 }
 0x2af   : > { %v1839_v37 = vpop.f32.mrf.mxu3 }
 0x2b0   : > { %1952 = vst [vmem:[#allocation3 + $0x108] sm:$0xff] %v1918_v46  ;;  %v2144_v39 = vmul.f32 %v2063_v63, %v1918_v46 }
 0x2b1   : > { %v1714_v47 = vpop.f32.mrf.mxu2 }
 0x2b2   : > { %v4633_v32 = vpack.c.bf16 %v2144_v39, %v2143_v58  ;;  %v1828_v44 = vadd.f32 %v1827_v45, %v1714_v47 }
 0x2b4   : > { %4688 = vst [vmem:[#allocation6 + $0x30] sm:$0xff] %v4633_v32   ;;  %v1887_v33 = vadd.f32 %v5669_v36, %v1828_v44 }
 0x2b6   : > { %v1919_v43 = vmax.f32 %v1887_v33, 0.0 }
 0x2b8   : > { %1953 = vst [vmem:[#allocation3 + $0x178] sm:$0xff] %v1919_v43  ;;  %v2145_v42 = vmul.f32 %v2068_v52, %v1919_v43 }
 0x2b9   : > { %v1717_v57 = vpop.f32.mrf.mxu2 }
 0x2ba   : > { %v1831_v49 = vadd.f32 %v1830_v51, %v1717_v57  ;;  %v1842_v51 = vpop.f32.mrf.mxu3 }
 0x2bc   : > { %v1888_v56 = vadd.f32 %v5669_v36, %v1831_v49  ;;  %v2093_v49 = vpop.permute.xlu0 %2092 }
 0x2be   : > { %v1920_v38 = vmax.f32 %v1888_v56, 0.0 }
 0x2c0   : > { %1954 = vst [vmem:[#allocation3 + $0x68] sm:$0xff] %v1920_v38  ;;  %v2146_v59 = vmul.f32 %v2073_v62, %v1920_v38 }
 0x2c1   : > { %v1720_v26 = vpop.f32.mrf.mxu2 }
 0x2c2   : > { %v4638_v48 = vpack.c.bf16 %v2146_v59, %v2145_v42  ;;  %v1834_v45 = vadd.f32 %v1833_v41, %v1720_v26  ;;  %v1845_v47 = vpop.f32.mrf.mxu3 }
 0x2c4   : > { %4689 = vst [vmem:[#allocation6 + $0x68] sm:$0xff] %v4638_v48   ;;  %v1889_v34 = vadd.f32 %v5669_v36, %v1834_v45 }
 0x2c6   : > { %v1921_v60 = vmax.f32 %v1889_v34, 0.0 }
 0x2c8   : > { %1955 = vst [vmem:[#allocation3 + $0x20] sm:$0xff] %v1921_v60  ;;  %v2147_v46 = vmul.f32 %v2078_v55, %v1921_v60 }
 0x2c9   : > { %v1723_v53 = vpop.f32.mrf.mxu2 }
 0x2ca   : > { %v1837_v29 = vadd.f32 %v1836_v61, %v1723_v53  ;;  %v2088_v61 = vpop.permute.xlu2 %2087  ;;  %v1848_v56 = vpop.f32.mrf.mxu3 }
 0x2cc   : > { %v1890_v54 = vadd.f32 %v5669_v36, %v1837_v29 }
 0x2ce   : > { %v1922_v50 = vmax.f32 %v1890_v54, 0.0 }
 0x2d0   : > { %1956 = vst [vmem:[#allocation3 + $0x48] sm:$0xff] %v1922_v50  ;;  %v2148_v35 = vmul.f32 %v2083_v40, %v1922_v50 }
 0x2d1   : > { %v1726_v63 = vpop.f32.mrf.mxu2 }
 0x2d2   : > { %v4643_v58 = vpack.c.bf16 %v2148_v35, %v2147_v46  ;;  %v1840_v39 = vadd.f32 %v1839_v37, %v1726_v63  ;;  %v1851_v45 = vpop.f32.mrf.mxu3  ;;  %v2103_v29 = vpop.permute.xlu2 %2102 }
 0x2d4   : > { %4690 = vst [vmem:[#allocation6 + $0x38] sm:$0xff] %v4643_v58   ;;  %v1891_v41 = vadd.f32 %v5669_v36, %v1840_v39 }
 0x2d6   : > { %v1923_v32 = vmax.f32 %v1891_v41, 0.0 }
 0x2d8   : > { %1957 = vst [vmem:[#allocation3 + $0xd0] sm:$0xff] %v1923_v32  ;;  %v2149_v38 = vmul.f32 %v2088_v61, %v1923_v32 }
 0x2d9   : > { %v1729_v44 = vpop.f32.mrf.mxu2 }
 0x2da   : > { %v1843_v33 = vadd.f32 %v1842_v51, %v1729_v44  ;;  %v2098_v51 = vpop.permute.xlu1 %2097  ;;  %v1854_v35 = vpop.f32.mrf.mxu3 }
 0x2dc   : > { %v1892_v43 = vadd.f32 %v5669_v36, %v1843_v33 }
 0x2de   : > { %v1924_v57 = vmax.f32 %v1892_v43, 0.0  ;;  %v2108_v43 = vpop.permute.xlu0 %2107 }
 0x2e0   : > { %1958 = vst [vmem:[#allocation3 + $0x1e8] sm:$0xff] %v1924_v57  ;;  %v2150_v62 = vmul.f32 %v2093_v49, %v1924_v57 }
 0x2e1   : > { %v1732_v52 = vpop.f32.mrf.mxu2 }
 0x2e2   : > { %v4648_v42 = vpack.c.bf16 %v2150_v62, %v2149_v38  ;;  %v1846_v59 = vadd.f32 %v1845_v47, %v1732_v52  ;;  %v1857_v32 = vpop.f32.mrf.mxu3  ;;  %v2113_v33 = vpop.permute.xlu1 %2112 }
 0x2e4   : > { %4691 = vst [vmem:[#allocation6 + $0x70] sm:$0xff] %v4648_v42   ;;  %v1893_v26 = vadd.f32 %v5669_v36, %v1846_v59 }
 0x2e6   : > { %v1925_v37 = vmax.f32 %v1893_v26, 0.0 }
 0x2e8   : > { %1959 = vst [vmem:[#allocation3] sm:$0xff] %v1925_v37  ;;  %v2151_v54 = vmul.f32 %v2098_v51, %v1925_v37 }
 0x2e9   : > { %v1735_v48 = vpop.f32.mrf.mxu2 }
 0x2ea   : > { %v1849_v34 = vadd.f32 %v1848_v56, %v1735_v48  ;;  %v1860_v42 = vpop.f32.mrf.mxu3 }
 0x2ec   : > { %v1894_v60 = vadd.f32 %v5669_v36, %v1849_v34  ;;  %v2123_v34 = vpop.permute.xlu0 %2122 }
 0x2ee   : > { %v1926_v53 = vmax.f32 %v1894_v60, 0.0 }
 0x2f0   : > { %1960 = vst [vmem:[#allocation3 + $0x88] sm:$0xff] %v1926_v53  ;;  %v2152_v50 = vmul.f32 %v2103_v29, %v1926_v53 }
 0x2f1   : > { %v1738_v40 = vpop.f32.mrf.mxu2 }
 0x2f2   : > { %v4653_v55 = vpack.c.bf16 %v2152_v50, %v2151_v54  ;;  %v1852_v46 = vadd.f32 %v1851_v45, %v1738_v40  ;;  %v2118_v45 = vpop.permute.xlu2 %2117 }
 0x2f4   : > { %4692 = vst [vmem:[#allocation6] sm:$0xff] %v4653_v55   ;;  %v1895_v63 = vadd.f32 %v5669_v36, %v1852_v46 }
 0x2f6   : > { %v1927_v58 = vmax.f32 %v1895_v63, 0.0 }
 0x2f8   : > { %1961 = vst [vmem:[#allocation3 + $0x1b0] sm:$0xff] %v1927_v58  ;;  %v2153_v61 = vmul.f32 %v2108_v43, %v1927_v58 }
 0x2f9   : > { %v1741_v39 = vpop.f32.mrf.mxu2 }
 0x2fa   : > { %v1855_v41 = vadd.f32 %v1854_v35, %v1741_v39 }
 0x2fc   : > { %v1896_v47 = vadd.f32 %v5669_v36, %v1855_v41 }
 0x2fe   : > { %v1928_v44 = vmax.f32 %v1896_v47, 0.0 }
 0x300   : > { %1962 = vst [vmem:[#allocation3 + $0x138] sm:$0xff] %v1928_v44  ;;  %v2154_v57 = vmul.f32 %v2113_v33, %v1928_v44 }
 0x301   : > { %v1744_v49 = vpop.f32.mrf.mxu2 }
 0x302   : > { %v4658_v56 = vpack.c.bf16 %v2154_v57, %v2153_v61  ;;  %v1858_v38 = vadd.f32 %v1857_v32, %v1744_v49 }
 0x304   : > { %4693 = vst [vmem:[#allocation6 + $0x28] sm:$0xff] %v4658_v56   ;;  %v1897_v62 = vadd.f32 %v5669_v36, %v1858_v38 }
 0x306   : > { %v1929_v52 = vmax.f32 %v1897_v62, 0.0 }
 0x308   : > { %1963 = vst [vmem:[#allocation3 + $0x148] sm:$0xff] %v1929_v52  ;;  %v2155_v60 = vmul.f32 %v2118_v45, %v1929_v52 }
 0x309   : > { %v1747_v59 = vpop.f32.mrf.mxu2 }
 0x30a   : > { %v1861_v26 = vadd.f32 %v1860_v42, %v1747_v59 }
 0x30c   : > { %v1898_v37 = vadd.f32 %v5669_v36, %v1861_v26 }
 0x30e   : > { %v1930_v48 = vmax.f32 %v1898_v37, 0.0 }
 0x310   : > { %1964 = vst [vmem:[#allocation3 + $0x8] sm:$0xff] %v1930_v48  ;;  %v2156_v53 = vmul.f32 %v2123_v34, %v1930_v48 }
 0x312   : > { %v4663_v29 = vpack.c.bf16 %v2156_v53, %v2155_v60 }
 0x314   : > { %4694 = vst [vmem:[#allocation6 + $0x50] sm:$0xff] %v4663_v29  }
 0x315 PF: > { %p4211_p6 = scmp.ne.s32.totalorder %s4780_s21, 1 }
 0x317   : > { %2226 = sbr.rel (%p4211_p6) target bundleno = 1538 (0x602), region = 80 }
 0x31c   : > { %v4496_v51 = vld [vmem:[#allocation6 + $0x18] sm:$0xff]  ;;  %v5765_v54 = vld [vmem:[#allocation6 + $0x50] sm:$0xff]  ;;  %v2730_v50 = vmul.f32 -1.0, %v4881_v0  ;;  %v4792_v40 = vmov 0   ;;  %v2732_v55 = vmul.f32 -1.0, %v4891_v2  ;;  %v5770_v46 = vld [vmem:[#allocation6 + $0x28] sm:$0xff] }
 0x31d   : > { %4761 = vset.pattern.permute.xlu0 %v4792_v40  ;;  %4762 = vset.pattern.permute.xlu1 %v4792_v40  ;;  %v4495_v36 = vld [vmem:[#allocation6 + $0x58] sm:$0xff]  ;;  %v4494_v35 = vld [vmem:[#allocation6 + $0x60] sm:$0xff]  ;;  %v2731_v63 = vmul.f32 -1.0, %v4886_v1  ;;  %v2733_v58 = vmul.f32 -1.0, %v4897_v3  ;;  %v4493_v2 = vld [vmem:[#allocation6 + $0x10] sm:$0xff]  ;;  %v2736_v32 = vmul.f32 -1.0, %v4912_v6 }
 0x31e   : > { %2552 = vmatpush.bf16.msra.mxu0 %v4496_v51  ;;  %4695 = vmatpush.bf16.msra.mxu3 %v4496_v51  ;;  %v4502_v0 = vld [vmem:[#allocation6] sm:$0xff]  ;;  %v4501_v39 = vld [vmem:[#allocation6 + $0x70] sm:$0xff]  ;;  %v4492_v41 = vld [vmem:[#allocation6 + $0x8] sm:$0xff]  ;;  %v2737_v1 = vmul.f32 -1.0, %v4917_v7  ;;  %v2739_v61 = vmul.f32 -1.0, %v4927_v9  ;;  %v2740_v57 = vmul.f32 -1.0, %v4932_v10 }
 0x31f   : > { %2641 = vmatpush.bf16.msra.mxu1 %v5765_v54  ;;  %2764 = vperm.xlu0 %4761, %v2730_v50   ;;  %v4500_v47 = vld [vmem:[#allocation6 + $0x38] sm:$0xff]  ;;  %v4491_v44 = vld [vmem:[#allocation6 + $0x20] sm:$0xff]  ;;  %v4499_v3 = vld [vmem:[#allocation6 + $0x68] sm:$0xff]  ;;  %v2742_v26 = vmul.f32 -1.0, %v4942_v12  ;;  %v2743_v37 = vmul.f32 -1.0, %v4947_v13  ;;  %v2745_v48 = vmul.f32 -1.0, %v4957_v15 }
 0x320   : > { %2774 = vperm.xlu1 %4762, %v2732_v55   ;;  %4763 = vset.pattern.permute.xlu2 %v4792_v40  ;;  %v4490_v33 = vld [vmem:[#allocation6 + $0x48] sm:$0xff]  ;;  %v4498_v43 = vld [vmem:[#allocation6 + $0x30] sm:$0xff]  ;;  %v4489_v49 = vld [vmem:[#allocation6 + $0x40] sm:$0xff]  ;;  %v2746_v45 = vmul.f32 -1.0, %v4962_v16  ;;  %v2734_v50 = vmul.f32 -1.0, %v4902_v4  ;;  %v2749_v40 = vmul.f32 -1.0, %v4977_v19 }
 0x321   : > { %v4214_v6 = vld [vmem:[%s6812_s0] sm:$0xf]  ;;  %v4458_v7 = vld [vmem:[%s6812_s0 + $0x4] sm:$0xf0]  ;;  %v4497_v10 = vld [vmem:[#allocation6 + $0x78] sm:$0xff]  ;;  %v2735_v55 = vmul.f32 -1.0, %v4907_v5 }
 0x322   : > { %2553 = vmatpush.bf16.msra.mxu0 %v4495_v36  ;;  %4696 = vmatpush.bf16.msra.mxu3 %v4495_v36  ;;  %v4310_v56 = vld [vmem:[%s6812_s0 + $0xc0] sm:$0xf]  ;;  %v4482_v9 = vld [vmem:[%s6812_s0 + $0xc4] sm:$0xf0]  ;;  %v4457_v38 = vld [vmem:[%s6812_s0 + $0x4] sm:$0xf]  ;;  %v4215_v52 = vor.u32 %v4458_v7, %v4214_v6 }
 0x323   : > { %2642 = vmatpush.bf16.msra.mxu1 %v5770_v46  ;;  %v4216_v62 = vld [vmem:[%s6812_s0 + $0x8] sm:$0xf0]  ;;  %v4311_v42 = vor.u32 %v4482_v9, %v4310_v56  ;;  %v4222_v34 = vld [vmem:[%s6812_s0 + $0x10] sm:$0xf]  ;;  %v4460_v12 = vld [vmem:[%s6812_s0 + $0x14] sm:$0xf0]  ;;  %2784 = vperm.xlu2 %4763, %v2734_v50  }
 0x324   : > { %v4219_v59 = vor.u32 %v4457_v38, %v4216_v62  ;;  %v4318_v13 = vld [vmem:[%s6812_s0 + $0xd0] sm:$0xf]  ;;  %v4484_v60 = vld [vmem:[%s6812_s0 + $0xd4] sm:$0xf0]  ;;  %v4459_v15 = vld [vmem:[%s6812_s0 + $0x14] sm:$0xf]  ;;  %v4223_v53 = vor.u32 %v4460_v12, %v4222_v34 }
 0x325   : > { %v4224_v16 = vld [vmem:[%s6812_s0 + $0x18] sm:$0xf0]  ;;  %v4319_v29 = vor.u32 %v4484_v60, %v4318_v13  ;;  %v2751_v36 = vmul.f32 -1.0, %v4987_v21  ;;  %v4462_v4 = vld [vmem:[%s6812_s0 + $0x24] sm:$0xf0]  ;;  %v2744_v7 = vmul.f32 -1.0, %v4952_v14 }
 0x326   : > { %2554 = vmatpush.bf16.msra.mxu0 %v4494_v35  ;;  %4697 = vmatpush.bf16.msra.mxu3 %v4494_v35  ;;  %v4227_v51 = vor.u32 %v4459_v15, %v4224_v16  ;;  %v4326_v19 = vld [vmem:[%s6812_s0 + $0xe0] sm:$0xf]  ;;  %v4486_v21 = vld [vmem:[%s6812_s0 + $0xe4] sm:$0xf0]  ;;  %v4461_v5 = vld [vmem:[%s6812_s0 + $0x24] sm:$0xf] }
 0x327   : > { %2643 = vmatpush.bf16.msra.mxu1 %v4502_v0  ;;  %2769 = vperm.xlu0 %4761, %v2731_v63   ;;  %v3063_v6 = vld [vmem:[%s6818_s6 + $0x58] sm:$0xff]  ;;  %v2761_v56 = vmul.f32 -1.0, %v5037_v31  ;;  %v3062_v9 = vld [vmem:[%s6818_s6 + $0x50] sm:$0xff]  ;;  %v3060_v14 = vld [vmem:[%s6818_s6 + $0x40] sm:$0xff]  ;;  %v2747_v31 = vmul.f32 -1.0, %v4967_v17 }
 0x328   : > { %2779 = vperm.xlu1 %4762, %v2733_v58   ;;  %v2754_v58 = vmul.f32 -1.0, %v5002_v24  ;;  %v3065_v24 = vld [vmem:[%s6818_s6 + $0x68] sm:$0xff]  ;;  %v4481_v62 = vld [vmem:[%s6812_s0 + $0xc4] sm:$0xf]  ;;  %v3058_v34 = vld [vmem:[%s6818_s6 + $0x30] sm:$0xff] }
 0x329   : > { %v4466_v38 = vld [vmem:[%s6812_s0 + $0x44] sm:$0xf0]  ;;  %v4465_v17 = vld [vmem:[%s6812_s0 + $0x44] sm:$0xf]  ;;  %v4254_v60 = vld [vmem:[%s6812_s0 + $0x50] sm:$0xf] }
 0x32a   : > { %2555 = vmatpush.bf16.msra.mxu0 %v4493_v2  ;;  %4698 = vmatpush.bf16.msra.mxu3 %v4493_v2  ;;  %v3067_v2 = vld [vmem:[%s6818_s6 + $0x78] sm:$0xff]  ;;  %v3057_v12 = vld [vmem:[%s6818_s6 + $0x28] sm:$0xff]  ;;  %v3056_v13 = vld [vmem:[%s6818_s6 + $0x20] sm:$0xff] }
 0x32b   : > { %2644 = vmatpush.bf16.msra.mxu1 %v4501_v39  ;;  %2789 = vperm.xlu2 %4763, %v2735_v55   ;;  %v4468_v15 = vld [vmem:[%s6812_s0 + $0x54] sm:$0xf0]  ;;  %v4483_v16 = vld [vmem:[%s6812_s0 + $0xd4] sm:$0xf] }
 0x32c   : > { %3088 = vmatpush.msra.mxu2 %v3067_v2 }
 0x32e   : > { %2556 = vmatpush.bf16.msra.mxu0 %v4492_v41  ;;  %4699 = vmatpush.bf16.msra.mxu3 %v4492_v41  ;;  %v2755_v41 = vmul.f32 -1.0, %v5007_v25  ;;  %v2757_v25 = vmul.f32 -1.0, %v5017_v27  ;;  %v4334_v27 = vld [vmem:[%s6812_s0 + $0xf0] sm:$0xf] }
 0x32f   : > { %2645 = vmatpush.bf16.msra.mxu1 %v4500_v47  ;;  %2794 = vperm.xlu0 %4761, %v2736_v32   ;;  %v2741_v32 = vmul.f32 -1.0, %v4937_v11  ;;  %v4488_v11 = vld [vmem:[%s6812_s0 + $0xf4] sm:$0xf0] }
 0x330   : > { %2799 = vperm.xlu1 %4762, %v2737_v1   ;;  %v4238_v1 = vld [vmem:[%s6812_s0 + $0x30] sm:$0xf] }
 0x332   : > { %2557 = vmatpush.bf16.msra.mxu0 %v4491_v44  ;;  %4700 = vmatpush.bf16.msra.mxu3 %v4491_v44  ;;  %v2758_v44 = vmul.f32 -1.0, %v5022_v28  ;;  %v4463_v28 = vld [vmem:[%s6812_s0 + $0x34] sm:$0xf] }
 0x333   : > { %2646 = vmatpush.bf16.msra.mxu1 %v4499_v3 }
 0x336   : > { %2558 = vmatpush.bf16.msra.mxu0 %v4490_v33  ;;  %4701 = vmatpush.bf16.msra.mxu3 %v4490_v33  ;;  %v4240_v33 = vld [vmem:[%s6812_s0 + $0x38] sm:$0xf0] }
 0x337   : > { %2647 = vmatpush.bf16.msra.mxu1 %v4498_v43  ;;  %2809 = vperm.xlu0 %4761, %v2739_v61   ;;  %v4335_v61 = vor.u32 %v4488_v11, %v4334_v27  ;;  %v4471_v27 = vld [vmem:[%s6812_s0 + $0x74] sm:$0xf]  ;;  %v4272_v11 = vld [vmem:[%s6812_s0 + $0x78] sm:$0xf0] }
 0x338   : > { %2814 = vperm.xlu1 %4762, %v2740_v57   ;;  %v4243_v57 = vor.u32 %v4463_v28, %v4240_v33  ;;  %v3081_v28 = vld [vmem:[%s6818_s6 + $0xe8] sm:$0xff]  ;;  %v3443_v33 = vld [vmem:[%s6821_s9 + $0x78] sm:$0xff] }
 0x33a   : > { %2559 = vmatpush.bf16.msra.mxu0 %v4489_v49  ;;  %4702 = vmatpush.bf16.msra.mxu3 %v4489_v49  ;;  %v2760_v49 = vmul.f32 -1.0, %v5032_v30  ;;  %v3061_v30 = vld [vmem:[%s6818_s6 + $0x48] sm:$0xff] }
 0x33b   : > { %2648 = vmatpush.bf16.msra.mxu1 %v4497_v10 }
 0x33d   : > { %2560 = vmatmul.bf16.vlgmr.msra.gmra.mxu0 %v4215_v52  ;;  %2620 = vmatmul.bf16.vlgmr.msra.gmra.mxu3 %v4311_v42  ;;  %v4312_v52 = vld [vmem:[%s6812_s0 + $0xc8] sm:$0xf0] }
 0x33e   : > { %4703 = vmatpush.bf16.msrb.mxu3 %v5765_v54  ;;  %2649 = vmatmul.bf16.vlgmr.msra.gmra.mxu1 %v4219_v59  ;;  %v2748_v54 = vmul.f32 -1.0, %v4972_v18  ;;  %v4230_v18 = vld [vmem:[%s6812_s0 + $0x20] sm:$0xf]  ;;  %v4248_v42 = vld [vmem:[%s6812_s0 + $0x48] sm:$0xf0] }
 0x33f   : > { %2824 = vperm.xlu0 %4761, %v2742_v26   ;;  %v4231_v35 = vor.u32 %v4462_v4, %v4230_v18  ;;  %v4315_v26 = vor.u32 %v4481_v62, %v4312_v52  ;;  %v3053_v18 = vld [vmem:[%s6818_s6 + $0x8] sm:$0xff]  ;;  %v3052_v4 = vld [vmem:[%s6818_s6] sm:$0xff]  ;;  %3444 = vmatpush.msrb.mxu0 %v3443_v33 }
 0x340   : > { %2829 = vperm.xlu1 %4762, %v2743_v37   ;;  %v4251_v37 = vor.u32 %v4465_v17, %v4248_v42  ;;  %v4278_v62 = vld [vmem:[%s6812_s0 + $0x80] sm:$0xf]  ;;  %v4474_v52 = vld [vmem:[%s6812_s0 + $0x84] sm:$0xf0]  ;;  %v4473_v17 = vld [vmem:[%s6812_s0 + $0x84] sm:$0xf] }
 0x341   : > { %v4280_v42 = vld [vmem:[%s6812_s0 + $0x88] sm:$0xf0] }
 0x342   : > { %4704 = vmatpush.bf16.msrb.mxu3 %v5770_v46  ;;  %v2752_v46 = vmul.f32 -1.0, %v4992_v22  ;;  %v4232_v22 = vld [vmem:[%s6812_s0 + $0x28] sm:$0xf0] }
 0x343   : > { %v4235_v63 = vor.u32 %v4461_v5, %v4232_v22  ;;  %v4262_v5 = vld [vmem:[%s6812_s0 + $0x60] sm:$0xf]  ;;  %v4470_v22 = vld [vmem:[%s6812_s0 + $0x64] sm:$0xf0] }
 0x346   : > { %4705 = vmatpush.bf16.msrb.mxu3 %v4502_v0  ;;  %v4327_v0 = vor.u32 %v4486_v21, %v4326_v19  ;;  %v6830_v19 = vld [vmem:[#allocation8_spill] sm:$0xff] }
 0x347   : > { %2839 = vperm.xlu0 %4761, %v2745_v48   ;;  %v3059_v48 = vld [vmem:[%s6818_s6 + $0x38] sm:$0xff]  ;;  %v2759_v21 = vmul.f32 -1.0, %v6830_v19 }
 0x348   : > { %2844 = vperm.xlu1 %4762, %v2746_v45   ;;  %v2750_v45 = vmul.f32 -1.0, %v4982_v20  ;;  %v2753_v20 = vmul.f32 -1.0, %v4997_v23  ;;  %v4467_v23 = vld [vmem:[%s6812_s0 + $0x54] sm:$0xf] }
 0x34a   : > { %4706 = vmatpush.bf16.msrb.mxu3 %v4501_v39  ;;  %v2738_v39 = vmul.f32 -1.0, %v4922_v8  ;;  %v3064_v8 = vld [vmem:[%s6818_s6 + $0x60] sm:$0xff] }
 0x34c   : > { %2804 = vperm.xlu2 %4763, %v2738_v39  }
 0x34d   : > { %2565 = vmatmul.bf16.gmra.mxu0 %v4223_v53  ;;  %2625 = vmatmul.bf16.gmra.mxu3 %v4319_v29  ;;  %v4320_v53 = vld [vmem:[%s6812_s0 + $0xd8] sm:$0xf0] }
 0x34e   : > { %4707 = vmatpush.bf16.msrb.mxu3 %v4500_v47  ;;  %2654 = vmatmul.bf16.gmra.mxu1 %v4227_v51  ;;  %v3066_v47 = vld [vmem:[%s6818_s6 + $0x70] sm:$0xff]  ;;  %v4256_v29 = vld [vmem:[%s6812_s0 + $0x58] sm:$0xf0]  ;;  %v4255_v51 = vor.u32 %v4468_v15, %v4254_v60 }
 0x34f   : > { %2854 = vperm.xlu0 %4761, %v2748_v54   ;;  %3089 = vmatpush.msra.mxu2 %v3066_v47  ;;  %v4323_v54 = vor.u32 %v4483_v16, %v4320_v53  ;;  %v4259_v50 = vor.u32 %v4467_v23, %v4256_v29 }
 0x350   : > { %2859 = vperm.xlu1 %4762, %v2749_v40   ;;  %v3055_v40 = vld [vmem:[%s6818_s6 + $0x18] sm:$0xff] }
 0x351   : > { %3090 = vmatpush.msra.mxu2 %v3065_v24 }
 0x352   : > { %4708 = vmatpush.bf16.msrb.mxu3 %v4499_v3  ;;  %v4464_v3 = vld [vmem:[%s6812_s0 + $0x34] sm:$0xf0] }
 0x353   : > { %3091 = vmatpush.msra.mxu2 %v3064_v8 }
 0x354   : > { %2819 = vperm.xlu2 %4763, %v2741_v32   ;;  %v4270_v32 = vld [vmem:[%s6812_s0 + $0x70] sm:$0xf] }
 0x355   : > { %3092 = vmatpush.msra.mxu2 %v3063_v6 }
 0x356   : > { %4709 = vmatpush.bf16.msrb.mxu3 %v4498_v43  ;;  %v4239_v43 = vor.u32 %v4464_v3, %v4238_v1  ;;  %v4487_v1 = vld [vmem:[%s6812_s0 + $0xf4] sm:$0xf]  ;;  %v4336_v3 = vld [vmem:[%s6812_s0 + $0xf8] sm:$0xf0] }
 0x357   : > { %2869 = vperm.xlu0 %4761, %v2751_v36   ;;  %3093 = vmatpush.msra.mxu2 %v3062_v9  ;;  %v6829_v36 = vld [vmem:[#allocation7_spill] sm:$0xff] }
 0x358   : > { %2874 = vperm.xlu1 %4762, %v2752_v46   ;;  %v2756_v55 = vmul.f32 -1.0, %v6829_v36  ;;  %v3054_v46 = vld [vmem:[%s6818_s6 + $0x10] sm:$0xff] }
 0x359   : > { %3094 = vmatpush.msra.mxu2 %v3061_v30  ;;  %v3074_v36 = vld [vmem:[%s6818_s6 + $0xb0] sm:$0xff] }
 0x35a   : > { %4710 = vmatpush.bf16.msrb.mxu3 %v4497_v10  ;;  %v4246_v10 = vld [vmem:[%s6812_s0 + $0x40] sm:$0xf] }
 0x35b   : > { %3095 = vmatpush.msra.mxu2 %v3060_v14  ;;  %v4247_v59 = vor.u32 %v4466_v38, %v4246_v10  ;;  %v3393_v10 = vld [vmem:[%s6820_s8 + $0x70] sm:$0xff] }
 0x35c   : > { %2834 = vperm.xlu2 %4763, %v2744_v7   ;;  %v4275_v7 = vor.u32 %v4471_v27, %v4272_v11 }
 0x35d   : > { %2570 = vmatmul.bf16.gmra.mxu0 %v4231_v35  ;;  %2630 = vmatmul.bf16.gmra.mxu3 %v4327_v0  ;;  %v4485_v35 = vld [vmem:[%s6812_s0 + $0xe4] sm:$0xf]  ;;  %v4328_v0 = vld [vmem:[%s6812_s0 + $0xe8] sm:$0xf0] }
 0x35e   : > { %2659 = vmatmul.bf16.gmra.mxu1 %v4235_v63  ;;  %4711 = vmatpush.msra.mxu3 %v3067_v2  ;;  %v4469_v63 = vld [vmem:[%s6812_s0 + $0x64] sm:$0xf]  ;;  %v4263_v2 = vor.u32 %v4470_v22, %v4262_v5  ;;  %v4331_v39 = vor.u32 %v4485_v35, %v4328_v0  ;;  %v4286_v22 = vld [vmem:[%s6812_s0 + $0x90] sm:$0xf]  ;;  %v4476_v35 = vld [vmem:[%s6812_s0 + $0x94] sm:$0xf0] }
 0x35f   : > { %2884 = vperm.xlu0 %4761, %v2754_v58   ;;  %3096 = vmatpush.msra.mxu2 %v3059_v48  ;;  %v4264_v58 = vld [vmem:[%s6812_s0 + $0x68] sm:$0xf0]  ;;  %v4475_v0 = vld [vmem:[%s6812_s0 + $0x94] sm:$0xf] }
 0x360   : > { %2889 = vperm.xlu1 %4762, %v2755_v41   ;;  %4712 = vmatpush.msra.mxu3 %v3066_v47  ;;  %v4267_v41 = vor.u32 %v4469_v63, %v4264_v58  ;;  %v3083_v47 = vld [vmem:[%s6818_s6 + $0xf8] sm:$0xff] }
 0x361   : > { %3097 = vmatpush.msra.mxu2 %v3058_v34  ;;  %v4288_v63 = vld [vmem:[%s6812_s0 + $0x98] sm:$0xf0] }
 0x362   : > { %4713 = vmatpush.msra.mxu3 %v3065_v24  ;;  %v2988_v24 = vld [vmem:[#allocation3 + $0x100] sm:$0xff] }
 0x363   : > { %3098 = vmatpush.msra.mxu2 %v3057_v12 }
 0x364   : > { %4714 = vmatpush.msra.mxu3 %v3064_v8  ;;  %2849 = vperm.xlu2 %4763, %v2747_v31   ;;  %v3082_v8 = vld [vmem:[%s6818_s6 + $0xf0] sm:$0xff] }
 0x365   : > { %3099 = vmatpush.msra.mxu2 %v3056_v13  ;;  %v3442_v31 = vld [vmem:[%s6821_s9 + $0x70] sm:$0xff] }
 0x366   : > { %4715 = vmatpush.msra.mxu3 %v3063_v6  ;;  %v3080_v6 = vld [vmem:[%s6818_s6 + $0xe0] sm:$0xff]  ;;  %3445 = vmatpush.msrb.mxu0 %v3442_v31 }
 0x367   : > { %2899 = vperm.xlu0 %4761, %v2757_v25   ;;  %3100 = vmatpush.msra.mxu2 %v3055_v40  ;;  %v3718_v25 = vld [vmem:[%s6822_s10 + $0x78] sm:$0xff] }
 0x368   : > { %2904 = vperm.xlu1 %4762, %v2758_v44   ;;  %4716 = vmatpush.msra.mxu3 %v3062_v9  ;;  %v4472_v44 = vld [vmem:[%s6812_s0 + $0x74] sm:$0xf0]  ;;  %v3717_v9 = vld [vmem:[%s6822_s10 + $0x70] sm:$0xff] }
 0x369   : > { %3101 = vmatpush.msra.mxu2 %v3054_v46 }
 0x36a   : > { %4717 = vmatpush.msra.mxu3 %v3061_v30  ;;  %v2992_v30 = vld [vmem:[#allocation3 + $0x1d8] sm:$0xff] }
 0x36b   : > { %3102 = vmatpush.msra.mxu2 %v3053_v18 }
 0x36c   : > { %4718 = vmatpush.msra.mxu3 %v3060_v14  ;;  %2864 = vperm.xlu2 %4763, %v2750_v45   ;;  %v3078_v14 = vld [vmem:[%s6818_s6 + $0xd0] sm:$0xff]  ;;  %v3716_v45 = vld [vmem:[%s6822_s10 + $0x68] sm:$0xff] }
 0x36d   : > { %2575 = vmatmul.bf16.gmra.mxu0 %v4239_v43  ;;  %2635 = vmatmul.bf16.gmra.mxu3 %v4335_v61  ;;  %v3394_v43 = vld [vmem:[%s6820_s8 + $0x78] sm:$0xff]  ;;  %v4271_v61 = vor.u32 %v4472_v44, %v4270_v32  ;;  %v4291_v44 = vor.u32 %v4475_v0, %v4288_v63  ;;  %v3389_v0 = vld [vmem:[%s6820_s8 + $0x50] sm:$0xff] }
 0x36e   : > { %2664 = vmatmul.bf16.gmra.mxu1 %v4243_v57  ;;  %4719 = vmatpush.msra.mxu3 %v3059_v48  ;;  %v4339_v57 = vor.u32 %v4487_v1, %v4336_v3  ;;  %v4279_v48 = vor.u32 %v4474_v52, %v4278_v62  ;;  %v3040_v1 = vld [vmem:[#allocation3] sm:$0xff]  ;;  %v4478_v62 = vld [vmem:[%s6812_s0 + $0xa4] sm:$0xf0] }
 0x36f   : > { %2914 = vperm.xlu0 %4761, %v2760_v49   ;;  %3103 = vmatpush.msra.mxu2 %v3052_v4  ;;  %v2990_v49 = vld [vmem:[#allocation3 + $0x190] sm:$0xff]  ;;  %v4477_v52 = vld [vmem:[%s6812_s0 + $0xa4] sm:$0xf] }
 0x370   : > { %2919 = vperm.xlu1 %4762, %v2761_v56   ;;  %4720 = vmatpush.msra.mxu3 %v3058_v34  ;;  %v3079_v56 = vld [vmem:[%s6818_s6 + $0xd8] sm:$0xff] }
 0x371   : > { %3104 = vmatmul.f32.vlgmr.msra.gmra.mxu2 %v2988_v24  ;;  %3557 = vmatpush.msrb.mxu1 %v3394_v43  ;;  %v3072_v24 = vld [vmem:[%s6818_s6 + $0xa0] sm:$0xff] }
 0x372   : > { %4721 = vmatpush.msra.mxu3 %v3057_v12  ;;  %3719 = vmatpush.msrb.mxu2 %v3718_v25  ;;  %v3391_v25 = vld [vmem:[%s6820_s8 + $0x60] sm:$0xff] }
 0x373   : > { %3558 = vmatpush.msrb.mxu1 %v3393_v10 }
 0x374   : > { %4722 = vmatpush.msra.mxu3 %v3056_v13  ;;  %2879 = vperm.xlu2 %4763, %v2753_v20   ;;  %v4283_v13 = vor.u32 %v4473_v17, %v4280_v42  ;;  %v3036_v20 = vld [vmem:[#allocation3 + $0xd0] sm:$0xff]  ;;  %v4296_v17 = vld [vmem:[%s6812_s0 + $0xa8] sm:$0xf0] }
 0x375   : > { %3720 = vmatpush.msrb.mxu2 %v3717_v9  ;;  %v3042_v9 = vld [vmem:[#allocation3 + $0x88] sm:$0xff] }
 0x376   : > { %4723 = vmatpush.msra.mxu3 %v3055_v40  ;;  %v2996_v40 = vld [vmem:[#allocation3 + $0x10] sm:$0xff] }
 0x377   : > { %3721 = vmatpush.msrb.mxu2 %v3716_v45 }
 0x378   : > { %4724 = vmatpush.msra.mxu3 %v3054_v46  ;;  %v3038_v46 = vld [vmem:[#allocation3 + $0x1e8] sm:$0xff] }
 0x379   : > { %3107 = vmatmul.f32.gmra.mxu2 %v2990_v49  ;;  %v3000_v49 = vld [vmem:[#allocation3 + $0xb8] sm:$0xff] }
 0x37a   : > { %4725 = vmatpush.msra.mxu3 %v3053_v18 }
 0x37c   : > { %2894 = vperm.xlu2 %4763, %v2756_v55   ;;  %4726 = vmatpush.msra.mxu3 %v3052_v4 }
 0x37d   : > { %2580 = vmatmul.bf16.gmra.mxu0 %v4247_v59  ;;  %2709 = vmatmul.bf16.vlgmr.msrb.gmra.mxu3 %v4315_v26  ;;  %v3077_v59 = vld [vmem:[%s6818_s6 + $0xc8] sm:$0xff]  ;;  %v2994_v26 = vld [vmem:[#allocation3 + $0xf8] sm:$0xff]  ;;  %v6058_v29 = vpop.permute.xlu2 %2784 }
 0x37e   : > { %2669 = vmatmul.bf16.gmra.mxu1 %v4251_v37  ;;  %3201 = vmatpush.msrb.mxu3 %v3083_v47  ;;  %v3076_v37 = vld [vmem:[%s6818_s6 + $0xc0] sm:$0xff]  ;;  %v4287_v47 = vor.u32 %v4476_v35, %v4286_v22  ;;  %v3438_v35 = vld [vmem:[%s6821_s9 + $0x50] sm:$0xff] }
 0x380   : > { %3202 = vmatpush.msrb.mxu3 %v3082_v8  ;;  %v3440_v8 = vld [vmem:[%s6821_s9 + $0x60] sm:$0xff] }
 0x381   : > { %3110 = vmatmul.f32.gmra.mxu2 %v2992_v30 }
 0x382   : > { %3203 = vmatpush.msrb.mxu3 %v3081_v28 }
 0x384   : > { %2909 = vperm.xlu2 %4763, %v2759_v21   ;;  %3204 = vmatpush.msrb.mxu3 %v3080_v6  ;;  %v3070_v6 = vld [vmem:[%s6818_s6 + $0x90] sm:$0xff] }
 0x385   : > { %v6105_v3 = vpop.permute.xlu2 %2789 }
 0x386   : > { %3205 = vmatpush.msrb.mxu3 %v3079_v56 }
 0x388   : > { %3206 = vmatpush.msrb.mxu3 %v3078_v14 }
 0x389   : > { %3113 = vmatmul.f32.gmra.mxu2 %v2994_v26  ;;  %v3069_v26 = vld [vmem:[%s6818_s6 + $0x88] sm:$0xff] }
 0x38a   : > { %3207 = vmatpush.msrb.mxu3 %v3077_v59 }
 0x38c   : > { %3208 = vmatpush.msrb.mxu3 %v3076_v37  ;;  %v3439_v37 = vld [vmem:[%s6821_s9 + $0x58] sm:$0xff] }
 0x38d   : > { %2585 = vmatmul.bf16.gmra.mxu0 %v4255_v51  ;;  %2714 = vmatmul.bf16.gmra.mxu3 %v4323_v54  ;;  %v3075_v51 = vld [vmem:[%s6818_s6 + $0xb8] sm:$0xff]  ;;  %v3441_v54 = vld [vmem:[%s6821_s9 + $0x68] sm:$0xff] }
 0x38e   : > { %2674 = vmatmul.bf16.gmra.mxu1 %v4259_v50  ;;  %v3392_v50 = vld [vmem:[%s6820_s8 + $0x68] sm:$0xff]  ;;  %3209 = vmatpush.msrb.mxu3 %v3075_v51 }
 0x38f   : > { %3446 = vmatpush.msrb.mxu0 %v3441_v54  ;;  %3559 = vmatpush.msrb.mxu1 %v3392_v50 }
 0x390   : > { %3210 = vmatpush.msrb.mxu3 %v3074_v36  ;;  %v3713_v36 = vld [vmem:[%s6822_s10 + $0x50] sm:$0xff] }
 0x391   : > { %v2765_v38 = vpop.permute.xlu0 %2764  ;;  %3116 = vmatmul.f32.gmra.mxu2 %v2996_v40  ;;  %3447 = vmatpush.msrb.mxu0 %v3440_v8 }
 0x392   : > { %v2775_v34 = vpop.permute.xlu1 %2774  ;;  %3560 = vmatpush.msrb.mxu1 %v3391_v25 }
 0x393   : > { %3448 = vmatpush.msrb.mxu0 %v3439_v37 }
 0x395   : > { %3449 = vmatpush.msrb.mxu0 %v3438_v35 }
 0x399   : > { %v2770_v15 = vpop.permute.xlu0 %2769 }
 0x39a   : > { %v2780_v4 = vpop.permute.xlu1 %2779 }
 0x39d   : > { %2590 = vmatmul.bf16.gmra.mxu0 %v4263_v2  ;;  %2719 = vmatmul.bf16.gmra.mxu3 %v4331_v39  ;;  %v3073_v2 = vld [vmem:[%s6818_s6 + $0xa8] sm:$0xff]  ;;  %v3715_v39 = vld [vmem:[%s6822_s10 + $0x60] sm:$0xff] }
 0x39e   : > { %2679 = vmatmul.bf16.gmra.mxu1 %v4267_v41  ;;  %v2998_v41 = vld [vmem:[#allocation3 + $0x128] sm:$0xff]  ;;  %3211 = vmatpush.msrb.mxu3 %v3073_v2  ;;  %v4302_v2 = vld [vmem:[%s6812_s0 + $0xb0] sm:$0xf] }
 0x39f   : > { %3722 = vmatpush.msrb.mxu2 %v3715_v39  ;;  %v4480_v39 = vld [vmem:[%s6812_s0 + $0xb4] sm:$0xf0] }
 0x3a0   : > { %3119 = vmatmul.f32.gmra.mxu2 %v2998_v41  ;;  %3212 = vmatpush.msrb.mxu3 %v3072_v24  ;;  %v4479_v41 = vld [vmem:[%s6812_s0 + $0xb4] sm:$0xf]  ;;  %v4303_v25 = vor.u32 %v4480_v39, %v4302_v2 }
 0x3a1   : > { %v6072_v21 = vpop.permute.xlu0 %2794 }
 0x3a2   : > { %v6107_v28 = vpop.permute.xlu1 %2799 }
 0x3a6   : > { %v6124_v31 = vpop.permute.xlu2 %2804 }
 0x3a8   : > { %3122 = vmatmul.f32.gmra.mxu2 %v3000_v49  ;;  %v3712_v49 = vld [vmem:[%s6822_s10 + $0x48] sm:$0xff] }
 0x3a9   : > { %v6111_v43 = vpop.permute.xlu0 %2809 }
 0x3aa   : > { %v6140_v42 = vpop.permute.xlu1 %2814 }
 0x3ad   : > { %2595 = vmatmul.bf16.gmra.mxu0 %v4271_v61  ;;  %2724 = vmatmul.bf16.gmra.mxu3 %v4339_v57  ;;  %v3071_v57 = vld [vmem:[%s6818_s6 + $0x98] sm:$0xff] }
 0x3ae   : > { %2684 = vmatmul.bf16.gmra.mxu1 %v4275_v7  ;;  %3213 = vmatpush.msrb.mxu3 %v3071_v57  ;;  %v3714_v7 = vld [vmem:[%s6822_s10 + $0x58] sm:$0xff]  ;;  %v6161_v50 = vpop.permute.xlu2 %2819 }
 0x3af   : > { %3723 = vmatpush.msrb.mxu2 %v3714_v7 }
 0x3b0   : > { %3214 = vmatpush.msrb.mxu3 %v3070_v6 }
 0x3b1   : > { %3724 = vmatpush.msrb.mxu2 %v3713_v36 }
 0x3b2   : > { %3215 = vmatpush.msrb.mxu3 %v3069_v26 }
 0x3b3   : > { %3725 = vmatpush.msrb.mxu2 %v3712_v49 }
 0x3b6   : > { %v6195_v8 = vpop.permute.xlu2 %2834 }
 0x3ba   : > { %v2561_v12 = vpop.f32.mrf.mxu0 }
 0x3bb   : > { %v2650_v60 = vpop.f32.mrf.mxu1 }
 0x3bc   : > { %v2651_v16 = vadd.f32 %v2650_v60, %v2561_v12  ;;  %v3068_v12 = vld [vmem:[%s6818_s6 + $0x80] sm:$0xff]  ;;  %v4299_v60 = vor.u32 %v4477_v52, %v4296_v17 }
 0x3bd   : > { %2600 = vmatmul.bf16.gmra.mxu0 %v4279_v48  ;;  %3176 = vmatmul.f32.vlgmr.msra.gmra.mxu3 %v3036_v20  ;;  %v3390_v48 = vld [vmem:[%s6820_s8 + $0x58] sm:$0xff] }
 0x3be   : > { %v6054_v53 = vmul.f32 %v2765_v38, %v2651_v16  ;;  %2689 = vmatmul.bf16.gmra.mxu1 %v4283_v13  ;;  %v4294_v38 = vld [vmem:[%s6812_s0 + $0xa0] sm:$0xf]  ;;  %v6156_v13 = vpop.permute.xlu0 %2824  ;;  %3216 = vmatpush.msrb.mxu3 %v3068_v12 }
 0x3bf   : > { %v4295_v45 = vor.u32 %v4478_v62, %v4294_v38  ;;  %3561 = vmatpush.msrb.mxu1 %v3390_v48  ;;  %v6215_v38 = vpop.permute.xlu2 %2849  ;;  %v3010_v12 = vld [vmem:[#allocation3 + $0x1a0] sm:$0xff] }
 0x3c0   : > { %v6056_v23 = vpop.f32.mrf.mxu3 }
 0x3c1   : > { %3562 = vmatpush.msrb.mxu1 %v3389_v0 }
 0x3c2   : > { %v2563_v55 = vpop.f32.mrf.mxu0 }
 0x3c3   : > { %v2652_v18 = vpop.f32.mrf.mxu1 }
 0x3c4   : > { %v2653_v19 = vadd.f32 %v2652_v18, %v2563_v55  ;;  %v3004_v55 = vld [vmem:[#allocation3 + $0x1a8] sm:$0xff] }
 0x3c5   : > { %3179 = vmatmul.f32.gmra.mxu3 %v3038_v46  ;;  %v6168_v46 = vpop.permute.xlu1 %2829 }
 0x3c6   : > { %v6074_v5 = vmul.f32 %v2770_v15, %v2653_v19  ;;  %v3044_v15 = vld [vmem:[#allocation3 + $0x1b0] sm:$0xff]  ;;  %v6170_v22 = vpop.permute.xlu0 %2839 }
 0x3c8   : > { %v6088_v58 = vpop.f32.mrf.mxu3 }
 0x3ca   : > { %v2566_v32 = vpop.f32.mrf.mxu0 }
 0x3cb   : > { %v2655_v27 = vpop.f32.mrf.mxu1 }
 0x3cc   : > { %v2656_v11 = vadd.f32 %v2655_v27, %v2566_v32  ;;  %v3006_v32 = vld [vmem:[#allocation3 + $0x168] sm:$0xff] }
 0x3cd   : > { %2605 = vmatmul.bf16.gmra.mxu0 %v4287_v47  ;;  %3182 = vmatmul.f32.gmra.mxu3 %v3040_v1  ;;  %v4304_v47 = vld [vmem:[%s6812_s0 + $0xb8] sm:$0xf0] }
 0x3ce   : > { %v6109_v33 = vmul.f32 %v2775_v34, %v2656_v11  ;;  %2694 = vmatmul.bf16.gmra.mxu1 %v4291_v44  ;;  %v3002_v34 = vld [vmem:[#allocation3 + $0x158] sm:$0xff]  ;;  %v4307_v1 = vor.u32 %v4479_v41, %v4304_v47  ;;  %v6197_v11 = vpop.permute.xlu1 %2844  ;;  %v6202_v6 = vpop.permute.xlu0 %2854 }
 0x3cf   : > { %3125 = vmatmul.f32.gmra.mxu2 %v3002_v34  ;;  %v3711_v34 = vld [vmem:[%s6822_s10 + $0x40] sm:$0xff]  ;;  %v3435_v47 = vld [vmem:[%s6821_s9 + $0x38] sm:$0xff] }
 0x3d0   : > { %v6113_v61 = vpop.f32.mrf.mxu3  ;;  %3726 = vmatpush.msrb.mxu2 %v3711_v34 }
 0x3d2   : > { %v2568_v56 = vpop.f32.mrf.mxu0 }
 0x3d3   : > { %v2657_v30 = vpop.f32.mrf.mxu1 }
 0x3d4   : > { %v2658_v14 = vadd.f32 %v2657_v30, %v2568_v56  ;;  %v3388_v30 = vld [vmem:[%s6820_s8 + $0x48] sm:$0xff] }
 0x3d5   : > { %3185 = vmatmul.f32.gmra.mxu3 %v3042_v9  ;;  %v3437_v9 = vld [vmem:[%s6821_s9 + $0x48] sm:$0xff]  ;;  %3563 = vmatpush.msrb.mxu1 %v3388_v30 }
 0x3d6   : > { %v6126_v10 = vmul.f32 %v2780_v4, %v2658_v14  ;;  %v3046_v4 = vld [vmem:[#allocation3 + $0x138] sm:$0xff]  ;;  %3450 = vmatpush.msrb.mxu0 %v3437_v9  ;;  %v3008_v14 = vld [vmem:[#allocation3 + $0x150] sm:$0xff]  ;;  %v6217_v26 = vpop.permute.xlu1 %2859  ;;  %v6222_v48 = vpop.permute.xlu0 %2869 }
 0x3d7   : > { %3128 = vmatmul.f32.gmra.mxu2 %v3004_v55 }
 0x3d8   : > { %v6142_v59 = vpop.f32.mrf.mxu3 }
 0x3da   : > { %v2571_v20 = vpop.f32.mrf.mxu0 }
 0x3db   : > { %v2660_v16 = vpop.f32.mrf.mxu1 }
 0x3dc   : > { %v2661_v51 = vadd.f32 %v2660_v16, %v2571_v20 }
 0x3dd   : > { %2610 = vmatmul.bf16.gmra.mxu0 %v4295_v45  ;;  %3188 = vmatmul.f32.gmra.mxu3 %v3044_v15  ;;  %v6229_v15 = vpop.permute.xlu2 %2864 }
 0x3de   : > { %v6159_v54 = vmul.f32 %v6058_v29, %v2661_v51  ;;  %2699 = vmatmul.bf16.gmra.mxu1 %v4299_v60  ;;  %v3387_v51 = vld [vmem:[%s6820_s8 + $0x40] sm:$0xff]  ;;  %v6241_v55 = vpop.permute.xlu1 %2874 }
 0x3df   : > { %3131 = vmatmul.f32.gmra.mxu2 %v3006_v32  ;;  %3564 = vmatpush.msrb.mxu1 %v3387_v51  ;;  %v3014_v32 = vld [vmem:[#allocation3 + $0x38] sm:$0xff] }
 0x3e0   : > { %v6163_v40 = vpop.f32.mrf.mxu3 }
 0x3e2   : > { %v2573_v18 = vpop.f32.mrf.mxu0 }
 0x3e3   : > { %v2662_v19 = vpop.f32.mrf.mxu1 }
 0x3e4   : > { %v2663_v29 = vadd.f32 %v2662_v19, %v2573_v18  ;;  %v3012_v19 = vld [vmem:[#allocation3 + $0x1c0] sm:$0xff] }
 0x3e5   : > { %3191 = vmatmul.f32.gmra.mxu3 %v3046_v4  ;;  %v6250_v39 = vpop.permute.xlu2 %2879 }
 0x3e6   : > { %v6179_v63 = vmul.f32 %v6105_v3, %v2663_v29  ;;  %v3048_v3 = vld [vmem:[#allocation3 + $0x148] sm:$0xff] }
 0x3e7   : > { %3134 = vmatmul.f32.gmra.mxu2 %v3008_v14  ;;  %v3016_v14 = vld [vmem:[#allocation3 + $0x58] sm:$0xff] }
 0x3e8   : > { %v6193_v24 = vpop.f32.mrf.mxu3 }
 0x3ea   : > { %v2576_v44 = vpop.f32.mrf.mxu0 }
 0x3eb   : > { %v2665_v27 = vpop.f32.mrf.mxu1 }
 0x3ec   : > { %v2666_v57 = vadd.f32 %v2665_v27, %v2576_v44  ;;  %v2890_v44 = vpop.permute.xlu1 %2889 }
 0x3ed   : > { %2615 = vmatmul.bf16.gmra.mxu0 %v4303_v25  ;;  %3194 = vmatmul.f32.gmra.mxu3 %v3048_v3  ;;  %v3386_v25 = vld [vmem:[%s6820_s8 + $0x38] sm:$0xff]  ;;  %v2895_v49 = vpop.permute.xlu2 %2894 }
 0x3ee   : > { %v6205_v7 = vmul.f32 %v6072_v21, %v2666_v57  ;;  %2704 = vmatmul.bf16.gmra.mxu1 %v4307_v1  ;;  %v3050_v21 = vld [vmem:[#allocation3 + $0x8] sm:$0xff] }
 0x3ef   : > { %3137 = vmatmul.f32.gmra.mxu2 %v3010_v12  ;;  %3565 = vmatpush.msrb.mxu1 %v3386_v25 }
 0x3f0   : > { %v6207_v56 = vpop.f32.mrf.mxu3 }
 0x3f2   : > { %v2578_v62 = vpop.f32.mrf.mxu0 }
 0x3f3   : > { %v2667_v52 = vpop.f32.mrf.mxu1 }
 0x3f4   : > { %v2668_v17 = vadd.f32 %v2667_v52, %v2578_v62 }
 0x3f5   : > { %3197 = vmatmul.f32.gmra.mxu3 %v3050_v21 }
 0x3f6   : > { %v6220_v37 = vmul.f32 %v6107_v28, %v2668_v17  ;;  %v3436_v28 = vld [vmem:[%s6821_s9 + $0x40] sm:$0xff] }
 0x3f7   : > { %3451 = vmatpush.msrb.mxu0 %v3436_v28  ;;  %3140 = vmatmul.f32.gmra.mxu2 %v3012_v19  ;;  %v3384_v19 = vld [vmem:[%s6820_s8 + $0x28] sm:$0xff] }
 0x3f8   : > { %v6224_v45 = vpop.f32.mrf.mxu3 }
 0x3f9   : > { %3452 = vmatpush.msrb.mxu0 %v3435_v47 }
 0x3fa   : > { %v2581_v20 = vpop.f32.mrf.mxu0 }
 0x3fb   : > { %v2670_v60 = vpop.f32.mrf.mxu1 }
 0x3fc   : > { %v2671_v16 = vadd.f32 %v2670_v60, %v2581_v20  ;;  %v3018_v20 = vld [vmem:[#allocation3 + $0x1e0] sm:$0xff] }
 0x3fd   : > { %3217 = vmatmul.f32.vlgmr.msrb.gmra.mxu3 %v6054_v53  ;;  %v2885_v53 = vpop.permute.xlu0 %2884 }
 0x3fe   : > { %v6239_v36 = vmul.f32 %v6124_v31, %v2671_v16  ;;  %v3710_v31 = vld [vmem:[%s6822_s10 + $0x38] sm:$0xff] }
 0x3ff   : > { %3727 = vmatpush.msrb.mxu2 %v3710_v31 }
 0x400   : > { %v2710_v18 = vpop.f32.mrf.mxu3  ;;  %3143 = vmatmul.f32.gmra.mxu2 %v3014_v32  ;;  %v3022_v32 = vld [vmem:[#allocation3 + $0x120] sm:$0xff] }
 0x401   : > { %v2711_v4 = vadd.f32 %v2710_v18, %v6056_v23 }
 0x402   : > { %v2583_v29 = vpop.f32.mrf.mxu0 }
 0x403   : > { %v6244_v35 = vmul.f32 %v2885_v53, %v2711_v4  ;;  %v2672_v0 = vpop.f32.mrf.mxu1 }
 0x404   : > { %v2673_v2 = vadd.f32 %v2672_v0, %v2583_v29  ;;  %v2905_v29 = vpop.permute.xlu1 %2904 }
 0x405   : > { %3220 = vmatmul.f32.gmra.mxu3 %v6074_v5  ;;  %v2900_v60 = vpop.permute.xlu0 %2899 }
 0x406   : > { %v6253_v41 = vmul.f32 %v6111_v43, %v2673_v2 }
 0x408   : > { %v2712_v23 = vpop.f32.mrf.mxu3  ;;  %3146 = vmatmul.f32.gmra.mxu2 %v3016_v14  ;;  %v3024_v14 = vld [vmem:[#allocation3 + $0x1f0] sm:$0xff] }
 0x409   : > { %v2713_v5 = vadd.f32 %v2712_v23, %v6088_v58  ;;  %v3709_v58 = vld [vmem:[%s6822_s10 + $0x30] sm:$0xff]  ;;  %v6304_v23 = vpop.f32.mrf.mxu2 }
 0x40a   : > { %v2586_v1 = vpop.f32.mrf.mxu0  ;;  %3728 = vmatpush.msrb.mxu2 %v3709_v58 }
 0x40b   : > { %v6262_v43 = vmul.f32 %v2890_v44, %v2713_v5  ;;  %v2675_v3 = vpop.f32.mrf.mxu1  ;;  %v3432_v44 = vld [vmem:[%s6821_s9 + $0x20] sm:$0xff] }
 0x40c   : > { %v2676_v27 = vadd.f32 %v2675_v3, %v2586_v1  ;;  %v2910_v1 = vpop.permute.xlu2 %2909 }
 0x40d   : > { %3223 = vmatmul.f32.gmra.mxu3 %v6109_v33  ;;  %v3434_v33 = vld [vmem:[%s6821_s9 + $0x30] sm:$0xff] }
 0x40e   : > { %v6266_v57 = vmul.f32 %v6140_v42, %v2676_v27  ;;  %v3385_v42 = vld [vmem:[%s6820_s8 + $0x30] sm:$0xff]  ;;  %3453 = vmatpush.msrb.mxu0 %v3434_v33 }
 0x40f   : > { %3566 = vmatpush.msrb.mxu1 %v3385_v42 }
 0x410   : > { %v2715_v9 = vpop.f32.mrf.mxu3  ;;  %3149 = vmatmul.f32.gmra.mxu2 %v3018_v20  ;;  %v3382_v20 = vld [vmem:[%s6820_s8 + $0x18] sm:$0xff] }
 0x411   : > { %v2716_v30 = vadd.f32 %v2715_v9, %v6113_v61  ;;  %3567 = vmatpush.msrb.mxu1 %v3384_v19 }
 0x412   : > { %v2588_v62 = vpop.f32.mrf.mxu0 }
 0x413   : > { %v6272_v21 = vmul.f32 %v2895_v49, %v2716_v30  ;;  %v2677_v52 = vpop.f32.mrf.mxu1 }
 0x414   : > { %v2678_v17 = vadd.f32 %v2677_v52, %v2588_v62  ;;  %v3706_v62 = vld [vmem:[%s6822_s10 + $0x18] sm:$0xff]  ;;  %v2915_v52 = vpop.permute.xlu0 %2914 }
 0x415   : > { %3226 = vmatmul.f32.gmra.mxu3 %v6126_v10 }
 0x416   : > { %v6282_v61 = vmul.f32 %v6161_v50, %v2678_v17  ;;  %v3708_v50 = vld [vmem:[%s6822_s10 + $0x28] sm:$0xff] }
 0x417   : > { %3729 = vmatpush.msrb.mxu2 %v3708_v50 }
 0x418   : > { %v2717_v34 = vpop.f32.mrf.mxu3 }
 0x419   : > { %v2718_v12 = vadd.f32 %v2717_v34, %v6142_v59  ;;  %v3433_v59 = vld [vmem:[%s6821_s9 + $0x28] sm:$0xff] }
 0x41a   : > { %v2591_v16 = vpop.f32.mrf.mxu0  ;;  %3454 = vmatpush.msrb.mxu0 %v3433_v59 }
 0x41b   : > { %v6285_v10 = vmul.f32 %v2900_v60, %v2718_v12  ;;  %v2680_v28 = vpop.f32.mrf.mxu1  ;;  %v3431_v12 = vld [vmem:[%s6821_s9 + $0x18] sm:$0xff] }
 0x41c   : > { %v2681_v51 = vadd.f32 %v2680_v28, %v2591_v16  ;;  %3455 = vmatpush.msrb.mxu0 %v3432_v44  ;;  %v3026_v16 = vld [vmem:[#allocation3 + $0x108] sm:$0xff] }
 0x41d   : > { %3229 = vmatmul.f32.gmra.mxu3 %v6159_v54  ;;  %v3020_v54 = vld [vmem:[#allocation3 + $0xe8] sm:$0xff] }
 0x41e   : > { %v6292_v18 = vmul.f32 %v6156_v13, %v2681_v51  ;;  %3152 = vmatmul.f32.gmra.mxu2 %v3020_v54  ;;  %3456 = vmatpush.msrb.mxu0 %v3431_v12  ;;  %v3430_v54 = vld [vmem:[%s6821_s9 + $0x10] sm:$0xff] }
 0x420   : > { %v2720_v4 = vpop.f32.mrf.mxu3  ;;  %3457 = vmatpush.msrb.mxu0 %v3430_v54 }
 0x421   : > { %v2721_v53 = vadd.f32 %v2720_v4, %v6163_v40  ;;  %v3707_v40 = vld [vmem:[%s6822_s10 + $0x20] sm:$0xff] }
 0x422   : > { %v2593_v0 = vpop.f32.mrf.mxu0  ;;  %3730 = vmatpush.msrb.mxu2 %v3707_v40  ;;  %v3030_v40 = vld [vmem:[#allocation3 + $0x68] sm:$0xff] }
 0x423   : > { %v6301_v13 = vmul.f32 %v2905_v29, %v2721_v53  ;;  %v2682_v2 = vpop.f32.mrf.mxu1  ;;  %v3028_v53 = vld [vmem:[#allocation3 + $0x178] sm:$0xff] }
 0x424   : > { %v2683_v31 = vadd.f32 %v2682_v2, %v2593_v0  ;;  %3731 = vmatpush.msrb.mxu2 %v3706_v62 }
 0x425   : > { %3232 = vmatmul.f32.gmra.mxu3 %v6179_v63  ;;  %v3383_v63 = vld [vmem:[%s6820_s8 + $0x20] sm:$0xff] }
 0x426   : > { %v6307_v47 = vmul.f32 %v6168_v46, %v2683_v31  ;;  %3155 = vmatmul.f32.gmra.mxu2 %v3022_v32  ;;  %3568 = vmatpush.msrb.mxu1 %v3383_v63 }
 0x428   : > { %v2722_v25 = vpop.f32.mrf.mxu3  ;;  %3569 = vmatpush.msrb.mxu1 %v3382_v20 }
 0x429   : > { %v2723_v5 = vadd.f32 %v2722_v25, %v6193_v24  ;;  %v6322_v24 = vpop.f32.mrf.mxu2 }
 0x42a   : > { %v2596_v46 = vpop.f32.mrf.mxu0 }
 0x42b   : > { %v6319_v3 = vmul.f32 %v2910_v1, %v2723_v5  ;;  %v2685_v27 = vpop.f32.mrf.mxu1  ;;  %v3704_v5 = vld [vmem:[%s6822_s10 + $0x8] sm:$0xff] }
 0x42c   : > { %v2686_v49 = vadd.f32 %v2685_v27, %v2596_v46  ;;  %v3429_v46 = vld [vmem:[%s6821_s9 + $0x8] sm:$0xff] }
 0x42d   : > { %3235 = vmatmul.f32.gmra.mxu3 %v6205_v7  ;;  %v3380_v27 = vld [vmem:[%s6820_s8 + $0x8] sm:$0xff]  ;;  %3458 = vmatpush.msrb.mxu0 %v3429_v46 }
 0x42e   : > { %v6325_v9 = vmul.f32 %v6195_v8, %v2686_v49  ;;  %3158 = vmatmul.f32.gmra.mxu2 %v3024_v14  ;;  %v3032_v49 = vld [vmem:[#allocation3 + $0x20] sm:$0xff] }
 0x430   : > { %v2725_v58 = vpop.f32.mrf.mxu3 }
 0x431   : > { %v2726_v30 = vadd.f32 %v2725_v58, %v6207_v56  ;;  %v6334_v8 = vpop.f32.mrf.mxu2 }
 0x432   : > { %v2598_v17 = vpop.f32.mrf.mxu0 }
 0x433   : > { %v6331_v33 = vmul.f32 %v2915_v52, %v2726_v30  ;;  %v2687_v42 = vpop.f32.mrf.mxu1  ;;  %v3703_v52 = vld [vmem:[%s6822_s10] sm:$0xff] }
 0x434   : > { %v2688_v7 = vadd.f32 %v2687_v42, %v2598_v17  ;;  %v3034_v17 = vld [vmem:[#allocation3 + $0x48] sm:$0xff]  ;;  %v3428_v42 = vld [vmem:[%s6821_s9] sm:$0xff] }
 0x435   : > { %3238 = vmatmul.f32.gmra.mxu3 %v6220_v37  ;;  %v2920_v37 = vpop.permute.xlu1 %2919  ;;  %3459 = vmatpush.msrb.mxu0 %v3428_v42 }
 0x436   : > { %v6337_v34 = vmul.f32 %v6170_v22, %v2688_v7  ;;  %3161 = vmatmul.f32.gmra.mxu2 %v3026_v16  ;;  %v3671_v16 = vld [vmem:[#allocation2 + $0xb0] sm:$0xff] }
 0x438   : > { %v2727_v56 = vpop.f32.mrf.mxu3 }
 0x439   : > { %v2728_v60 = vadd.f32 %v2727_v56, %v6224_v45  ;;  %v6349_v4 = vpop.f32.mrf.mxu2  ;;  %v3705_v45 = vld [vmem:[%s6822_s10 + $0x10] sm:$0xff] }
 0x43a   : > { %v2601_v28 = vpop.f32.mrf.mxu0  ;;  %3732 = vmatpush.msrb.mxu2 %v3705_v45 }
 0x43b   : > { %v6346_v51 = vmul.f32 %v2920_v37, %v2728_v60  ;;  %v2690_v22 = vpop.f32.mrf.mxu1 }
 0x43c   : > { %v2691_v50 = vadd.f32 %v2690_v22, %v2601_v28  ;;  %3733 = vmatpush.msrb.mxu2 %v3704_v5 }
 0x43d   : > { %3241 = vmatmul.f32.gmra.mxu3 %v6239_v36  ;;  %v3381_v36 = vld [vmem:[%s6820_s8 + $0x10] sm:$0xff] }
 0x43e   : > { %v6352_v59 = vmul.f32 %v6197_v11, %v2691_v50  ;;  %3164 = vmatmul.f32.gmra.mxu2 %v3028_v53  ;;  %3570 = vmatpush.msrb.mxu1 %v3381_v36  ;;  %v3672_v53 = vld [vmem:[#allocation2] sm:$0xff] }
 0x43f   : > { %3734 = vmatpush.msrb.mxu2 %v3703_v52  ;;  %v3675_v52 = vld [vmem:[#allocation2 + $0x50] sm:$0xff] }
 0x440   : > { %v6354_v19 = vpop.f32.mrf.mxu3  ;;  %3571 = vmatpush.msrb.mxu1 %v3380_v27  ;;  %v3674_v27 = vld [vmem:[#allocation2 + $0x18] sm:$0xff] }
 0x441   : > { %v6366_v2 = vpop.f32.mrf.mxu2 }
 0x442   : > { %v2603_v29 = vpop.f32.mrf.mxu0 }
 0x443   : > { %v2692_v11 = vpop.f32.mrf.mxu1 }
 0x444   : > { %v2693_v0 = vadd.f32 %v2692_v11, %v2603_v29  ;;  %v3397_v11 = vld [vmem:[%s6813_s1 + $0x8] sm:$0xff] }
 0x445   : > { %3244 = vmatmul.f32.gmra.mxu3 %v6253_v41 }
 0x446   : > { %v6369_v31 = vmul.f32 %v6215_v38, %v2693_v0  ;;  %3167 = vmatmul.f32.gmra.mxu2 %v3030_v40  ;;  %v3673_v40 = vld [vmem:[#allocation2 + $0xd8] sm:$0xff] }
 0x448   : > { %v6371_v25 = vpop.f32.mrf.mxu3 }
 0x449   : > { %v6377_v41 = vpop.f32.mrf.mxu2 }
 0x44a   : > { %v2606_v32 = vpop.f32.mrf.mxu0 }
 0x44b   : > { %v2695_v44 = vpop.f32.mrf.mxu1 }
 0x44c   : > { %v2696_v63 = vadd.f32 %v2695_v44, %v2606_v32 }
 0x44d   : > { %3247 = vmatmul.f32.gmra.mxu3 %v6266_v57 }
 0x44e   : > { %v6380_v1 = vmul.f32 %v6202_v6, %v2696_v63  ;;  %3170 = vmatmul.f32.gmra.mxu2 %v3032_v49  ;;  %v3398_v63 = vld [vmem:[%s6813_s1 + $0x10] sm:$0xff]  ;;  %v6451_v49 = vld [vmem:[%s6819_s7] ss:$0 sm:$0xff] }
 0x450   : > { %v6382_v38 = vpop.f32.mrf.mxu3 }
 0x451   : > { %v6391_v6 = vpop.f32.mrf.mxu2 }
 0x452   : > { %v2608_v58 = vpop.f32.mrf.mxu0 }
 0x453   : > { %v2697_v57 = vpop.f32.mrf.mxu1 }
 0x454   : > { %v2698_v30 = vadd.f32 %v2697_v57, %v2608_v58  ;;  %v3399_v58 = vld [vmem:[%s6813_s1 + $0x18] sm:$0xff] }
 0x455   : > { %3250 = vmatmul.f32.gmra.mxu3 %v6282_v61  ;;  %v3379_v61 = vld [vmem:[%s6820_s8] sm:$0xff] }
 0x456   : > { %v6394_v14 = vmul.f32 %v6217_v26, %v2698_v30  ;;  %3173 = vmatmul.f32.gmra.mxu2 %v3034_v17  ;;  %3572 = vmatpush.msrb.mxu1 %v3379_v61  ;;  %v3109_v61 = vadd.f32 %v6451_v49, %v6322_v24 }
 0x458   : > { %v6396_v62 = vpop.f32.mrf.mxu3 }
 0x459   : > { %v6408_v12 = vpop.f32.mrf.mxu2 }
 0x45a   : > { %v2611_v7 = vpop.f32.mrf.mxu0 }
 0x45b   : > { %v2700_v26 = vpop.f32.mrf.mxu1 }
 0x45c   : > { %v2701_v56 = vadd.f32 %v2700_v26, %v2611_v7  ;;  %v3676_v26 = vld [vmem:[#allocation2 + $0x68] sm:$0xff] }
 0x45d   : > { %3253 = vmatmul.f32.gmra.mxu3 %v6292_v18  ;;  %v3396_v18 = vld [vmem:[%s6813_s1] sm:$0xff] }
 0x45e   : > { %v6411_v20 = vmul.f32 %v6229_v15, %v2701_v56  ;;  %3735 = vmatmul.f32.vlgmr.msrb.gmra.mxu2 %v3671_v16  ;;  %3460 = vmatmul.f32.vlgmr.msrb.gmra.mxu0 %v3396_v18  ;;  %v3401_v16 = vld [vmem:[%s6813_s1 + $0x28] sm:$0xff] }
 0x460   : > { %v6413_v60 = vpop.f32.mrf.mxu3 }
 0x461   : > { %v6416_v50 = vpop.f32.mrf.mxu2 }
 0x462   : > { %v2613_v37 = vpop.f32.mrf.mxu0 }
 0x463   : > { %v2702_v28 = vpop.f32.mrf.mxu1 }
 0x464   : > { %v2703_v22 = vadd.f32 %v2702_v28, %v2613_v37  ;;  %v3112_v37 = vadd.f32 %v6451_v49, %v6334_v8 }
 0x465   : > { %3256 = vmatmul.f32.gmra.mxu3 %v6307_v47 }
 0x466   : > { %v6422_v45 = vmul.f32 %v6222_v48, %v2703_v22  ;;  %3738 = vmatmul.f32.gmra.mxu2 %v3672_v53  ;;  %3463 = vmatmul.f32.gmra.mxu0 %v3397_v11  ;;  %v3677_v22 = vld [vmem:[#allocation2 + $0x30] sm:$0xff] }
 0x467   : > { %v3402_v53 = vld [vmem:[%s6813_s1 + $0x30] sm:$0xff] }
 0x468   : > { %v6424_v15 = vpop.f32.mrf.mxu3 }
 0x469   : > { %v6427_v47 = vpop.f32.mrf.mxu2 }
 0x46a   : > { %v2616_v54 = vpop.f32.mrf.mxu0 }
 0x46b   : > { %v2705_v36 = vpop.f32.mrf.mxu1 }
 0x46c   : > { %v2706_v29 = vadd.f32 %v2705_v36, %v2616_v54  ;;  %v3115_v54 = vadd.f32 %v6451_v49, %v6349_v4 }
 0x46d   : > { %3259 = vmatmul.f32.gmra.mxu3 %v6325_v9 }
 0x46e   : > { %v6433_v0 = vmul.f32 %v6241_v55, %v2706_v29  ;;  %3741 = vmatmul.f32.gmra.mxu2 %v3673_v40  ;;  %3466 = vmatmul.f32.gmra.mxu0 %v3398_v63  ;;  %v3678_v29 = vld [vmem:[#allocation2 + $0x48] sm:$0xff]  ;;  %v3403_v40 = vld [vmem:[%s6813_s1 + $0x38] sm:$0xff] }
 0x470   : > { %v6435_v48 = vpop.f32.mrf.mxu3 }
 0x471   : > { %v6438_v9 = vpop.f32.mrf.mxu2 }
 0x472   : > { %v2618_v5 = vpop.f32.mrf.mxu0 }
 0x473   : > { %v2707_v32 = vpop.f32.mrf.mxu1 }
 0x474   : > { %v2708_v44 = vadd.f32 %v2707_v32, %v2618_v5  ;;  %v3118_v5 = vadd.f32 %v6451_v49, %v6366_v2 }
 0x475   : > { %3262 = vmatmul.f32.gmra.mxu3 %v6337_v34 }
 0x476   : > { %v6444_v46 = vmul.f32 %v6250_v39, %v2708_v44  ;;  %3744 = vmatmul.f32.gmra.mxu2 %v3674_v27  ;;  %3469 = vmatmul.f32.gmra.mxu0 %v3399_v58  ;;  %v3106_v39 = vadd.f32 %v6451_v49, %v6304_v23  ;;  %v3679_v44 = vld [vmem:[#allocation2 + $0x80] sm:$0xff]  ;;  %v3121_v58 = vadd.f32 %v6451_v49, %v6377_v41 }
 0x477   : > { %v3404_v27 = vld [vmem:[%s6813_s1 + $0x40] sm:$0xff] }
 0x478   : > { %v6446_v55 = vpop.f32.mrf.mxu3 }
 0x479   : > { %v6454_v34 = vpop.f32.mrf.mxu2 }
 0x47d   : > { %3265 = vmatmul.f32.gmra.mxu3 %v6352_v59  ;;  %v3400_v59 = vld [vmem:[%s6813_s1 + $0x20] sm:$0xff] }
 0x47e   : > { %3747 = vmatmul.f32.gmra.mxu2 %v3675_v52  ;;  %3472 = vmatmul.f32.gmra.mxu0 %v3400_v59  ;;  %v3405_v52 = vld [vmem:[%s6813_s1 + $0x48] sm:$0xff] }
 0x480   : > { %v3218_v57 = vpop.f32.mrf.mxu3 }
 0x481   : > { %v3219_v30 = vadd.f32 %v3218_v57, %v3106_v39  ;;  %v6462_v42 = vpop.f32.mrf.mxu2  ;;  %v3680_v57 = vld [vmem:[#allocation2 + $0x88] sm:$0xff] }
 0x483   : > { %v3314_v17 = vmax.f32 %v3219_v30, 0.0 }
 0x485   : > { %3268 = vmatmul.f32.gmra.mxu3 %v6369_v31  ;;  %3573 = vmatmul.f32.vlgmr.msrb.gmra.mxu1 %v3314_v17  ;;  %v3124_v17 = vadd.f32 %v6451_v49, %v6391_v6 }
 0x486   : > { %3750 = vmatmul.f32.gmra.mxu2 %v3676_v26  ;;  %3475 = vmatmul.f32.gmra.mxu0 %v3401_v16  ;;  %v3127_v26 = vadd.f32 %v6451_v49, %v6408_v12  ;;  %v3682_v16 = vld [vmem:[#allocation2 + $0xb8] sm:$0xff] }
 0x488   : > { %v3221_v7 = vpop.f32.mrf.mxu3 }
 0x489   : > { %v3222_v23 = vadd.f32 %v3221_v7, %v3109_v61  ;;  %v6470_v31 = vpop.f32.mrf.mxu2  ;;  %v3681_v61 = vld [vmem:[#allocation2 + $0xe8] sm:$0xff] }
 0x48b   : > { %v3315_v56 = vmax.f32 %v3222_v23, 0.0  ;;  %v3406_v23 = vld [vmem:[%s6813_s1 + $0x50] sm:$0xff] }
 0x48d   : > { %3271 = vmatmul.f32.gmra.mxu3 %v6380_v1  ;;  %3576 = vmatmul.f32.gmra.mxu1 %v3315_v56 }
 0x48e   : > { %3753 = vmatmul.f32.gmra.mxu2 %v3677_v22  ;;  %3478 = vmatmul.f32.gmra.mxu0 %v3402_v53 }
 0x490   : > { %v3224_v28 = vpop.f32.mrf.mxu3 }
 0x491   : > { %v3225_v24 = vadd.f32 %v3224_v28, %v3112_v37  ;;  %v6478_v1 = vpop.f32.mrf.mxu2  ;;  %v3407_v28 = vld [vmem:[%s6813_s1 + $0x58] sm:$0xff] }
 0x493   : > { %v3316_v18 = vmax.f32 %v3225_v24, 0.0  ;;  %v3130_v24 = vadd.f32 %v6451_v49, %v6416_v50 }
 0x495   : > { %3274 = vmatmul.f32.gmra.mxu3 %v6394_v14  ;;  %3579 = vmatmul.f32.gmra.mxu1 %v3316_v18  ;;  %v3683_v18 = vld [vmem:[#allocation2 + $0x60] sm:$0xff] }
 0x496   : > { %3756 = vmatmul.f32.gmra.mxu2 %v3678_v29  ;;  %3481 = vmatmul.f32.gmra.mxu0 %v3403_v40  ;;  %v3684_v29 = vld [vmem:[#allocation2 + $0xf0] sm:$0xff]  ;;  %v3409_v40 = vld [vmem:[%s6813_s1 + $0x68] sm:$0xff] }
 0x498   : > { %v3227_v36 = vpop.f32.mrf.mxu3 }
 0x499   : > { %v3228_v8 = vadd.f32 %v3227_v36, %v3115_v54  ;;  %v6486_v14 = vpop.f32.mrf.mxu2  ;;  %v3408_v54 = vld [vmem:[%s6813_s1 + $0x60] sm:$0xff]  ;;  %v3133_v36 = vadd.f32 %v6451_v49, %v6427_v47 }
 0x49b   : > { %v3317_v11 = vmax.f32 %v3228_v8, 0.0 }
 0x49d   : > { %3277 = vmatmul.f32.gmra.mxu3 %v6411_v20  ;;  %3582 = vmatmul.f32.gmra.mxu1 %v3317_v11 }
 0x49e   : > { %3759 = vmatmul.f32.gmra.mxu2 %v3679_v44  ;;  %3484 = vmatmul.f32.gmra.mxu0 %v3404_v27  ;;  %v3139_v27 = vadd.f32 %v6451_v49, %v6454_v34 }
 0x4a0   : > { %v3230_v32 = vpop.f32.mrf.mxu3 }
 0x4a1   : > { %v3231_v4 = vadd.f32 %v3230_v32, %v3118_v5  ;;  %v6494_v20 = vpop.f32.mrf.mxu2  ;;  %v3136_v5 = vadd.f32 %v6451_v49, %v6438_v9 }
 0x4a3   : > { %v3318_v63 = vmax.f32 %v3231_v4, 0.0  ;;  %v3685_v4 = vld [vmem:[#allocation2 + $0x8] sm:$0xff] }
 0x4a5   : > { %3280 = vmatmul.f32.gmra.mxu3 %v6422_v45  ;;  %3585 = vmatmul.f32.gmra.mxu1 %v3318_v63  ;;  %v3410_v63 = vld [vmem:[%s6813_s1 + $0x70] sm:$0xff] }
 0x4a6   : > { %3762 = vmatmul.f32.gmra.mxu2 %v3680_v57  ;;  %3487 = vmatmul.f32.gmra.mxu0 %v3405_v52 }
 0x4a8   : > { %v3233_v39 = vpop.f32.mrf.mxu3 }
 0x4a9   : > { %v3234_v2 = vadd.f32 %v3233_v39, %v3121_v58  ;;  %v6502_v45 = vpop.f32.mrf.mxu2  ;;  %v3686_v39 = vld [vmem:[#allocation2 + $0x78] sm:$0xff] }
 0x4ab   : > { %v3319_v30 = vmax.f32 %v3234_v2, 0.0 }
 0x4ad   : > { %3283 = vmatmul.f32.gmra.mxu3 %v6433_v0  ;;  %3588 = vmatmul.f32.gmra.mxu1 %v3319_v30  ;;  %v3142_v30 = vadd.f32 %v6451_v49, %v6462_v42 }
 0x4ae   : > { %3765 = vmatmul.f32.gmra.mxu2 %v3681_v61  ;;  %3490 = vmatmul.f32.gmra.mxu0 %v3406_v23 }
 0x4b0   : > { %v3236_v59 = vpop.f32.mrf.mxu3 }
 0x4b1   : > { %v3237_v41 = vadd.f32 %v3236_v59, %v3124_v17  ;;  %v6510_v0 = vpop.f32.mrf.mxu2  ;;  %v3687_v17 = vld [vmem:[#allocation2 + $0x38] sm:$0xff] }
 0x4b3   : > { %v3320_v7 = vmax.f32 %v3237_v41, 0.0 }
 0x4b5   : > { %3286 = vmatmul.f32.gmra.mxu3 %v6444_v46  ;;  %3591 = vmatmul.f32.gmra.mxu1 %v3320_v7  ;;  %v3145_v7 = vadd.f32 %v6451_v49, %v6470_v31 }
 0x4b6   : > { %3768 = vmatmul.f32.gmra.mxu2 %v3682_v16  ;;  %3493 = vmatmul.f32.gmra.mxu0 %v3407_v28  ;;  %v3413_v16 = vld [vmem:[%s6813_s1 + $0x88] sm:$0xff] }
 0x4b8   : > { %v3239_v56 = vpop.f32.mrf.mxu3 }
 0x4b9   : > { %v3240_v6 = vadd.f32 %v3239_v56, %v3127_v26  ;;  %v6518_v46 = vpop.f32.mrf.mxu2  ;;  %v3688_v26 = vld [vmem:[#allocation2 + $0x58] sm:$0xff] }
 0x4bb   : > { %v3321_v37 = vmax.f32 %v3240_v6, 0.0 }
 0x4bd   : > { %3289 = vmatmul.f32.gmra.mxu3 %v6244_v35  ;;  %3594 = vmatmul.f32.gmra.mxu1 %v3321_v37  ;;  %v3148_v37 = vadd.f32 %v6451_v49, %v6478_v1 }
 0x4be   : > { %3771 = vmatmul.f32.gmra.mxu2 %v3683_v18  ;;  %3496 = vmatmul.f32.gmra.mxu0 %v3408_v54  ;;  %v3414_v18 = vld [vmem:[%s6813_s1 + $0x90] sm:$0xff] }
 0x4c0   : > { %v3242_v22 = vpop.f32.mrf.mxu3 }
 0x4c1   : > { %v3243_v12 = vadd.f32 %v3242_v22, %v3130_v24  ;;  %v6526_v35 = vpop.f32.mrf.mxu2  ;;  %v3689_v24 = vld [vmem:[#allocation2 + $0x40] sm:$0xff] }
 0x4c3   : > { %v3322_v53 = vmax.f32 %v3243_v12, 0.0 }
 0x4c5   : > { %3292 = vmatmul.f32.gmra.mxu3 %v6262_v43  ;;  %3597 = vmatmul.f32.gmra.mxu1 %v3322_v53  ;;  %v3151_v53 = vadd.f32 %v6451_v49, %v6486_v14 }
 0x4c6   : > { %3774 = vmatmul.f32.gmra.mxu2 %v3684_v29  ;;  %3499 = vmatmul.f32.gmra.mxu0 %v3409_v40 }
 0x4c8   : > { %v3245_v8 = vpop.f32.mrf.mxu3 }
 0x4c9   : > { %v3246_v50 = vadd.f32 %v3245_v8, %v3133_v36  ;;  %v6534_v43 = vpop.f32.mrf.mxu2  ;;  %v3690_v36 = vld [vmem:[#allocation2 + $0xc8] sm:$0xff] }
 0x4cb   : > { %v3323_v11 = vmax.f32 %v3246_v50, 0.0 }
 0x4cd   : > { %3295 = vmatmul.f32.gmra.mxu3 %v6272_v21  ;;  %3600 = vmatmul.f32.gmra.mxu1 %v3323_v11  ;;  %v3154_v11 = vadd.f32 %v6451_v49, %v6494_v20  ;;  %v3416_v20 = vld [vmem:[%s6813_s1 + $0xa0] sm:$0xff] }
 0x4ce   : > { %3777 = vmatmul.f32.gmra.mxu2 %v3685_v4  ;;  %3502 = vmatmul.f32.gmra.mxu0 %v3410_v63 }
 0x4d0   : > { %v3248_v32 = vpop.f32.mrf.mxu3 }
 0x4d1   : > { %v3249_v47 = vadd.f32 %v3248_v32, %v3136_v5  ;;  %v6542_v21 = vpop.f32.mrf.mxu2  ;;  %v3691_v32 = vld [vmem:[#allocation2 + $0xe0] sm:$0xff] }
 0x4d3   : > { %v3324_v44 = vmax.f32 %v3249_v47, 0.0 }
 0x4d5   : > { %3298 = vmatmul.f32.gmra.mxu3 %v6285_v10  ;;  %3603 = vmatmul.f32.gmra.mxu1 %v3324_v44  ;;  %v3411_v10 = vld [vmem:[%s6813_s1 + $0x78] sm:$0xff]  ;;  %v6583_v44 = vld [vmem:[%s6823_s11] ss:$0 sm:$0xff] }
 0x4d6   : > { %3780 = vmatmul.f32.gmra.mxu2 %v3686_v39  ;;  %3505 = vmatmul.f32.gmra.mxu0 %v3411_v10 }
 0x4d8   : > { %v3251_v58 = vpop.f32.mrf.mxu3 }
 0x4d9   : > { %v3252_v9 = vadd.f32 %v3251_v58, %v3139_v27  ;;  %v6553_v57 = vpop.f32.mrf.mxu2 }
 0x4db   : > { %v3325_v2 = vmax.f32 %v3252_v9, 0.0  ;;  %v3461_v41 = vpop.f32.mrf.mxu0  ;;  %v3157_v9 = vadd.f32 %v6451_v49, %v6502_v45  ;;  %v3417_v45 = vld [vmem:[%s6813_s1 + $0xa8] sm:$0xff] }
 0x4dd   : > { %3301 = vmatmul.f32.gmra.mxu3 %v6301_v13  ;;  %3606 = vmatmul.f32.gmra.mxu1 %v3325_v2  ;;  %v3412_v13 = vld [vmem:[%s6813_s1 + $0x80] sm:$0xff] }
 0x4de   : > { %3783 = vmatmul.f32.gmra.mxu2 %v3687_v17  ;;  %3508 = vmatmul.f32.gmra.mxu0 %v3412_v13  ;;  %v3160_v13 = vadd.f32 %v6451_v49, %v6510_v0  ;;  %v3418_v0 = vld [vmem:[%s6813_s1 + $0xb0] sm:$0xff] }
 0x4e0   : > { %v3254_v52 = vpop.f32.mrf.mxu3 }
 0x4e1   : > { %v3255_v34 = vadd.f32 %v3254_v52, %v3142_v30  ;;  %v3736_v61 = vpop.f32.mrf.mxu2  ;;  %v3692_v30 = vld [vmem:[#allocation2 + $0x90] sm:$0xff] }
 0x4e3   : > { %v3326_v59 = vmax.f32 %v3255_v34, 0.0  ;;  %v3464_v6 = vpop.f32.mrf.mxu0 }
 0x4e5   : > { %3304 = vmatmul.f32.gmra.mxu3 %v6319_v3  ;;  %3609 = vmatmul.f32.gmra.mxu1 %v3326_v59 }
 0x4e6   : > { %3786 = vmatmul.f32.gmra.mxu2 %v3688_v26  ;;  %3511 = vmatmul.f32.gmra.mxu0 %v3413_v16  ;;  %v3693_v26 = vld [vmem:[#allocation2 + $0x70] sm:$0xff] }
 0x4e8   : > { %v3257_v23 = vpop.f32.mrf.mxu3 }
 0x4e9   : > { %v3258_v42 = vadd.f32 %v3257_v23, %v3145_v7  ;;  %v3739_v3 = vpop.f32.mrf.mxu2 }
 0x4eb   : > { %v3327_v56 = vmax.f32 %v3258_v42, 0.0  ;;  %v3467_v12 = vpop.f32.mrf.mxu0 }
 0x4ed   : > { %3307 = vmatmul.f32.gmra.mxu3 %v6331_v33  ;;  %3612 = vmatmul.f32.gmra.mxu1 %v3327_v56 }
 0x4ee   : > { %3789 = vmatmul.f32.gmra.mxu2 %v3689_v24  ;;  %3514 = vmatmul.f32.gmra.mxu0 %v3414_v18  ;;  %v3694_v18 = vld [vmem:[#allocation2 + $0xc0] sm:$0xff] }
 0x4f0   : > { %v3260_v28 = vpop.f32.mrf.mxu3 }
 0x4f1   : > { %v3261_v31 = vadd.f32 %v3260_v28, %v3148_v37  ;;  %v3742_v33 = vpop.f32.mrf.mxu2 }
 0x4f3   : > { %v3328_v22 = vmax.f32 %v3261_v31, 0.0  ;;  %v3470_v50 = vpop.f32.mrf.mxu0  ;;  %v3163_v31 = vadd.f32 %v6451_v49, %v6518_v46  ;;  %v3419_v46 = vld [vmem:[%s6813_s1 + $0xb8] sm:$0xff] }
 0x4f5   : > { %3310 = vmatmul.f32.gmra.mxu3 %v6346_v51  ;;  %3615 = vmatmul.f32.gmra.mxu1 %v3328_v22  ;;  %v3415_v51 = vld [vmem:[%s6813_s1 + $0x98] sm:$0xff] }
 0x4f6   : > { %3792 = vmatmul.f32.gmra.mxu2 %v3690_v36  ;;  %3517 = vmatmul.f32.gmra.mxu0 %v3415_v51  ;;  %v3166_v51 = vadd.f32 %v6451_v49, %v6526_v35  ;;  %v3420_v35 = vld [vmem:[%s6813_s1 + $0xc0] sm:$0xff] }
 0x4f8   : > { %v3263_v54 = vpop.f32.mrf.mxu3 }
 0x4f9   : > { %v3264_v1 = vadd.f32 %v3263_v54, %v3151_v53  ;;  %v3745_v29 = vpop.f32.mrf.mxu2 }
 0x4fb   : > { %v3329_v8 = vmax.f32 %v3264_v1, 0.0  ;;  %v6585_v63 = vpop.f32.mrf.mxu0 }
 0x4fd   : > { %3618 = vmatmul.f32.gmra.mxu1 %v3329_v8 }
 0x4fe   : > { %3795 = vmatmul.f32.gmra.mxu2 %v3691_v32  ;;  %3520 = vmatmul.f32.gmra.mxu0 %v3416_v20  ;;  %v3169_v20 = vadd.f32 %v6451_v49, %v6534_v43  ;;  %v3421_v43 = vld [vmem:[%s6813_s1 + $0xc8] sm:$0xff] }
 0x500   : > { %v3266_v40 = vpop.f32.mrf.mxu3 }
 0x501   : > { %v3267_v5 = vadd.f32 %v3266_v40, %v3154_v11  ;;  %v3748_v58 = vpop.f32.mrf.mxu2 }
 0x502   : > { %v3574_v14 = vpop.f32.mrf.mxu1 }
 0x503   : > { %v3330_v47 = vmax.f32 %v3267_v5, 0.0  ;;  %v3575_v4 = vadd.f32 %v3574_v14, %v3461_v41  ;;  %v6596_v59 = vpop.f32.mrf.mxu0  ;;  %v3695_v5 = vld [vmem:[#allocation2 + $0xa8] sm:$0xff] }
 0x505   : > { %v3832_v27 = vadd.f32 %v3736_v61, %v3575_v4  ;;  %3621 = vmatmul.f32.gmra.mxu1 %v3330_v47 }
 0x506   : > { %3798 = vmatmul.f32.gmra.mxu2 %v3692_v30  ;;  %3523 = vmatmul.f32.gmra.mxu0 %v3417_v45 }
 0x507   : > { %v3868_v39 = vadd.f32 %v6583_v44, %v3832_v27 }
 0x508   : > { %v3269_v2 = vpop.f32.mrf.mxu3 }
 0x509   : > { %3900 = vst [vmem:[%s6824_s12] sm:$0xff] %v3868_v39  ;;  %v3270_v10 = vadd.f32 %v3269_v2, %v3157_v9  ;;  %v3751_v61 = vpop.f32.mrf.mxu2  ;;  %v3696_v2 = vld [vmem:[#allocation2 + $0xd0] sm:$0xff] }
 0x50a   : > { %v3577_v52 = vpop.f32.mrf.mxu1 }
 0x50b   : > { %v3331_v34 = vmax.f32 %v3270_v10, 0.0  ;;  %v3578_v17 = vadd.f32 %v3577_v52, %v3464_v6  ;;  %v6607_v16 = vpop.f32.mrf.mxu0 }
 0x50d   : > { %v3833_v41 = vadd.f32 %v3739_v3, %v3578_v17  ;;  %3624 = vmatmul.f32.gmra.mxu1 %v3331_v34 }
 0x50e   : > { %3801 = vmatmul.f32.gmra.mxu2 %v3693_v26  ;;  %3526 = vmatmul.f32.gmra.mxu0 %v3418_v0 }
 0x50f   : > { %v3869_v7 = vadd.f32 %v6583_v44, %v3833_v41  ;;  %v3172_v41 = vadd.f32 %v6451_v49, %v6542_v21  ;;  %v3422_v21 = vld [vmem:[%s6813_s1 + $0xd0] sm:$0xff] }
 0x510   : > { %v3272_v23 = vpop.f32.mrf.mxu3 }
 0x511   : > { %3901 = vst [vmem:[%s6824_s12 + $0x8] sm:$0xff] %v3869_v7  ;;  %v3273_v42 = vadd.f32 %v3272_v23, %v3160_v13  ;;  %v3754_v28 = vpop.f32.mrf.mxu2  ;;  %v3697_v7 = vld [vmem:[#allocation2 + $0x10] sm:$0xff] }
 0x512   : > { %v3580_v56 = vpop.f32.mrf.mxu1 }
 0x513   : > { %v3332_v6 = vmax.f32 %v3273_v42, 0.0  ;;  %v3581_v3 = vadd.f32 %v3580_v56, %v3467_v12  ;;  %v6618_v1 = vpop.f32.mrf.mxu0 }
 0x515   : > { %v3834_v37 = vadd.f32 %v3742_v33, %v3581_v3  ;;  %3627 = vmatmul.f32.gmra.mxu1 %v3332_v6  ;;  %v3175_v3 = vadd.f32 %v6451_v49, %v6553_v57  ;;  %v3423_v57 = vld [vmem:[%s6813_s1 + $0xd8] sm:$0xff] }
 0x516   : > { %3804 = vmatmul.f32.gmra.mxu2 %v3694_v18  ;;  %3529 = vmatmul.f32.gmra.mxu0 %v3419_v46  ;;  %v3699_v46 = vld [vmem:[#allocation2 + $0xa0] sm:$0xff] }
 0x517   : > { %v3870_v24 = vadd.f32 %v6583_v44, %v3834_v37 }
 0x518   : > { %v3275_v22 = vpop.f32.mrf.mxu3 }
 0x519   : > { %3902 = vst [vmem:[%s6824_s12 + $0x10] sm:$0xff] %v3870_v24  ;;  %v3276_v12 = vadd.f32 %v3275_v22, %v3163_v31  ;;  %v3757_v8 = vpop.f32.mrf.mxu2  ;;  %v3698_v31 = vld [vmem:[#allocation2 + $0x28] sm:$0xff] }
 0x51a   : > { %v3583_v33 = vpop.f32.mrf.mxu1 }
 0x51b   : > { %v3333_v53 = vmax.f32 %v3276_v12, 0.0  ;;  %v3584_v54 = vadd.f32 %v3583_v33, %v3470_v50  ;;  %v6630_v47 = vpop.f32.mrf.mxu0 }
 0x51d   : > { %v3835_v36 = vadd.f32 %v3745_v29, %v3584_v54  ;;  %3630 = vmatmul.f32.gmra.mxu1 %v3333_v53  ;;  %v3178_v53 = vadd.f32 %v6451_v49, %v6354_v19  ;;  %v3424_v19 = vld [vmem:[%s6813_s1 + $0xe0] sm:$0xff] }
 0x51e   : > { %3807 = vmatmul.f32.gmra.mxu2 %v3695_v5  ;;  %3532 = vmatmul.f32.gmra.mxu0 %v3420_v35 }
 0x51f   : > { %v3871_v11 = vadd.f32 %v6583_v44, %v3835_v36 }
 0x520   : > { %v3278_v40 = vpop.f32.mrf.mxu3 }
 0x521   : > { %3903 = vst [vmem:[%s6824_s12 + $0x18] sm:$0xff] %v3871_v11  ;;  %v3279_v50 = vadd.f32 %v3278_v40, %v3166_v51  ;;  %v3760_v27 = vpop.f32.mrf.mxu2 }
 0x522   : > { %v3586_v29 = vpop.f32.mrf.mxu1 }
 0x523   : > { %v3334_v32 = vmax.f32 %v3279_v50, 0.0  ;;  %v3587_v14 = vadd.f32 %v3586_v29, %v6585_v63  ;;  %v6642_v52 = vpop.f32.mrf.mxu0  ;;  %v3181_v29 = vadd.f32 %v6451_v49, %v6371_v25  ;;  %v3425_v25 = vld [vmem:[%s6813_s1 + $0xe8] sm:$0xff] }
 0x525   : > { %v3836_v4 = vadd.f32 %v3748_v58, %v3587_v14  ;;  %3633 = vmatmul.f32.gmra.mxu1 %v3334_v32 }
 0x526   : > { %3810 = vmatmul.f32.gmra.mxu2 %v3696_v2  ;;  %3535 = vmatmul.f32.gmra.mxu0 %v3421_v43  ;;  %v3184_v2 = vadd.f32 %v6451_v49, %v6382_v38  ;;  %v3426_v38 = vld [vmem:[%s6813_s1 + $0xf0] sm:$0xff] }
 0x527   : > { %v3872_v9 = vadd.f32 %v6583_v44, %v3836_v4  ;;  %v3700_v4 = vld [vmem:[#allocation2 + $0xf8] sm:$0xff] }
 0x528   : > { %v3281_v39 = vpop.f32.mrf.mxu3 }
 0x529   : > { %3904 = vst [vmem:[%s6824_s12 + $0x20] sm:$0xff] %v3872_v9  ;;  %v3282_v63 = vadd.f32 %v3281_v39, %v3169_v20  ;;  %v3763_v17 = vpop.f32.mrf.mxu2 }
 0x52a   : > { %v3589_v58 = vpop.f32.mrf.mxu1 }
 0x52b   : > { %v3335_v10 = vmax.f32 %v3282_v63, 0.0  ;;  %v3590_v30 = vadd.f32 %v3589_v58, %v6596_v59  ;;  %v6654_v26 = vpop.f32.mrf.mxu0 }
 0x52d   : > { %v3837_v34 = vadd.f32 %v3751_v61, %v3590_v30  ;;  %3636 = vmatmul.f32.gmra.mxu1 %v3335_v10 }
 0x52e   : > { %3813 = vmatmul.f32.gmra.mxu2 %v3697_v7  ;;  %3538 = vmatmul.f32.gmra.mxu0 %v3422_v21 }
 0x52f   : > { %v3873_v45 = vadd.f32 %v6583_v44, %v3837_v34 }
 0x530   : > { %v3284_v13 = vpop.f32.mrf.mxu3 }
 0x531   : > { %3905 = vst [vmem:[%s6824_s12 + $0x28] sm:$0xff] %v3873_v45  ;;  %v3285_v59 = vadd.f32 %v3284_v13, %v3172_v41  ;;  %v3766_v6 = vpop.f32.mrf.mxu2 }
 0x532   : > { %v3592_v61 = vpop.f32.mrf.mxu1 }
 0x533   : > { %v3336_v23 = vmax.f32 %v3285_v59, 0.0  ;;  %v3593_v42 = vadd.f32 %v3592_v61, %v6607_v16  ;;  %v6666_v12 = vpop.f32.mrf.mxu0  ;;  %v3187_v59 = vadd.f32 %v6451_v49, %v6396_v62  ;;  %v3427_v62 = vld [vmem:[%s6813_s1 + $0xf8] sm:$0xff] }
 0x535   : > { %v3838_v56 = vadd.f32 %v3754_v28, %v3593_v42  ;;  %3639 = vmatmul.f32.gmra.mxu1 %v3336_v23  ;;  %v3702_v42 = vld [vmem:[#allocation2 + $0x98] sm:$0xff] }
 0x536   : > { %3816 = vmatmul.f32.gmra.mxu2 %v3698_v31  ;;  %3541 = vmatmul.f32.gmra.mxu0 %v3423_v57 }
 0x537   : > { %v3874_v37 = vadd.f32 %v6583_v44, %v3838_v56 }
 0x538   : > { %v3287_v0 = vpop.f32.mrf.mxu3 }
 0x539   : > { %3906 = vst [vmem:[%s6824_s12 + $0x30] sm:$0xff] %v3874_v37  ;;  %v3288_v16 = vadd.f32 %v3287_v0, %v3175_v3  ;;  %v3769_v33 = vpop.f32.mrf.mxu2  ;;  %v3190_v0 = vadd.f32 %v6451_v49, %v6413_v60 }
 0x53a   : > { %v3595_v28 = vpop.f32.mrf.mxu1 }
 0x53b   : > { %v3337_v24 = vmax.f32 %v3288_v16, 0.0  ;;  %v3596_v22 = vadd.f32 %v3595_v28, %v6618_v1  ;;  %v3497_v40 = vpop.f32.mrf.mxu0 }
 0x53d   : > { %v3839_v18 = vadd.f32 %v3757_v8, %v3596_v22  ;;  %3642 = vmatmul.f32.gmra.mxu1 %v3337_v24 }
 0x53e   : > { %3819 = vmatmul.f32.gmra.mxu2 %v3699_v46  ;;  %3544 = vmatmul.f32.gmra.mxu0 %v3424_v19 }
 0x53f   : > { %v3875_v54 = vadd.f32 %v6583_v44, %v3839_v18 }
 0x540   : > { %v3290_v36 = vpop.f32.mrf.mxu3 }
 0x541   : > { %3907 = vst [vmem:[%s6824_s12 + $0x38] sm:$0xff] %v3875_v54  ;;  %v3291_v1 = vadd.f32 %v3290_v36, %v3178_v53  ;;  %v3772_v5 = vpop.f32.mrf.mxu2  ;;  %v3193_v53 = vadd.f32 %v6451_v49, %v6424_v15 }
 0x542   : > { %v3598_v8 = vpop.f32.mrf.mxu1 }
 0x543   : > { %v3338_v51 = vmax.f32 %v3291_v1, 0.0  ;;  %v3599_v11 = vadd.f32 %v3598_v8, %v6630_v47  ;;  %v3500_v9 = vpop.f32.mrf.mxu0 }
 0x545   : > { %v3840_v50 = vadd.f32 %v3760_v27, %v3599_v11  ;;  %3645 = vmatmul.f32.gmra.mxu1 %v3338_v51 }
 0x546   : > { %3822 = vmatmul.f32.gmra.mxu2 %v3700_v4  ;;  %3547 = vmatmul.f32.gmra.mxu0 %v3425_v25 }
 0x547   : > { %v3876_v32 = vadd.f32 %v6583_v44, %v3840_v50  ;;  %v3196_v50 = vadd.f32 %v6451_v49, %v6435_v48 }
 0x548   : > { %v3293_v14 = vpop.f32.mrf.mxu3 }
 0x549   : > { %3908 = vst [vmem:[%s6824_s12 + $0x40] sm:$0xff] %v3876_v32  ;;  %v3294_v47 = vadd.f32 %v3293_v14, %v3181_v29  ;;  %v3775_v63 = vpop.f32.mrf.mxu2 }
 0x54a   : > { %v3601_v27 = vpop.f32.mrf.mxu1 }
 0x54b   : > { %v3339_v35 = vmax.f32 %v3294_v47, 0.0  ;;  %v3602_v20 = vadd.f32 %v3601_v27, %v6642_v52  ;;  %v3701_v52 = vld [vmem:[#allocation2 + $0x20] sm:$0xff]  ;;  %v3503_v41 = vpop.f32.mrf.mxu0  ;;  %v3199_v27 = vadd.f32 %v6451_v49, %v6446_v55 }
 0x54d   : > { %v3841_v39 = vadd.f32 %v3763_v17, %v3602_v20  ;;  %3648 = vmatmul.f32.gmra.mxu1 %v3339_v35 }
 0x54e   : > { %3825 = vmatmul.f32.gmra.mxu2 %v3701_v52  ;;  %3550 = vmatmul.f32.gmra.mxu0 %v3426_v38 }
 0x54f   : > { %v3877_v58 = vadd.f32 %v6583_v44, %v3841_v39 }
 0x550   : > { %v3296_v10 = vpop.f32.mrf.mxu3 }
 0x551   : > { %3909 = vst [vmem:[%s6824_s12 + $0x48] sm:$0xff] %v3877_v58  ;;  %v3297_v30 = vadd.f32 %v3296_v10, %v3184_v2  ;;  %v3778_v13 = vpop.f32.mrf.mxu2 }
 0x552   : > { %v3604_v34 = vpop.f32.mrf.mxu1 }
 0x553   : > { %v3340_v17 = vmax.f32 %v3297_v30, 0.0  ;;  %v3605_v43 = vadd.f32 %v3604_v34, %v6654_v26  ;;  %v3506_v21 = vpop.f32.mrf.mxu0 }
 0x555   : > { %v3842_v45 = vadd.f32 %v3766_v6, %v3605_v43  ;;  %3651 = vmatmul.f32.gmra.mxu1 %v3340_v17 }
 0x556   : > { %3828 = vmatmul.f32.gmra.mxu2 %v3702_v42  ;;  %3553 = vmatmul.f32.gmra.mxu0 %v3427_v62 }
 0x557   : > { %v3878_v7 = vadd.f32 %v6583_v44, %v3842_v45 }
 0x558   : > { %v3299_v61 = vpop.f32.mrf.mxu3 }
 0x559   : > { %3910 = vst [vmem:[%s6824_s12 + $0x50] sm:$0xff] %v3878_v7  ;;  %v3300_v23 = vadd.f32 %v3299_v61, %v3187_v59  ;;  %v3781_v37 = vpop.f32.mrf.mxu2 }
 0x55a   : > { %v3607_v26 = vpop.f32.mrf.mxu1 }
 0x55b   : > { %v3341_v56 = vmax.f32 %v3300_v23, 0.0  ;;  %v3608_v6 = vadd.f32 %v3607_v26, %v6666_v12  ;;  %v3509_v18 = vpop.f32.mrf.mxu0 }
 0x55d   : > { %v3843_v3 = vadd.f32 %v3769_v33, %v3608_v6  ;;  %3654 = vmatmul.f32.gmra.mxu1 %v3341_v56 }
 0x55f   : > { %v3879_v16 = vadd.f32 %v6583_v44, %v3843_v3 }
 0x560   : > { %v3302_v31 = vpop.f32.mrf.mxu3 }
 0x561   : > { %3911 = vst [vmem:[%s6824_s12 + $0x58] sm:$0xff] %v3879_v16  ;;  %v3303_v28 = vadd.f32 %v3302_v31, %v3190_v0  ;;  %v3784_v57 = vpop.f32.mrf.mxu2 }
 0x562   : > { %v3610_v24 = vpop.f32.mrf.mxu1 }
 0x563   : > { %v3342_v22 = vmax.f32 %v3303_v28, 0.0  ;;  %v3611_v12 = vadd.f32 %v3610_v24, %v3497_v40  ;;  %v3512_v51 = vpop.f32.mrf.mxu0 }
 0x565   : > { %v3844_v33 = vadd.f32 %v3772_v5, %v3611_v12  ;;  %3657 = vmatmul.f32.gmra.mxu1 %v3342_v22 }
 0x567   : > { %v3880_v60 = vadd.f32 %v6583_v44, %v3844_v33 }
 0x568   : > { %v3305_v54 = vpop.f32.mrf.mxu3 }
 0x569   : > { %3912 = vst [vmem:[%s6824_s12 + $0x60] sm:$0xff] %v3880_v60  ;;  %v3306_v36 = vadd.f32 %v3305_v54, %v3193_v53  ;;  %v3787_v40 = vpop.f32.mrf.mxu2 }
 0x56a   : > { %v3613_v1 = vpop.f32.mrf.mxu1 }
 0x56b   : > { %v3343_v46 = vmax.f32 %v3306_v36, 0.0  ;;  %v3614_v8 = vadd.f32 %v3613_v1, %v3500_v9  ;;  %v3515_v4 = vpop.f32.mrf.mxu0 }
 0x56d   : > { %v3845_v11 = vadd.f32 %v3775_v63, %v3614_v8  ;;  %3660 = vmatmul.f32.gmra.mxu1 %v3343_v46 }
 0x56f   : > { %v3881_v15 = vadd.f32 %v6583_v44, %v3845_v11 }
 0x570   : > { %v3308_v5 = vpop.f32.mrf.mxu3 }
 0x571   : > { %3913 = vst [vmem:[%s6824_s12 + $0x68] sm:$0xff] %v3881_v15  ;;  %v3309_v19 = vadd.f32 %v3308_v5, %v3196_v50  ;;  %v3790_v20 = vpop.f32.mrf.mxu2 }
 0x572   : > { %v3616_v29 = vpop.f32.mrf.mxu1 }
 0x573   : > { %v3344_v32 = vmax.f32 %v3309_v19, 0.0  ;;  %v3617_v14 = vadd.f32 %v3616_v29, %v3503_v41  ;;  %v3518_v10 = vpop.f32.mrf.mxu0 }
 0x575   : > { %v3846_v47 = vadd.f32 %v3778_v13, %v3617_v14  ;;  %3663 = vmatmul.f32.gmra.mxu1 %v3344_v32 }
 0x577   : > { %v3882_v35 = vadd.f32 %v6583_v44, %v3846_v47 }
 0x578   : > { %v3311_v48 = vpop.f32.mrf.mxu3 }
 0x579   : > { %3914 = vst [vmem:[%s6824_s12 + $0x70] sm:$0xff] %v3882_v35  ;;  %v3312_v9 = vadd.f32 %v3311_v48, %v3199_v27  ;;  %v3793_v49 = vpop.f32.mrf.mxu2 }
 0x57a   : > { %v3619_v39 = vpop.f32.mrf.mxu1 }
 0x57b   : > { %v3345_v63 = vmax.f32 %v3312_v9, 0.0  ;;  %v3620_v25 = vadd.f32 %v3619_v39, %v3506_v21  ;;  %v3521_v43 = vpop.f32.mrf.mxu0 }
 0x57d   : > { %v3847_v2 = vadd.f32 %v3781_v37, %v3620_v25  ;;  %3666 = vmatmul.f32.gmra.mxu1 %v3345_v63 }
 0x57f   : > { %v3883_v58 = vadd.f32 %v6583_v44, %v3847_v2 }
 0x581   : > { %3915 = vst [vmem:[%s6824_s12 + $0x78] sm:$0xff] %v3883_v58  ;;  %v3796_v45 = vpop.f32.mrf.mxu2 }
 0x582   : > { %v3622_v55 = vpop.f32.mrf.mxu1 }
 0x583   : > { %v3623_v30 = vadd.f32 %v3622_v55, %v3509_v18  ;;  %v3524_v61 = vpop.f32.mrf.mxu0 }
 0x585   : > { %v3848_v52 = vadd.f32 %v3784_v57, %v3623_v30 }
 0x587   : > { %v3884_v34 = vadd.f32 %v6583_v44, %v3848_v52 }
 0x589   : > { %3916 = vst [vmem:[%s6824_s12 + $0x80] sm:$0xff] %v3884_v34  ;;  %v3799_v42 = vpop.f32.mrf.mxu2 }
 0x58a   : > { %v3625_v17 = vpop.f32.mrf.mxu1 }
 0x58b   : > { %v3626_v41 = vadd.f32 %v3625_v17, %v3512_v51  ;;  %v3527_v3 = vpop.f32.mrf.mxu0 }
 0x58d   : > { %v3849_v13 = vadd.f32 %v3787_v40, %v3626_v41 }
 0x58f   : > { %v3885_v38 = vadd.f32 %v6583_v44, %v3849_v13 }
 0x591   : > { %3917 = vst [vmem:[%s6824_s12 + $0x88] sm:$0xff] %v3885_v38  ;;  %v3802_v62 = vpop.f32.mrf.mxu2 }
 0x592   : > { %v3628_v59 = vpop.f32.mrf.mxu1 }
 0x593   : > { %v3629_v7 = vadd.f32 %v3628_v59, %v3515_v4  ;;  %v3530_v24 = vpop.f32.mrf.mxu0 }
 0x595   : > { %v3850_v23 = vadd.f32 %v3790_v20, %v3629_v7 }
 0x597   : > { %v3886_v26 = vadd.f32 %v6583_v44, %v3850_v23 }
 0x599   : > { %3918 = vst [vmem:[%s6824_s12 + $0x90] sm:$0xff] %v3886_v26  ;;  %v3805_v12 = vpop.f32.mrf.mxu2 }
 0x59a   : > { %v3631_v56 = vpop.f32.mrf.mxu1 }
 0x59b   : > { %v3632_v6 = vadd.f32 %v3631_v56, %v3518_v10  ;;  %v3533_v60 = vpop.f32.mrf.mxu0 }
 0x59d   : > { %v3851_v21 = vadd.f32 %v3793_v49, %v3632_v6 }
 0x59f   : > { %v3887_v37 = vadd.f32 %v6583_v44, %v3851_v21 }
 0x5a1   : > { %3919 = vst [vmem:[%s6824_s12 + $0x98] sm:$0xff] %v3887_v37  ;;  %v3808_v36 = vpop.f32.mrf.mxu2 }
 0x5a2   : > { %v3634_v0 = vpop.f32.mrf.mxu1 }
 0x5a3   : > { %v3635_v16 = vadd.f32 %v3634_v0, %v3521_v43  ;;  %v3536_v11 = vpop.f32.mrf.mxu0 }
 0x5a5   : > { %v3852_v31 = vadd.f32 %v3796_v45, %v3635_v16 }
 0x5a7   : > { %v3888_v28 = vadd.f32 %v6583_v44, %v3852_v31 }
 0x5a9   : > { %3920 = vst [vmem:[%s6824_s12 + $0xa0] sm:$0xff] %v3888_v28  ;;  %v3811_v50 = vpop.f32.mrf.mxu2 }
 0x5aa   : > { %v3637_v22 = vpop.f32.mrf.mxu1 }
 0x5ab   : > { %v3638_v18 = vadd.f32 %v3637_v22, %v3524_v61  ;;  %v3539_v32 = vpop.f32.mrf.mxu0 }
 0x5ad   : > { %v3853_v33 = vadd.f32 %v3799_v42, %v3638_v18 }
 0x5af   : > { %v3889_v57 = vadd.f32 %v6583_v44, %v3853_v33 }
 0x5b1   : > { %3921 = vst [vmem:[%s6824_s12 + $0xa8] sm:$0xff] %v3889_v57  ;;  %v3814_v47 = vpop.f32.mrf.mxu2 }
 0x5b2   : > { %v3640_v53 = vpop.f32.mrf.mxu1 }
 0x5b3   : > { %v3641_v54 = vadd.f32 %v3640_v53, %v3527_v3  ;;  %v3542_v20 = vpop.f32.mrf.mxu0 }
 0x5b5   : > { %v3854_v1 = vadd.f32 %v3802_v62, %v3641_v54 }
 0x5b7   : > { %v3890_v46 = vadd.f32 %v6583_v44, %v3854_v1 }
 0x5b9   : > { %3922 = vst [vmem:[%s6824_s12 + $0xb0] sm:$0xff] %v3890_v46  ;;  %v3817_v39 = vpop.f32.mrf.mxu2 }
 0x5ba   : > { %v3643_v8 = vpop.f32.mrf.mxu1 }
 0x5bb   : > { %v3644_v51 = vadd.f32 %v3643_v8, %v3530_v24  ;;  %v3545_v10 = vpop.f32.mrf.mxu0 }
 0x5bd   : > { %v3855_v40 = vadd.f32 %v3805_v12, %v3644_v51 }
 0x5bf   : > { %v3891_v15 = vadd.f32 %v6583_v44, %v3855_v40 }
 0x5c1   : > { %3923 = vst [vmem:[%s6824_s12 + $0xb8] sm:$0xff] %v3891_v15  ;;  %v3820_v49 = vpop.f32.mrf.mxu2 }
 0x5c2   : > { %v3646_v5 = vpop.f32.mrf.mxu1 }
 0x5c3   : > { %v3647_v19 = vadd.f32 %v3646_v5, %v3533_v60  ;;  %v3548_v43 = vpop.f32.mrf.mxu0 }
 0x5c5   : > { %v3856_v29 = vadd.f32 %v3808_v36, %v3647_v19 }
 0x5c7   : > { %v3892_v14 = vadd.f32 %v6583_v44, %v3856_v29 }
 0x5c9   : > { %3924 = vst [vmem:[%s6824_s12 + $0xc0] sm:$0xff] %v3892_v14  ;;  %v3823_v45 = vpop.f32.mrf.mxu2 }
 0x5ca   : > { %v3649_v4 = vpop.f32.mrf.mxu1 }
 0x5cb   : > { %v3650_v27 = vadd.f32 %v3649_v4, %v3536_v11  ;;  %v3551_v61 = vpop.f32.mrf.mxu0 }
 0x5cd   : > { %v3857_v35 = vadd.f32 %v3811_v50, %v3650_v27 }
 0x5cf   : > { %v3893_v48 = vadd.f32 %v6583_v44, %v3857_v35 }
 0x5d1   : > { %3925 = vst [vmem:[%s6824_s12 + $0xc8] sm:$0xff] %v3893_v48  ;;  %v3826_v42 = vpop.f32.mrf.mxu2 }
 0x5d2   : > { %v3652_v9 = vpop.f32.mrf.mxu1 }
 0x5d3   : > { %v3653_v63 = vadd.f32 %v3652_v9, %v3539_v32  ;;  %v3554_v3 = vpop.f32.mrf.mxu0 }
 0x5d5   : > { %v3858_v25 = vadd.f32 %v3814_v47, %v3653_v63 }
 0x5d7   : > { %v3894_v2 = vadd.f32 %v6583_v44, %v3858_v25 }
 0x5d9   : > { %3926 = vst [vmem:[%s6824_s12 + $0xd0] sm:$0xff] %v3894_v2  ;;  %v3829_v62 = vpop.f32.mrf.mxu2 }
 0x5da   : > { %v3655_v58 = vpop.f32.mrf.mxu1 }
 0x5db   : > { %v3656_v55 = vadd.f32 %v3655_v58, %v3542_v20 }
 0x5dd   : > { %v3859_v30 = vadd.f32 %v3817_v39, %v3656_v55 }
 0x5df   : > { %v3895_v52 = vadd.f32 %v6583_v44, %v3859_v30 }
 0x5e1   : > { %3927 = vst [vmem:[%s6824_s12 + $0xd8] sm:$0xff] %v3895_v52 }
 0x5e2   : > { %v3658_v34 = vpop.f32.mrf.mxu1 }
 0x5e3   : > { %v3659_v17 = vadd.f32 %v3658_v34, %v3545_v10 }
 0x5e5   : > { %v3860_v41 = vadd.f32 %v3820_v49, %v3659_v17 }
 0x5e7   : > { %v3896_v13 = vadd.f32 %v6583_v44, %v3860_v41 }
 0x5e9   : > { %3928 = vst [vmem:[%s6824_s12 + $0xe0] sm:$0xff] %v3896_v13 }
 0x5ea   : > { %v3661_v38 = vpop.f32.mrf.mxu1 }
 0x5eb   : > { %v3662_v59 = vadd.f32 %v3661_v38, %v3548_v43 }
 0x5ed   : > { %v3861_v7 = vadd.f32 %v3823_v45, %v3662_v59 }
 0x5ef   : > { %v3897_v23 = vadd.f32 %v6583_v44, %v3861_v7 }
 0x5f1   : > { %3929 = vst [vmem:[%s6824_s12 + $0xe8] sm:$0xff] %v3897_v23 }
 0x5f2   : > { %v3664_v26 = vpop.f32.mrf.mxu1 }
 0x5f3   : > { %v3665_v56 = vadd.f32 %v3664_v26, %v3551_v61 }
 0x5f5   : > { %v3862_v6 = vadd.f32 %v3826_v42, %v3665_v56 }
 0x5f7   : > { %v3898_v21 = vadd.f32 %v6583_v44, %v3862_v6 }
 0x5f9   : > { %3930 = vst [vmem:[%s6824_s12 + $0xf0] sm:$0xff] %v3898_v21 }
 0x5fa   : > { %v3667_v37 = vpop.f32.mrf.mxu1 }
 0x5fb   : > { %v3668_v0 = vadd.f32 %v3667_v37, %v3554_v3 }
 0x5fd   : > { %v3863_v16 = vadd.f32 %v3829_v62, %v3668_v0 }
 0x5ff   : > { %v3899_v31 = vadd.f32 %v6583_v44, %v3863_v16 }
 0x601   : > { %3931 = vst [vmem:[%s6824_s12 + $0xf8] sm:$0xff] %v3899_v31 }
 0x602 PF: > { %s22_s23 = sadd.s32 1, %s4788_s23   ;;  %s6831_s21 = smov %s4784_s22 }
 0x603   : > { %p19_p7 = scmp.ge.s32.totalorder %s22_s23, 4   ;;  %s6832_s22 = smov %s6834_s24 }
 0x605   :  { %21 = sbr.rel (!%p19_p7) target bundleno = 2 (0x2), region = 118 }

</bundles_post_ra>
